<compile_context>
chip_gen: v6e
topology: v6e:2x2x1
jax: 0.10.0
libtpu: 0.0.40
codegen_flags: <defaults>
</compile_context>

<pallas_src>
import functools

import numpy as np
import jax
import jax.numpy as jnp
from jax.experimental import pallas as pl
from jax.experimental.pallas import tpu as pltpu

EPS = 1e-5


# ----------------------------- fused Pallas kernel ---------------------------

def _instance_norm_cs(x, gamma, beta):
    """InstanceNorm on a (C, S) tile: per-channel stats over the lane axis S."""
    mean = jnp.mean(x, axis=1, keepdims=True)
    var = jnp.mean(jnp.square(x - mean), axis=1, keepdims=True)
    y = (x - mean) * jax.lax.rsqrt(var + EPS)
    return y * gamma + beta


def _fused_kernel(x_ref, mask_ref, in_w_ref, in_b_ref,
                  w1_ref, b1_ref, g1_ref, be1_ref,
                  w2_ref, b2_ref, g2_ref, be2_ref,
                  w3_ref, b3_ref, g3_ref, be3_ref,
                  o_ref, patches_ref, *, sd, sh, sw, reps):
    S = sd * sh * sw
    mid = w1_ref.shape[1]

    x = x_ref[0]                                              # (c0, S)
    # in_conv: 1x1x1 conv == (Cout, c0) @ (c0, S), bias broadcast on sublanes.
    y = jnp.dot(in_w_ref[...], x,
                preferred_element_type=jnp.float32) + in_b_ref[...]

    for r in range(reps):                                     # bottleneck_block_3D
        ident = y

        # -- 1x1x1 conv (C -> mid) + InstanceNorm + ReLU ----------------------
        h = jnp.dot(w1_ref[r], y,
                    preferred_element_type=jnp.float32) + b1_ref[r]
        h = jnp.maximum(_instance_norm_cs(h, g1_ref[r], be1_ref[r]), 0.0)

        # -- 3x3x3 conv (mid -> mid, padding=1) as ONE im2col matmul ----------
        # For each tap (di,dj,dk): roll the flat spatial axis by the tap offset
        # (lane rotation on the XLU), zero out-of-volume halo positions with a
        # precomputed (1, S) mask, and stage the (mid, S) slab into a
        # (27*mid, S) VMEM patch buffer.  Then a single MXU matmul.
        t = 0
        for di in (-1, 0, 1):
            for dj in (-1, 0, 1):
                for dk in (-1, 0, 1):
                    off = di * sh * sw + dj * sw + dk
                    if off == 0:
                        tap = h
                    else:
                        shifted = pltpu.roll(h, shift=(-off) % S, axis=1)
                        tap = shifted * mask_ref[t:t + 1, :]
                    patches_ref[t * mid:(t + 1) * mid, :] = tap
                    t += 1
        h = jnp.dot(w2_ref[r], patches_ref[...],
                    preferred_element_type=jnp.float32) + b2_ref[r]
        h = jnp.maximum(_instance_norm_cs(h, g2_ref[r], be2_ref[r]), 0.0)

        # -- 1x1x1 conv (mid -> C) + InstanceNorm + residual add + ReLU -------
        h = jnp.dot(w3_ref[r], h,
                    preferred_element_type=jnp.float32) + b3_ref[r]
        h = _instance_norm_cs(h, g3_ref[r], be3_ref[r])
        y = jnp.maximum(ident + h, 0.0)

    o_ref[0] = y.astype(o_ref.dtype)


# ----------------------------- wrapper ---------------------------------------

def _conv3_tap_masks(sd, sh, sw):
    """(27, S) float mask: 1.0 where the tap's source voxel is inside the volume."""
    d = np.arange(sd)[:, None, None]
    h = np.arange(sh)[None, :, None]
    w = np.arange(sw)[None, None, :]
    masks = []
    for di in (-1, 0, 1):
        for dj in (-1, 0, 1):
            for dk in (-1, 0, 1):
                m = ((d + di >= 0) & (d + di < sd) &
                     (h + dj >= 0) & (h + dj < sh) &
                     (w + dk >= 0) & (w + dk < sw))
                masks.append(m.reshape(-1))
    return jnp.asarray(np.stack(masks), dtype=jnp.float32)


def _full_spec(shape):
    zeros = (0,) * len(shape)
    return pl.BlockSpec(shape, lambda n, _z=zeros: _z)


def up_smooth_bottom_3d(x, params):
    """x: (N, C, H, W, Z) NCDHW float32 -> (N, out_channels, 2H, 2W, 2Z)."""
    N, C, H, W, Z = x.shape
    c0 = C // 8
    cout = params["in_w"].shape[0]
    mid = params["w1"].shape[1]
    reps = params["w1"].shape[0]
    sd, sh, sw = 2 * H, 2 * W, 2 * Z
    S = sd * sh * sw

    # ReshapeLayer3D (pixel shuffle), produced directly in the channels-first,
    # spatial-flat layout (N, c0, S) used by the kernel.  This is the only XLA
    # side data movement; the kernel output is already NCDHW-flat, so the final
    # transpose of the previous version is gone.
    # TODO(synk): the pixel-shuffle gather itself is not expressible as a
    # BlockSpec index_map, so it stays as one XLA transpose on the small input.
    y = x.reshape(N, c0, 2, 2, 2, H, W, Z)
    y = jnp.transpose(y, (0, 1, 5, 2, 6, 3, 7, 4))
    y = y.reshape(N, c0, S)

    masks = _conv3_tap_masks(sd, sh, sw)

    weights = (params["in_w"], params["in_b"],
               params["w1"], params["b1"], params["g1"], params["be1"],
               params["w2"], params["b2"], params["g2"], params["be2"],
               params["w3"], params["b3"], params["g3"], params["be3"])

    kernel = functools.partial(_fused_kernel, sd=sd, sh=sh, sw=sw, reps=reps)

    # TODO(synk): for very large spatial volumes the per-sample (C, S) blocks
    # would need S-tiling (two-pass InstanceNorm + halo exchange) to stay under
    # v7x's 64 MiB VMEM; at UNet-bottom sizes a full sample fits comfortably.
    out = pl.pallas_call(
        kernel,
        out_shape=jax.ShapeDtypeStruct((N, cout, S), x.dtype),
        grid_spec=pltpu.PrefetchScalarGridSpec(
            num_scalar_prefetch=0,
            grid=(N,),
            in_specs=[pl.BlockSpec((1, c0, S), lambda n: (n, 0, 0)),
                      _full_spec(masks.shape)]
                     + [_full_spec(w.shape) for w in weights],
            out_specs=pl.BlockSpec((1, cout, S), lambda n: (n, 0, 0)),
            scratch_shapes=[pltpu.VMEM((27 * mid, S), jnp.float32)],
        ),
        compiler_params=pltpu.CompilerParams(
            dimension_semantics=("parallel",)),     # samples shard across TCs
    )(y, masks, *weights)

    return out.reshape(N, cout, sd, sh, sw)


# ----------------------------- parameter setup --------------------------------

def _power_iter_sigma(wmat, iters=30):
    m, n = wmat.shape
    v = jnp.ones((n,), jnp.float32) / jnp.sqrt(n)
    u = jnp.ones((m,), jnp.float32) / jnp.sqrt(m)
    for _ in range(iters):
        u = wmat @ v
        u = u / (jnp.linalg.norm(u) + 1e-12)
        v = wmat.T @ u
        v = v / (jnp.linalg.norm(v) + 1e-12)
    return jnp.dot(u, wmat @ v)


def _spectral_norm_fc(w, coeff=1.0):
    # spectral_norm_fc reshapes conv weights as (out_channels, -1).
    sigma = _power_iter_sigma(w.reshape(w.shape[0], -1))
    return w / jnp.maximum(1.0, sigma / coeff)


def init_params(key, in_channels, out_channels,
                repetition=2, bottleneck_reduction=2):
    assert in_channels // 8 == out_channels // 4
    mid = out_channels // bottleneck_reduction
    c0 = out_channels // 4
    keys = iter(jax.random.split(key, 2 + repetition * 12))

    def nrm(k, shape, scale=0.1):
        return scale * jax.random.normal(k, shape, jnp.float32)

    params = {
        "in_w": _spectral_norm_fc(nrm(next(keys), (out_channels, c0))),
        "in_b": nrm(next(keys), (out_channels, 1), 0.05),
    }
    names = ("w1", "b1", "g1", "be1", "w2", "b2", "g2", "be2",
             "w3", "b3", "g3", "be3")
    blk = {k: [] for k in names}
    for _ in range(repetition):
        blk["w1"].append(_spectral_norm_fc(nrm(next(keys), (mid, out_channels))))
        blk["b1"].append(nrm(next(keys), (mid, 1), 0.05))
        blk["g1"].append(1.0 + nrm(next(keys), (mid, 1)))
        blk["be1"].append(nrm(next(keys), (mid, 1)))
        # 3x3x3 conv weight stored as (co, tap, ci) -> (co, 27*ci) for im2col,
        # tap = (kd*3 + kh)*3 + kw, matching the kernel's patch stacking order.
        w2 = _spectral_norm_fc(nrm(next(keys), (mid, 27, mid)))
        blk["w2"].append(w2.reshape(mid, 27 * mid))
        blk["b2"].append(nrm(next(keys), (mid, 1), 0.05))
        blk["g2"].append(1.0 + nrm(next(keys), (mid, 1)))
        blk["be2"].append(nrm(next(keys), (mid, 1)))
        blk["w3"].append(_spectral_norm_fc(nrm(next(keys), (out_channels, mid))))
        blk["b3"].append(nrm(next(keys), (out_channels, 1), 0.05))
        blk["g3"].append(1.0 + nrm(next(keys), (out_channels, 1)))
        blk["be3"].append(nrm(next(keys), (out_channels, 1)))
    for k in names:
        params[k] = jnp.stack(blk[k], axis=0)
    return params


# ----------------------------- pure-JAX reference ------------------------------

def _ref_instnorm(x, g, b):          # x: (N, C, D, H, W), g/b: (C, 1)
    mean = x.mean(axis=(2, 3, 4), keepdims=True)
    var = jnp.square(x - mean).mean(axis=(2, 3, 4), keepdims=True)
    y = (x - mean) * jax.lax.rsqrt(var + EPS)
    return y * g.reshape(1, -1, 1, 1, 1) + b.reshape(1, -1, 1, 1, 1)


def _ref_conv1(x, w, b):             # w: (Cout, Cin), b: (Cout, 1)
    y = jnp.einsum("oc,ncdhw->nodhw", w, x,
                   precision=jax.lax.Precision.HIGHEST)
    return y + b.reshape(1, -1, 1, 1, 1)


def _ref_conv3(x, w2, b):            # w2: (mid, 27*mid) in (co, tap, ci) order
    mid = x.shape[1]
    w = w2.reshape(mid, 3, 3, 3, mid)            # (co, kd, kh, kw, ci)
    w = jnp.transpose(w, (0, 4, 1, 2, 3))        # (co, ci, kd, kh, kw)
    y = jax.lax.conv_general_dilated(
        x, w, window_strides=(1, 1, 1),
        padding=((1, 1), (1, 1), (1, 1)),
        dimension_numbers=("NCDHW", "OIDHW", "NCDHW"),
        precision=jax.lax.Precision.HIGHEST)
    return y + b.reshape(1, -1, 1, 1, 1)


def up_smooth_bottom_3d_reference(x, params):
    N, C, H, W, Z = x.shape
    c0 = C // 8
    y = x.reshape(N, c0, 2, 2, 2, H, W, Z)
    y = jnp.transpose(y, (0, 1, 5, 2, 6, 3, 7, 4)).reshape(N, c0, 2 * H, 2 * W, 2 * Z)
    y = _ref_conv1(y, params["in_w"], params["in_b"])
    for r in range(params["w1"].shape[0]):
        ident = y
        h = _ref_conv1(y, params["w1"][r], params["b1"][r])
        h = jax.nn.relu(_ref_instnorm(h, params["g1"][r], params["be1"][r]))
        h = _ref_conv3(h, params["w2"][r], params["b2"][r])
        h = jax.nn.relu(_ref_instnorm(h, params["g2"][r], params["be2"][r]))
        h = _ref_conv1(h, params["w3"][r], params["b3"][r])
        h = _ref_instnorm(h, params["g3"][r], params["be3"][r])
        y = jax.nn.relu(ident + h)
    return y


if __name__ == "__main__":
    key = jax.random.PRNGKey(0)
    kx, kp = jax.random.split(key)

    N, C, H, W, Z = 2, 32, 4, 4, 4            # in_channels = 32
    out_channels = 16                          # C // 8 == out_channels // 4

    x = jax.random.normal(kx, (N, C, H, W, Z), jnp.float32)
    params = init_params(kp, C, out_channels)

    fwd = jax.jit(up_smooth_bottom_3d)
    out = jax.block_until_ready(fwd(x, params))
    assert out.shape == (N, out_channels, 2 * H, 2 * W, 2 * Z), out.shape
    assert bool(jnp.all(jnp.isfinite(out)))

    ref = up_smooth_bottom_3d_reference(x, params)
    err = float(jnp.max(jnp.abs(out - ref)))
    assert err < 1e-2, f"mismatch vs pure-JAX reference: max abs err = {err}"

    print("KERNEL_OK")
</pallas_src>

<mosaic_0001>
module attributes {stable_mosaic.version = 11 : i64} {
  func.func @_fused_kernel(%arg0: i32, %arg1: memref<1x4x512xf32, #tpu.memory_space<vmem>>, %arg2: memref<27x512xf32, #tpu.memory_space<vmem>>, %arg3: memref<16x4xf32, #tpu.memory_space<vmem>>, %arg4: memref<16x1xf32, #tpu.memory_space<vmem>>, %arg5: memref<2x8x16xf32, #tpu.memory_space<vmem>>, %arg6: memref<2x8x1xf32, #tpu.memory_space<vmem>>, %arg7: memref<2x8x1xf32, #tpu.memory_space<vmem>>, %arg8: memref<2x8x1xf32, #tpu.memory_space<vmem>>, %arg9: memref<2x8x216xf32, #tpu.memory_space<vmem>>, %arg10: memref<2x8x1xf32, #tpu.memory_space<vmem>>, %arg11: memref<2x8x1xf32, #tpu.memory_space<vmem>>, %arg12: memref<2x8x1xf32, #tpu.memory_space<vmem>>, %arg13: memref<2x16x8xf32, #tpu.memory_space<vmem>>, %arg14: memref<2x16x1xf32, #tpu.memory_space<vmem>>, %arg15: memref<2x16x1xf32, #tpu.memory_space<vmem>>, %arg16: memref<2x16x1xf32, #tpu.memory_space<vmem>>, %arg17: memref<1x16x512xf32, #tpu.memory_space<vmem>>, %arg18: memref<216x512xf32, #tpu.memory_space<vmem>>) attributes {dimension_semantics = [#tpu.dimension_semantics<parallel>], iteration_bounds = array<i64: 2>, scalar_prefetch = 0 : i64, scratch_operands = 1 : i64, tpu.core_type = #tpu.core_type<tc>, window_params = [{transform_indices = @transform_0, window_bounds = array<i64: 1, 4, 512>}, {pipeline_mode = #tpu.pipeline_mode<synchronous>, transform_indices = @transform_1, window_bounds = array<i64: 27, 512>}, {pipeline_mode = #tpu.pipeline_mode<synchronous>, transform_indices = @transform_2, window_bounds = array<i64: 16, 4>}, {pipeline_mode = #tpu.pipeline_mode<synchronous>, transform_indices = @transform_3, window_bounds = array<i64: 16, 1>}, {pipeline_mode = #tpu.pipeline_mode<synchronous>, transform_indices = @transform_4, window_bounds = array<i64: 2, 8, 16>}, {pipeline_mode = #tpu.pipeline_mode<synchronous>, transform_indices = @transform_5, window_bounds = array<i64: 2, 8, 1>}, {pipeline_mode = #tpu.pipeline_mode<synchronous>, transform_indices = @transform_6, window_bounds = array<i64: 2, 8, 1>}, {pipeline_mode = #tpu.pipeline_mode<synchronous>, transform_indices = @transform_7, window_bounds = array<i64: 2, 8, 1>}, {pipeline_mode = #tpu.pipeline_mode<synchronous>, transform_indices = @transform_8, window_bounds = array<i64: 2, 8, 216>}, {pipeline_mode = #tpu.pipeline_mode<synchronous>, transform_indices = @transform_9, window_bounds = array<i64: 2, 8, 1>}, {pipeline_mode = #tpu.pipeline_mode<synchronous>, transform_indices = @transform_10, window_bounds = array<i64: 2, 8, 1>}, {pipeline_mode = #tpu.pipeline_mode<synchronous>, transform_indices = @transform_11, window_bounds = array<i64: 2, 8, 1>}, {pipeline_mode = #tpu.pipeline_mode<synchronous>, transform_indices = @transform_12, window_bounds = array<i64: 2, 16, 8>}, {pipeline_mode = #tpu.pipeline_mode<synchronous>, transform_indices = @transform_13, window_bounds = array<i64: 2, 16, 1>}, {pipeline_mode = #tpu.pipeline_mode<synchronous>, transform_indices = @transform_14, window_bounds = array<i64: 2, 16, 1>}, {pipeline_mode = #tpu.pipeline_mode<synchronous>, transform_indices = @transform_15, window_bounds = array<i64: 2, 16, 1>}, {transform_indices = @transform_16, window_bounds = array<i64: 1, 16, 512>}]} {
    %c0 = arith.constant 0 : index
    %c0_0 = arith.constant 0 : index
    %c0_1 = arith.constant 0 : index
    %0 = vector.load %arg1[%c0, %c0_0, %c0_1] : memref<1x4x512xf32, #tpu.memory_space<vmem>>, vector<1x4x512xf32>
    %1 = vector.shape_cast %0 : vector<1x4x512xf32> to vector<4x512xf32>
    %c0_2 = arith.constant 0 : index
    %c0_3 = arith.constant 0 : index
    %2 = vector.load %arg3[%c0_2, %c0_3] : memref<16x4xf32, #tpu.memory_space<vmem>>, vector<16x4xf32>
    %cst = arith.constant dense<0.000000e+00> : vector<16x512xf32>
    %3 = tpu.matmul %2, %1, %cst {dimension_numbers = #tpu.dot_dimension_numbers<[1], [0], [0], [1], [0, 0, 1, 1], [], []>} : vector<16x4xf32>, vector<4x512xf32>, vector<16x512xf32> -> vector<16x512xf32>
    %c0_4 = arith.constant 0 : index
    %c0_5 = arith.constant 0 : index
    %4 = vector.load %arg4[%c0_4, %c0_5] : memref<16x1xf32, #tpu.memory_space<vmem>>, vector<16x1xf32>
    %5 = vector.broadcast %4 : vector<16x1xf32> to vector<16x512xf32>
    %6 = arith.addf %3, %5 : vector<16x512xf32>
    %c0_6 = arith.constant 0 : index
    %c0_7 = arith.constant 0 : index
    %c0_8 = arith.constant 0 : index
    %7 = vector.load %arg5[%c0_6, %c0_7, %c0_8] : memref<2x8x16xf32, #tpu.memory_space<vmem>>, vector<1x8x16xf32>
    %8 = vector.shape_cast %7 : vector<1x8x16xf32> to vector<8x16xf32>
    %cst_9 = arith.constant dense<0.000000e+00> : vector<8x512xf32>
    %9 = tpu.matmul %8, %6, %cst_9 {dimension_numbers = #tpu.dot_dimension_numbers<[1], [0], [0], [1], [0, 0, 1, 1], [], []>} : vector<8x16xf32>, vector<16x512xf32>, vector<8x512xf32> -> vector<8x512xf32>
    %c0_10 = arith.constant 0 : index
    %c0_11 = arith.constant 0 : index
    %c0_12 = arith.constant 0 : index
    %10 = vector.load %arg6[%c0_10, %c0_11, %c0_12] : memref<2x8x1xf32, #tpu.memory_space<vmem>>, vector<1x8x1xf32>
    %11 = vector.shape_cast %10 : vector<1x8x1xf32> to vector<8x1xf32>
    %12 = vector.broadcast %11 : vector<8x1xf32> to vector<8x512xf32>
    %13 = arith.addf %9, %12 : vector<8x512xf32>
    %c0_13 = arith.constant 0 : index
    %c0_14 = arith.constant 0 : index
    %c0_15 = arith.constant 0 : index
    %14 = vector.load %arg7[%c0_13, %c0_14, %c0_15] : memref<2x8x1xf32, #tpu.memory_space<vmem>>, vector<1x8x1xf32>
    %15 = vector.shape_cast %14 : vector<1x8x1xf32> to vector<8x1xf32>
    %c0_16 = arith.constant 0 : index
    %c0_17 = arith.constant 0 : index
    %c0_18 = arith.constant 0 : index
    %16 = vector.load %arg8[%c0_16, %c0_17, %c0_18] : memref<2x8x1xf32, #tpu.memory_space<vmem>>, vector<1x8x1xf32>
    %17 = vector.shape_cast %16 : vector<1x8x1xf32> to vector<8x1xf32>
    %cst_19 = arith.constant dense<0.000000e+00> : vector<8xf32>
    %18 = vector.multi_reduction <add>, %13, %cst_19 [1] : vector<8x512xf32> to vector<8xf32>
    %19 = vector.shape_cast %18 : vector<8xf32> to vector<8x1xf32>
    %cst_20 = arith.constant 5.120000e+02 : f32
    %20 = vector.broadcast %cst_20 : f32 to vector<8x1xf32>
    %21 = arith.divf %19, %20 : vector<8x1xf32>
    %22 = vector.broadcast %21 : vector<8x1xf32> to vector<8x512xf32>
    %23 = arith.subf %13, %22 : vector<8x512xf32>
    %24 = arith.mulf %23, %23 : vector<8x512xf32>
    %cst_21 = arith.constant dense<0.000000e+00> : vector<8xf32>
    %25 = vector.multi_reduction <add>, %24, %cst_21 [1] : vector<8x512xf32> to vector<8xf32>
    %26 = vector.shape_cast %25 : vector<8xf32> to vector<8x1xf32>
    %cst_22 = arith.constant 5.120000e+02 : f32
    %27 = vector.broadcast %cst_22 : f32 to vector<8x1xf32>
    %28 = arith.divf %26, %27 : vector<8x1xf32>
    %29 = vector.broadcast %21 : vector<8x1xf32> to vector<8x512xf32>
    %30 = arith.subf %13, %29 : vector<8x512xf32>
    %cst_23 = arith.constant 9.99999974E-6 : f32
    %31 = vector.broadcast %cst_23 : f32 to vector<8x1xf32>
    %32 = arith.addf %28, %31 : vector<8x1xf32>
    %33 = math.rsqrt %32 : vector<8x1xf32>
    %34 = vector.broadcast %33 : vector<8x1xf32> to vector<8x512xf32>
    %35 = arith.mulf %30, %34 : vector<8x512xf32>
    %36 = vector.broadcast %15 : vector<8x1xf32> to vector<8x512xf32>
    %37 = arith.mulf %35, %36 : vector<8x512xf32>
    %38 = vector.broadcast %17 : vector<8x1xf32> to vector<8x512xf32>
    %39 = arith.addf %37, %38 : vector<8x512xf32>
    %cst_24 = arith.constant 0.000000e+00 : f32
    %40 = vector.broadcast %cst_24 : f32 to vector<8x512xf32>
    %41 = arith.maximumf %39, %40 : vector<8x512xf32>
    %c73_i32 = arith.constant 73 : i32
    %42 = tpu.dynamic_rotate %41 by %c73_i32 dim 1 : vector<8x512xf32>, i32 -> vector<8x512xf32>
    %c0_25 = arith.constant 0 : index
    %c0_26 = arith.constant 0 : index
    %43 = vector.load %arg2[%c0_25, %c0_26] : memref<27x512xf32, #tpu.memory_space<vmem>>, vector<1x512xf32>
    %44 = vector.broadcast %43 : vector<1x512xf32> to vector<8x512xf32>
    %45 = arith.mulf %42, %44 : vector<8x512xf32>
    %c0_27 = arith.constant 0 : index
    %c0_28 = arith.constant 0 : index
    %46 = vector.load %arg18[%c0_27, %c0_28] : memref<216x512xf32, #tpu.memory_space<vmem>>, vector<8x512xf32>
    tpu.vector_store %arg18[%c0_27, %c0_28], %45 {strides = array<i32>} : memref<216x512xf32, #tpu.memory_space<vmem>>, vector<8x512xf32>,
    %c72_i32 = arith.constant 72 : i32
    %47 = tpu.dynamic_rotate %41 by %c72_i32 dim 1 : vector<8x512xf32>, i32 -> vector<8x512xf32>
    %c1 = arith.constant 1 : index
    %c0_29 = arith.constant 0 : index
    %48 = vector.load %arg2[%c1, %c0_29] : memref<27x512xf32, #tpu.memory_space<vmem>>, vector<1x512xf32>
    %49 = vector.broadcast %48 : vector<1x512xf32> to vector<8x512xf32>
    %50 = arith.mulf %47, %49 : vector<8x512xf32>
    %c8 = arith.constant 8 : index
    %c0_30 = arith.constant 0 : index
    %51 = vector.load %arg18[%c8, %c0_30] : memref<216x512xf32, #tpu.memory_space<vmem>>, vector<8x512xf32>
    tpu.vector_store %arg18[%c8, %c0_30], %50 {strides = array<i32>} : memref<216x512xf32, #tpu.memory_space<vmem>>, vector<8x512xf32>,
    %c71_i32 = arith.constant 71 : i32
    %52 = tpu.dynamic_rotate %41 by %c71_i32 dim 1 : vector<8x512xf32>, i32 -> vector<8x512xf32>
    %c2 = arith.constant 2 : index
    %c0_31 = arith.constant 0 : index
    %53 = vector.load %arg2[%c2, %c0_31] : memref<27x512xf32, #tpu.memory_space<vmem>>, vector<1x512xf32>
    %54 = vector.broadcast %53 : vector<1x512xf32> to vector<8x512xf32>
    %55 = arith.mulf %52, %54 : vector<8x512xf32>
    %c16 = arith.constant 16 : index
    %c0_32 = arith.constant 0 : index
    %56 = vector.load %arg18[%c16, %c0_32] : memref<216x512xf32, #tpu.memory_space<vmem>>, vector<8x512xf32>
    tpu.vector_store %arg18[%c16, %c0_32], %55 {strides = array<i32>} : memref<216x512xf32, #tpu.memory_space<vmem>>, vector<8x512xf32>,
    %c65_i32 = arith.constant 65 : i32
    %57 = tpu.dynamic_rotate %41 by %c65_i32 dim 1 : vector<8x512xf32>, i32 -> vector<8x512xf32>
    %c3 = arith.constant 3 : index
    %c0_33 = arith.constant 0 : index
    %58 = vector.load %arg2[%c3, %c0_33] : memref<27x512xf32, #tpu.memory_space<vmem>>, vector<1x512xf32>
    %59 = vector.broadcast %58 : vector<1x512xf32> to vector<8x512xf32>
    %60 = arith.mulf %57, %59 : vector<8x512xf32>
    %c24 = arith.constant 24 : index
    %c0_34 = arith.constant 0 : index
    %61 = vector.load %arg18[%c24, %c0_34] : memref<216x512xf32, #tpu.memory_space<vmem>>, vector<8x512xf32>
    tpu.vector_store %arg18[%c24, %c0_34], %60 {strides = array<i32>} : memref<216x512xf32, #tpu.memory_space<vmem>>, vector<8x512xf32>,
    %c64_i32 = arith.constant 64 : i32
    %62 = tpu.dynamic_rotate %41 by %c64_i32 dim 1 : vector<8x512xf32>, i32 -> vector<8x512xf32>
    %c4 = arith.constant 4 : index
    %c0_35 = arith.constant 0 : index
    %63 = vector.load %arg2[%c4, %c0_35] : memref<27x512xf32, #tpu.memory_space<vmem>>, vector<1x512xf32>
    %64 = vector.broadcast %63 : vector<1x512xf32> to vector<8x512xf32>
    %65 = arith.mulf %62, %64 : vector<8x512xf32>
    %c32 = arith.constant 32 : index
    %c0_36 = arith.constant 0 : index
    %66 = vector.load %arg18[%c32, %c0_36] : memref<216x512xf32, #tpu.memory_space<vmem>>, vector<8x512xf32>
    tpu.vector_store %arg18[%c32, %c0_36], %65 {strides = array<i32>} : memref<216x512xf32, #tpu.memory_space<vmem>>, vector<8x512xf32>,
    %c63_i32 = arith.constant 63 : i32
    %67 = tpu.dynamic_rotate %41 by %c63_i32 dim 1 : vector<8x512xf32>, i32 -> vector<8x512xf32>
    %c5 = arith.constant 5 : index
    %c0_37 = arith.constant 0 : index
    %68 = vector.load %arg2[%c5, %c0_37] : memref<27x512xf32, #tpu.memory_space<vmem>>, vector<1x512xf32>
    %69 = vector.broadcast %68 : vector<1x512xf32> to vector<8x512xf32>
    %70 = arith.mulf %67, %69 : vector<8x512xf32>
    %c40 = arith.constant 40 : index
    %c0_38 = arith.constant 0 : index
    %71 = vector.load %arg18[%c40, %c0_38] : memref<216x512xf32, #tpu.memory_space<vmem>>, vector<8x512xf32>
    tpu.vector_store %arg18[%c40, %c0_38], %70 {strides = array<i32>} : memref<216x512xf32, #tpu.memory_space<vmem>>, vector<8x512xf32>,
    %c57_i32 = arith.constant 57 : i32
    %72 = tpu.dynamic_rotate %41 by %c57_i32 dim 1 : vector<8x512xf32>, i32 -> vector<8x512xf32>
    %c6 = arith.constant 6 : index
    %c0_39 = arith.constant 0 : index
    %73 = vector.load %arg2[%c6, %c0_39] : memref<27x512xf32, #tpu.memory_space<vmem>>, vector<1x512xf32>
    %74 = vector.broadcast %73 : vector<1x512xf32> to vector<8x512xf32>
    %75 = arith.mulf %72, %74 : vector<8x512xf32>
    %c48 = arith.constant 48 : index
    %c0_40 = arith.constant 0 : index
    %76 = vector.load %arg18[%c48, %c0_40] : memref<216x512xf32, #tpu.memory_space<vmem>>, vector<8x512xf32>
    tpu.vector_store %arg18[%c48, %c0_40], %75 {strides = array<i32>} : memref<216x512xf32, #tpu.memory_space<vmem>>, vector<8x512xf32>,
    %c56_i32 = arith.constant 56 : i32
    %77 = tpu.dynamic_rotate %41 by %c56_i32 dim 1 : vector<8x512xf32>, i32 -> vector<8x512xf32>
    %c7 = arith.constant 7 : index
    %c0_41 = arith.constant 0 : index
    %78 = vector.load %arg2[%c7, %c0_41] : memref<27x512xf32, #tpu.memory_space<vmem>>, vector<1x512xf32>
    %79 = vector.broadcast %78 : vector<1x512xf32> to vector<8x512xf32>
    %80 = arith.mulf %77, %79 : vector<8x512xf32>
    %c56 = arith.constant 56 : index
    %c0_42 = arith.constant 0 : index
    %81 = vector.load %arg18[%c56, %c0_42] : memref<216x512xf32, #tpu.memory_space<vmem>>, vector<8x512xf32>
    tpu.vector_store %arg18[%c56, %c0_42], %80 {strides = array<i32>} : memref<216x512xf32, #tpu.memory_space<vmem>>, vector<8x512xf32>,
    %c55_i32 = arith.constant 55 : i32
    %82 = tpu.dynamic_rotate %41 by %c55_i32 dim 1 : vector<8x512xf32>, i32 -> vector<8x512xf32>
    %c8_43 = arith.constant 8 : index
    %c0_44 = arith.constant 0 : index
    %83 = vector.load %arg2[%c8_43, %c0_44] : memref<27x512xf32, #tpu.memory_space<vmem>>, vector<1x512xf32>
    %84 = vector.broadcast %83 : vector<1x512xf32> to vector<8x512xf32>
    %85 = arith.mulf %82, %84 : vector<8x512xf32>
    %c64 = arith.constant 64 : index
    %c0_45 = arith.constant 0 : index
    %86 = vector.load %arg18[%c64, %c0_45] : memref<216x512xf32, #tpu.memory_space<vmem>>, vector<8x512xf32>
    tpu.vector_store %arg18[%c64, %c0_45], %85 {strides = array<i32>} : memref<216x512xf32, #tpu.memory_space<vmem>>, vector<8x512xf32>,
    %c9_i32 = arith.constant 9 : i32
    %87 = tpu.dynamic_rotate %41 by %c9_i32 dim 1 : vector<8x512xf32>, i32 -> vector<8x512xf32>
    %c9 = arith.constant 9 : index
    %c0_46 = arith.constant 0 : index
    %88 = vector.load %arg2[%c9, %c0_46] : memref<27x512xf32, #tpu.memory_space<vmem>>, vector<1x512xf32>
    %89 = vector.broadcast %88 : vector<1x512xf32> to vector<8x512xf32>
    %90 = arith.mulf %87, %89 : vector<8x512xf32>
    %c72 = arith.constant 72 : index
    %c0_47 = arith.constant 0 : index
    %91 = vector.load %arg18[%c72, %c0_47] : memref<216x512xf32, #tpu.memory_space<vmem>>, vector<8x512xf32>
    tpu.vector_store %arg18[%c72, %c0_47], %90 {strides = array<i32>} : memref<216x512xf32, #tpu.memory_space<vmem>>, vector<8x512xf32>,
    %c8_i32 = arith.constant 8 : i32
    %92 = tpu.dynamic_rotate %41 by %c8_i32 dim 1 : vector<8x512xf32>, i32 -> vector<8x512xf32>
    %c10 = arith.constant 10 : index
    %c0_48 = arith.constant 0 : index
    %93 = vector.load %arg2[%c10, %c0_48] : memref<27x512xf32, #tpu.memory_space<vmem>>, vector<1x512xf32>
    %94 = vector.broadcast %93 : vector<1x512xf32> to vector<8x512xf32>
    %95 = arith.mulf %92, %94 : vector<8x512xf32>
    %c80 = arith.constant 80 : index
    %c0_49 = arith.constant 0 : index
    %96 = vector.load %arg18[%c80, %c0_49] : memref<216x512xf32, #tpu.memory_space<vmem>>, vector<8x512xf32>
    tpu.vector_store %arg18[%c80, %c0_49], %95 {strides = array<i32>} : memref<216x512xf32, #tpu.memory_space<vmem>>, vector<8x512xf32>,
    %c7_i32 = arith.constant 7 : i32
    %97 = tpu.dynamic_rotate %41 by %c7_i32 dim 1 : vector<8x512xf32>, i32 -> vector<8x512xf32>
    %c11 = arith.constant 11 : index
    %c0_50 = arith.constant 0 : index
    %98 = vector.load %arg2[%c11, %c0_50] : memref<27x512xf32, #tpu.memory_space<vmem>>, vector<1x512xf32>
    %99 = vector.broadcast %98 : vector<1x512xf32> to vector<8x512xf32>
    %100 = arith.mulf %97, %99 : vector<8x512xf32>
    %c88 = arith.constant 88 : index
    %c0_51 = arith.constant 0 : index
    %101 = vector.load %arg18[%c88, %c0_51] : memref<216x512xf32, #tpu.memory_space<vmem>>, vector<8x512xf32>
    tpu.vector_store %arg18[%c88, %c0_51], %100 {strides = array<i32>} : memref<216x512xf32, #tpu.memory_space<vmem>>, vector<8x512xf32>,
    %c1_i32 = arith.constant 1 : i32
    %102 = tpu.dynamic_rotate %41 by %c1_i32 dim 1 : vector<8x512xf32>, i32 -> vector<8x512xf32>
    %c12 = arith.constant 12 : index
    %c0_52 = arith.constant 0 : index
    %103 = vector.load %arg2[%c12, %c0_52] : memref<27x512xf32, #tpu.memory_space<vmem>>, vector<1x512xf32>
    %104 = vector.broadcast %103 : vector<1x512xf32> to vector<8x512xf32>
    %105 = arith.mulf %102, %104 : vector<8x512xf32>
    %c96 = arith.constant 96 : index
    %c0_53 = arith.constant 0 : index
    %106 = vector.load %arg18[%c96, %c0_53] : memref<216x512xf32, #tpu.memory_space<vmem>>, vector<8x512xf32>
    tpu.vector_store %arg18[%c96, %c0_53], %105 {strides = array<i32>} : memref<216x512xf32, #tpu.memory_space<vmem>>, vector<8x512xf32>,
    %c104 = arith.constant 104 : index
    %c0_54 = arith.constant 0 : index
    %107 = vector.load %arg18[%c104, %c0_54] : memref<216x512xf32, #tpu.memory_space<vmem>>, vector<8x512xf32>
    tpu.vector_store %arg18[%c104, %c0_54], %41 {strides = array<i32>} : memref<216x512xf32, #tpu.memory_space<vmem>>, vector<8x512xf32>,
    %c511_i32 = arith.constant 511 : i32
    %108 = tpu.dynamic_rotate %41 by %c511_i32 dim 1 : vector<8x512xf32>, i32 -> vector<8x512xf32>
    %c14 = arith.constant 14 : index
    %c0_55 = arith.constant 0 : index
    %109 = vector.load %arg2[%c14, %c0_55] : memref<27x512xf32, #tpu.memory_space<vmem>>, vector<1x512xf32>
    %110 = vector.broadcast %109 : vector<1x512xf32> to vector<8x512xf32>
    %111 = arith.mulf %108, %110 : vector<8x512xf32>
    %c112 = arith.constant 112 : index
    %c0_56 = arith.constant 0 : index
    %112 = vector.load %arg18[%c112, %c0_56] : memref<216x512xf32, #tpu.memory_space<vmem>>, vector<8x512xf32>
    tpu.vector_store %arg18[%c112, %c0_56], %111 {strides = array<i32>} : memref<216x512xf32, #tpu.memory_space<vmem>>, vector<8x512xf32>,
    %c505_i32 = arith.constant 505 : i32
    %113 = tpu.dynamic_rotate %41 by %c505_i32 dim 1 : vector<8x512xf32>, i32 -> vector<8x512xf32>
    %c15 = arith.constant 15 : index
    %c0_57 = arith.constant 0 : index
    %114 = vector.load %arg2[%c15, %c0_57] : memref<27x512xf32, #tpu.memory_space<vmem>>, vector<1x512xf32>
    %115 = vector.broadcast %114 : vector<1x512xf32> to vector<8x512xf32>
    %116 = arith.mulf %113, %115 : vector<8x512xf32>
    %c120 = arith.constant 120 : index
    %c0_58 = arith.constant 0 : index
    %117 = vector.load %arg18[%c120, %c0_58] : memref<216x512xf32, #tpu.memory_space<vmem>>, vector<8x512xf32>
    tpu.vector_store %arg18[%c120, %c0_58], %116 {strides = array<i32>} : memref<216x512xf32, #tpu.memory_space<vmem>>, vector<8x512xf32>,
    %c504_i32 = arith.constant 504 : i32
    %118 = tpu.dynamic_rotate %41 by %c504_i32 dim 1 : vector<8x512xf32>, i32 -> vector<8x512xf32>
    %c16_59 = arith.constant 16 : index
    %c0_60 = arith.constant 0 : index
    %119 = vector.load %arg2[%c16_59, %c0_60] : memref<27x512xf32, #tpu.memory_space<vmem>>, vector<1x512xf32>
    %120 = vector.broadcast %119 : vector<1x512xf32> to vector<8x512xf32>
    %121 = arith.mulf %118, %120 : vector<8x512xf32>
    %c128 = arith.constant 128 : index
    %c0_61 = arith.constant 0 : index
    %122 = vector.load %arg18[%c128, %c0_61] : memref<216x512xf32, #tpu.memory_space<vmem>>, vector<8x512xf32>
    tpu.vector_store %arg18[%c128, %c0_61], %121 {strides = array<i32>} : memref<216x512xf32, #tpu.memory_space<vmem>>, vector<8x512xf32>,
    %c503_i32 = arith.constant 503 : i32
    %123 = tpu.dynamic_rotate %41 by %c503_i32 dim 1 : vector<8x512xf32>, i32 -> vector<8x512xf32>
    %c17 = arith.constant 17 : index
    %c0_62 = arith.constant 0 : index
    %124 = vector.load %arg2[%c17, %c0_62] : memref<27x512xf32, #tpu.memory_space<vmem>>, vector<1x512xf32>
    %125 = vector.broadcast %124 : vector<1x512xf32> to vector<8x512xf32>
    %126 = arith.mulf %123, %125 : vector<8x512xf32>
    %c136 = arith.constant 136 : index
    %c0_63 = arith.constant 0 : index
    %127 = vector.load %arg18[%c136, %c0_63] : memref<216x512xf32, #tpu.memory_space<vmem>>, vector<8x512xf32>
    tpu.vector_store %arg18[%c136, %c0_63], %126 {strides = array<i32>} : memref<216x512xf32, #tpu.memory_space<vmem>>, vector<8x512xf32>,
    %c457_i32 = arith.constant 457 : i32
    %128 = tpu.dynamic_rotate %41 by %c457_i32 dim 1 : vector<8x512xf32>, i32 -> vector<8x512xf32>
    %c18 = arith.constant 18 : index
    %c0_64 = arith.constant 0 : index
    %129 = vector.load %arg2[%c18, %c0_64] : memref<27x512xf32, #tpu.memory_space<vmem>>, vector<1x512xf32>
    %130 = vector.broadcast %129 : vector<1x512xf32> to vector<8x512xf32>
    %131 = arith.mulf %128, %130 : vector<8x512xf32>
    %c144 = arith.constant 144 : index
    %c0_65 = arith.constant 0 : index
    %132 = vector.load %arg18[%c144, %c0_65] : memref<216x512xf32, #tpu.memory_space<vmem>>, vector<8x512xf32>
    tpu.vector_store %arg18[%c144, %c0_65], %131 {strides = array<i32>} : memref<216x512xf32, #tpu.memory_space<vmem>>, vector<8x512xf32>,
    %c456_i32 = arith.constant 456 : i32
    %133 = tpu.dynamic_rotate %41 by %c456_i32 dim 1 : vector<8x512xf32>, i32 -> vector<8x512xf32>
    %c19 = arith.constant 19 : index
    %c0_66 = arith.constant 0 : index
    %134 = vector.load %arg2[%c19, %c0_66] : memref<27x512xf32, #tpu.memory_space<vmem>>, vector<1x512xf32>
    %135 = vector.broadcast %134 : vector<1x512xf32> to vector<8x512xf32>
    %136 = arith.mulf %133, %135 : vector<8x512xf32>
    %c152 = arith.constant 152 : index
    %c0_67 = arith.constant 0 : index
    %137 = vector.load %arg18[%c152, %c0_67] : memref<216x512xf32, #tpu.memory_space<vmem>>, vector<8x512xf32>
    tpu.vector_store %arg18[%c152, %c0_67], %136 {strides = array<i32>} : memref<216x512xf32, #tpu.memory_space<vmem>>, vector<8x512xf32>,
    %c455_i32 = arith.constant 455 : i32
    %138 = tpu.dynamic_rotate %41 by %c455_i32 dim 1 : vector<8x512xf32>, i32 -> vector<8x512xf32>
    %c20 = arith.constant 20 : index
    %c0_68 = arith.constant 0 : index
    %139 = vector.load %arg2[%c20, %c0_68] : memref<27x512xf32, #tpu.memory_space<vmem>>, vector<1x512xf32>
    %140 = vector.broadcast %139 : vector<1x512xf32> to vector<8x512xf32>
    %141 = arith.mulf %138, %140 : vector<8x512xf32>
    %c160 = arith.constant 160 : index
    %c0_69 = arith.constant 0 : index
    %142 = vector.load %arg18[%c160, %c0_69] : memref<216x512xf32, #tpu.memory_space<vmem>>, vector<8x512xf32>
    tpu.vector_store %arg18[%c160, %c0_69], %141 {strides = array<i32>} : memref<216x512xf32, #tpu.memory_space<vmem>>, vector<8x512xf32>,
    %c449_i32 = arith.constant 449 : i32
    %143 = tpu.dynamic_rotate %41 by %c449_i32 dim 1 : vector<8x512xf32>, i32 -> vector<8x512xf32>
    %c21 = arith.constant 21 : index
    %c0_70 = arith.constant 0 : index
    %144 = vector.load %arg2[%c21, %c0_70] : memref<27x512xf32, #tpu.memory_space<vmem>>, vector<1x512xf32>
    %145 = vector.broadcast %144 : vector<1x512xf32> to vector<8x512xf32>
    %146 = arith.mulf %143, %145 : vector<8x512xf32>
    %c168 = arith.constant 168 : index
    %c0_71 = arith.constant 0 : index
    %147 = vector.load %arg18[%c168, %c0_71] : memref<216x512xf32, #tpu.memory_space<vmem>>, vector<8x512xf32>
    tpu.vector_store %arg18[%c168, %c0_71], %146 {strides = array<i32>} : memref<216x512xf32, #tpu.memory_space<vmem>>, vector<8x512xf32>,
    %c448_i32 = arith.constant 448 : i32
    %148 = tpu.dynamic_rotate %41 by %c448_i32 dim 1 : vector<8x512xf32>, i32 -> vector<8x512xf32>
    %c22 = arith.constant 22 : index
    %c0_72 = arith.constant 0 : index
    %149 = vector.load %arg2[%c22, %c0_72] : memref<27x512xf32, #tpu.memory_space<vmem>>, vector<1x512xf32>
    %150 = vector.broadcast %149 : vector<1x512xf32> to vector<8x512xf32>
    %151 = arith.mulf %148, %150 : vector<8x512xf32>
    %c176 = arith.constant 176 : index
    %c0_73 = arith.constant 0 : index
    %152 = vector.load %arg18[%c176, %c0_73] : memref<216x512xf32, #tpu.memory_space<vmem>>, vector<8x512xf32>
    tpu.vector_store %arg18[%c176, %c0_73], %151 {strides = array<i32>} : memref<216x512xf32, #tpu.memory_space<vmem>>, vector<8x512xf32>,
    %c447_i32 = arith.constant 447 : i32
    %153 = tpu.dynamic_rotate %41 by %c447_i32 dim 1 : vector<8x512xf32>, i32 -> vector<8x512xf32>
    %c23 = arith.constant 23 : index
    %c0_74 = arith.constant 0 : index
    %154 = vector.load %arg2[%c23, %c0_74] : memref<27x512xf32, #tpu.memory_space<vmem>>, vector<1x512xf32>
    %155 = vector.broadcast %154 : vector<1x512xf32> to vector<8x512xf32>
    %156 = arith.mulf %153, %155 : vector<8x512xf32>
    %c184 = arith.constant 184 : index
    %c0_75 = arith.constant 0 : index
    %157 = vector.load %arg18[%c184, %c0_75] : memref<216x512xf32, #tpu.memory_space<vmem>>, vector<8x512xf32>
    tpu.vector_store %arg18[%c184, %c0_75], %156 {strides = array<i32>} : memref<216x512xf32, #tpu.memory_space<vmem>>, vector<8x512xf32>,
    %c441_i32 = arith.constant 441 : i32
    %158 = tpu.dynamic_rotate %41 by %c441_i32 dim 1 : vector<8x512xf32>, i32 -> vector<8x512xf32>
    %c24_76 = arith.constant 24 : index
    %c0_77 = arith.constant 0 : index
    %159 = vector.load %arg2[%c24_76, %c0_77] : memref<27x512xf32, #tpu.memory_space<vmem>>, vector<1x512xf32>
    %160 = vector.broadcast %159 : vector<1x512xf32> to vector<8x512xf32>
    %161 = arith.mulf %158, %160 : vector<8x512xf32>
    %c192 = arith.constant 192 : index
    %c0_78 = arith.constant 0 : index
    %162 = vector.load %arg18[%c192, %c0_78] : memref<216x512xf32, #tpu.memory_space<vmem>>, vector<8x512xf32>
    tpu.vector_store %arg18[%c192, %c0_78], %161 {strides = array<i32>} : memref<216x512xf32, #tpu.memory_space<vmem>>, vector<8x512xf32>,
    %c440_i32 = arith.constant 440 : i32
    %163 = tpu.dynamic_rotate %41 by %c440_i32 dim 1 : vector<8x512xf32>, i32 -> vector<8x512xf32>
    %c25 = arith.constant 25 : index
    %c0_79 = arith.constant 0 : index
    %164 = vector.load %arg2[%c25, %c0_79] : memref<27x512xf32, #tpu.memory_space<vmem>>, vector<1x512xf32>
    %165 = vector.broadcast %164 : vector<1x512xf32> to vector<8x512xf32>
    %166 = arith.mulf %163, %165 : vector<8x512xf32>
    %c200 = arith.constant 200 : index
    %c0_80 = arith.constant 0 : index
    %167 = vector.load %arg18[%c200, %c0_80] : memref<216x512xf32, #tpu.memory_space<vmem>>, vector<8x512xf32>
    tpu.vector_store %arg18[%c200, %c0_80], %166 {strides = array<i32>} : memref<216x512xf32, #tpu.memory_space<vmem>>, vector<8x512xf32>,
    %c439_i32 = arith.constant 439 : i32
    %168 = tpu.dynamic_rotate %41 by %c439_i32 dim 1 : vector<8x512xf32>, i32 -> vector<8x512xf32>
    %c26 = arith.constant 26 : index
    %c0_81 = arith.constant 0 : index
    %169 = vector.load %arg2[%c26, %c0_81] : memref<27x512xf32, #tpu.memory_space<vmem>>, vector<1x512xf32>
    %170 = vector.broadcast %169 : vector<1x512xf32> to vector<8x512xf32>
    %171 = arith.mulf %168, %170 : vector<8x512xf32>
    %c208 = arith.constant 208 : index
    %c0_82 = arith.constant 0 : index
    %172 = vector.load %arg18[%c208, %c0_82] : memref<216x512xf32, #tpu.memory_space<vmem>>, vector<8x512xf32>
    tpu.vector_store %arg18[%c208, %c0_82], %171 {strides = array<i32>} : memref<216x512xf32, #tpu.memory_space<vmem>>, vector<8x512xf32>,
    %c0_83 = arith.constant 0 : index
    %c0_84 = arith.constant 0 : index
    %c0_85 = arith.constant 0 : index
    %173 = vector.load %arg9[%c0_83, %c0_84, %c0_85] : memref<2x8x216xf32, #tpu.memory_space<vmem>>, vector<1x8x216xf32>
    %174 = vector.shape_cast %173 : vector<1x8x216xf32> to vector<8x216xf32>
    %c0_86 = arith.constant 0 : index
    %c0_87 = arith.constant 0 : index
    %175 = vector.load %arg18[%c0_86, %c0_87] : memref<216x512xf32, #tpu.memory_space<vmem>>, vector<216x512xf32>
    %cst_88 = arith.constant dense<0.000000e+00> : vector<8x512xf32>
    %176 = tpu.matmul %174, %175, %cst_88 {dimension_numbers = #tpu.dot_dimension_numbers<[1], [0], [0], [1], [0, 0, 1, 1], [], []>} : vector<8x216xf32>, vector<216x512xf32>, vector<8x512xf32> -> vector<8x512xf32>
    %c0_89 = arith.constant 0 : index
    %c0_90 = arith.constant 0 : index
    %c0_91 = arith.constant 0 : index
    %177 = vector.load %arg10[%c0_89, %c0_90, %c0_91] : memref<2x8x1xf32, #tpu.memory_space<vmem>>, vector<1x8x1xf32>
    %178 = vector.shape_cast %177 : vector<1x8x1xf32> to vector<8x1xf32>
    %179 = vector.broadcast %178 : vector<8x1xf32> to vector<8x512xf32>
    %180 = arith.addf %176, %179 : vector<8x512xf32>
    %c0_92 = arith.constant 0 : index
    %c0_93 = arith.constant 0 : index
    %c0_94 = arith.constant 0 : index
    %181 = vector.load %arg11[%c0_92, %c0_93, %c0_94] : memref<2x8x1xf32, #tpu.memory_space<vmem>>, vector<1x8x1xf32>
    %182 = vector.shape_cast %181 : vector<1x8x1xf32> to vector<8x1xf32>
    %c0_95 = arith.constant 0 : index
    %c0_96 = arith.constant 0 : index
    %c0_97 = arith.constant 0 : index
    %183 = vector.load %arg12[%c0_95, %c0_96, %c0_97] : memref<2x8x1xf32, #tpu.memory_space<vmem>>, vector<1x8x1xf32>
    %184 = vector.shape_cast %183 : vector<1x8x1xf32> to vector<8x1xf32>
    %cst_98 = arith.constant dense<0.000000e+00> : vector<8xf32>
    %185 = vector.multi_reduction <add>, %180, %cst_98 [1] : vector<8x512xf32> to vector<8xf32>
    %186 = vector.shape_cast %185 : vector<8xf32> to vector<8x1xf32>
    %cst_99 = arith.constant 5.120000e+02 : f32
    %187 = vector.broadcast %cst_99 : f32 to vector<8x1xf32>
    %188 = arith.divf %186, %187 : vector<8x1xf32>
    %189 = vector.broadcast %188 : vector<8x1xf32> to vector<8x512xf32>
    %190 = arith.subf %180, %189 : vector<8x512xf32>
    %191 = arith.mulf %190, %190 : vector<8x512xf32>
    %cst_100 = arith.constant dense<0.000000e+00> : vector<8xf32>
    %192 = vector.multi_reduction <add>, %191, %cst_100 [1] : vector<8x512xf32> to vector<8xf32>
    %193 = vector.shape_cast %192 : vector<8xf32> to vector<8x1xf32>
    %cst_101 = arith.constant 5.120000e+02 : f32
    %194 = vector.broadcast %cst_101 : f32 to vector<8x1xf32>
    %195 = arith.divf %193, %194 : vector<8x1xf32>
    %196 = vector.broadcast %188 : vector<8x1xf32> to vector<8x512xf32>
    %197 = arith.subf %180, %196 : vector<8x512xf32>
    %cst_102 = arith.constant 9.99999974E-6 : f32
    %198 = vector.broadcast %cst_102 : f32 to vector<8x1xf32>
    %199 = arith.addf %195, %198 : vector<8x1xf32>
    %200 = math.rsqrt %199 : vector<8x1xf32>
    %201 = vector.broadcast %200 : vector<8x1xf32> to vector<8x512xf32>
    %202 = arith.mulf %197, %201 : vector<8x512xf32>
    %203 = vector.broadcast %182 : vector<8x1xf32> to vector<8x512xf32>
    %204 = arith.mulf %202, %203 : vector<8x512xf32>
    %205 = vector.broadcast %184 : vector<8x1xf32> to vector<8x512xf32>
    %206 = arith.addf %204, %205 : vector<8x512xf32>
    %cst_103 = arith.constant 0.000000e+00 : f32
    %207 = vector.broadcast %cst_103 : f32 to vector<8x512xf32>
    %208 = arith.maximumf %206, %207 : vector<8x512xf32>
    %c0_104 = arith.constant 0 : index
    %c0_105 = arith.constant 0 : index
    %c0_106 = arith.constant 0 : index
    %209 = vector.load %arg13[%c0_104, %c0_105, %c0_106] : memref<2x16x8xf32, #tpu.memory_space<vmem>>, vector<1x16x8xf32>
    %210 = vector.shape_cast %209 : vector<1x16x8xf32> to vector<16x8xf32>
    %cst_107 = arith.constant dense<0.000000e+00> : vector<16x512xf32>
    %211 = tpu.matmul %210, %208, %cst_107 {dimension_numbers = #tpu.dot_dimension_numbers<[1], [0], [0], [1], [0, 0, 1, 1], [], []>} : vector<16x8xf32>, vector<8x512xf32>, vector<16x512xf32> -> vector<16x512xf32>
    %c0_108 = arith.constant 0 : index
    %c0_109 = arith.constant 0 : index
    %c0_110 = arith.constant 0 : index
    %212 = vector.load %arg14[%c0_108, %c0_109, %c0_110] : memref<2x16x1xf32, #tpu.memory_space<vmem>>, vector<1x16x1xf32>
    %213 = vector.shape_cast %212 : vector<1x16x1xf32> to vector<16x1xf32>
    %214 = vector.broadcast %213 : vector<16x1xf32> to vector<16x512xf32>
    %215 = arith.addf %211, %214 : vector<16x512xf32>
    %c0_111 = arith.constant 0 : index
    %c0_112 = arith.constant 0 : index
    %c0_113 = arith.constant 0 : index
    %216 = vector.load %arg15[%c0_111, %c0_112, %c0_113] : memref<2x16x1xf32, #tpu.memory_space<vmem>>, vector<1x16x1xf32>
    %217 = vector.shape_cast %216 : vector<1x16x1xf32> to vector<16x1xf32>
    %c0_114 = arith.constant 0 : index
    %c0_115 = arith.constant 0 : index
    %c0_116 = arith.constant 0 : index
    %218 = vector.load %arg16[%c0_114, %c0_115, %c0_116] : memref<2x16x1xf32, #tpu.memory_space<vmem>>, vector<1x16x1xf32>
    %219 = vector.shape_cast %218 : vector<1x16x1xf32> to vector<16x1xf32>
    %cst_117 = arith.constant dense<0.000000e+00> : vector<16xf32>
    %220 = vector.multi_reduction <add>, %215, %cst_117 [1] : vector<16x512xf32> to vector<16xf32>
    %221 = vector.shape_cast %220 : vector<16xf32> to vector<16x1xf32>
    %cst_118 = arith.constant 5.120000e+02 : f32
    %222 = vector.broadcast %cst_118 : f32 to vector<16x1xf32>
    %223 = arith.divf %221, %222 : vector<16x1xf32>
    %224 = vector.broadcast %223 : vector<16x1xf32> to vector<16x512xf32>
    %225 = arith.subf %215, %224 : vector<16x512xf32>
    %226 = arith.mulf %225, %225 : vector<16x512xf32>
    %cst_119 = arith.constant dense<0.000000e+00> : vector<16xf32>
    %227 = vector.multi_reduction <add>, %226, %cst_119 [1] : vector<16x512xf32> to vector<16xf32>
    %228 = vector.shape_cast %227 : vector<16xf32> to vector<16x1xf32>
    %cst_120 = arith.constant 5.120000e+02 : f32
    %229 = vector.broadcast %cst_120 : f32 to vector<16x1xf32>
    %230 = arith.divf %228, %229 : vector<16x1xf32>
    %231 = vector.broadcast %223 : vector<16x1xf32> to vector<16x512xf32>
    %232 = arith.subf %215, %231 : vector<16x512xf32>
    %cst_121 = arith.constant 9.99999974E-6 : f32
    %233 = vector.broadcast %cst_121 : f32 to vector<16x1xf32>
    %234 = arith.addf %230, %233 : vector<16x1xf32>
    %235 = math.rsqrt %234 : vector<16x1xf32>
    %236 = vector.broadcast %235 : vector<16x1xf32> to vector<16x512xf32>
    %237 = arith.mulf %232, %236 : vector<16x512xf32>
    %238 = vector.broadcast %217 : vector<16x1xf32> to vector<16x512xf32>
    %239 = arith.mulf %237, %238 : vector<16x512xf32>
    %240 = vector.broadcast %219 : vector<16x1xf32> to vector<16x512xf32>
    %241 = arith.addf %239, %240 : vector<16x512xf32>
    %242 = arith.addf %6, %241 : vector<16x512xf32>
    %cst_122 = arith.constant 0.000000e+00 : f32
    %243 = vector.broadcast %cst_122 : f32 to vector<16x512xf32>
    %244 = arith.maximumf %242, %243 : vector<16x512xf32>
    %c1_123 = arith.constant 1 : index
    %c0_124 = arith.constant 0 : index
    %c0_125 = arith.constant 0 : index
    %245 = vector.load %arg5[%c1_123, %c0_124, %c0_125] : memref<2x8x16xf32, #tpu.memory_space<vmem>>, vector<1x8x16xf32>
    %246 = vector.shape_cast %245 : vector<1x8x16xf32> to vector<8x16xf32>
    %cst_126 = arith.constant dense<0.000000e+00> : vector<8x512xf32>
    %247 = tpu.matmul %246, %244, %cst_126 {dimension_numbers = #tpu.dot_dimension_numbers<[1], [0], [0], [1], [0, 0, 1, 1], [], []>} : vector<8x16xf32>, vector<16x512xf32>, vector<8x512xf32> -> vector<8x512xf32>
    %c1_127 = arith.constant 1 : index
    %c0_128 = arith.constant 0 : index
    %c0_129 = arith.constant 0 : index
    %248 = vector.load %arg6[%c1_127, %c0_128, %c0_129] : memref<2x8x1xf32, #tpu.memory_space<vmem>>, vector<1x8x1xf32>
    %249 = vector.shape_cast %248 : vector<1x8x1xf32> to vector<8x1xf32>
    %250 = vector.broadcast %249 : vector<8x1xf32> to vector<8x512xf32>
    %251 = arith.addf %247, %250 : vector<8x512xf32>
    %c1_130 = arith.constant 1 : index
    %c0_131 = arith.constant 0 : index
    %c0_132 = arith.constant 0 : index
    %252 = vector.load %arg7[%c1_130, %c0_131, %c0_132] : memref<2x8x1xf32, #tpu.memory_space<vmem>>, vector<1x8x1xf32>
    %253 = vector.shape_cast %252 : vector<1x8x1xf32> to vector<8x1xf32>
    %c1_133 = arith.constant 1 : index
    %c0_134 = arith.constant 0 : index
    %c0_135 = arith.constant 0 : index
    %254 = vector.load %arg8[%c1_133, %c0_134, %c0_135] : memref<2x8x1xf32, #tpu.memory_space<vmem>>, vector<1x8x1xf32>
    %255 = vector.shape_cast %254 : vector<1x8x1xf32> to vector<8x1xf32>
    %cst_136 = arith.constant dense<0.000000e+00> : vector<8xf32>
    %256 = vector.multi_reduction <add>, %251, %cst_136 [1] : vector<8x512xf32> to vector<8xf32>
    %257 = vector.shape_cast %256 : vector<8xf32> to vector<8x1xf32>
    %cst_137 = arith.constant 5.120000e+02 : f32
    %258 = vector.broadcast %cst_137 : f32 to vector<8x1xf32>
    %259 = arith.divf %257, %258 : vector<8x1xf32>
    %260 = vector.broadcast %259 : vector<8x1xf32> to vector<8x512xf32>
    %261 = arith.subf %251, %260 : vector<8x512xf32>
    %262 = arith.mulf %261, %261 : vector<8x512xf32>
    %cst_138 = arith.constant dense<0.000000e+00> : vector<8xf32>
    %263 = vector.multi_reduction <add>, %262, %cst_138 [1] : vector<8x512xf32> to vector<8xf32>
    %264 = vector.shape_cast %263 : vector<8xf32> to vector<8x1xf32>
    %cst_139 = arith.constant 5.120000e+02 : f32
    %265 = vector.broadcast %cst_139 : f32 to vector<8x1xf32>
    %266 = arith.divf %264, %265 : vector<8x1xf32>
    %267 = vector.broadcast %259 : vector<8x1xf32> to vector<8x512xf32>
    %268 = arith.subf %251, %267 : vector<8x512xf32>
    %cst_140 = arith.constant 9.99999974E-6 : f32
    %269 = vector.broadcast %cst_140 : f32 to vector<8x1xf32>
    %270 = arith.addf %266, %269 : vector<8x1xf32>
    %271 = math.rsqrt %270 : vector<8x1xf32>
    %272 = vector.broadcast %271 : vector<8x1xf32> to vector<8x512xf32>
    %273 = arith.mulf %268, %272 : vector<8x512xf32>
    %274 = vector.broadcast %253 : vector<8x1xf32> to vector<8x512xf32>
    %275 = arith.mulf %273, %274 : vector<8x512xf32>
    %276 = vector.broadcast %255 : vector<8x1xf32> to vector<8x512xf32>
    %277 = arith.addf %275, %276 : vector<8x512xf32>
    %cst_141 = arith.constant 0.000000e+00 : f32
    %278 = vector.broadcast %cst_141 : f32 to vector<8x512xf32>
    %279 = arith.maximumf %277, %278 : vector<8x512xf32>
    %c73_i32_142 = arith.constant 73 : i32
    %280 = tpu.dynamic_rotate %279 by %c73_i32_142 dim 1 : vector<8x512xf32>, i32 -> vector<8x512xf32>
    %c0_143 = arith.constant 0 : index
    %c0_144 = arith.constant 0 : index
    %281 = vector.load %arg2[%c0_143, %c0_144] : memref<27x512xf32, #tpu.memory_space<vmem>>, vector<1x512xf32>
    %282 = vector.broadcast %281 : vector<1x512xf32> to vector<8x512xf32>
    %283 = arith.mulf %280, %282 : vector<8x512xf32>
    %c0_145 = arith.constant 0 : index
    %c0_146 = arith.constant 0 : index
    %284 = vector.load %arg18[%c0_145, %c0_146] : memref<216x512xf32, #tpu.memory_space<vmem>>, vector<8x512xf32>
    tpu.vector_store %arg18[%c0_145, %c0_146], %283 {strides = array<i32>} : memref<216x512xf32, #tpu.memory_space<vmem>>, vector<8x512xf32>,
    %c72_i32_147 = arith.constant 72 : i32
    %285 = tpu.dynamic_rotate %279 by %c72_i32_147 dim 1 : vector<8x512xf32>, i32 -> vector<8x512xf32>
    %c1_148 = arith.constant 1 : index
    %c0_149 = arith.constant 0 : index
    %286 = vector.load %arg2[%c1_148, %c0_149] : memref<27x512xf32, #tpu.memory_space<vmem>>, vector<1x512xf32>
    %287 = vector.broadcast %286 : vector<1x512xf32> to vector<8x512xf32>
    %288 = arith.mulf %285, %287 : vector<8x512xf32>
    %c8_150 = arith.constant 8 : index
    %c0_151 = arith.constant 0 : index
    %289 = vector.load %arg18[%c8_150, %c0_151] : memref<216x512xf32, #tpu.memory_space<vmem>>, vector<8x512xf32>
    tpu.vector_store %arg18[%c8_150, %c0_151], %288 {strides = array<i32>} : memref<216x512xf32, #tpu.memory_space<vmem>>, vector<8x512xf32>,
    %c71_i32_152 = arith.constant 71 : i32
    %290 = tpu.dynamic_rotate %279 by %c71_i32_152 dim 1 : vector<8x512xf32>, i32 -> vector<8x512xf32>
    %c2_153 = arith.constant 2 : index
    %c0_154 = arith.constant 0 : index
    %291 = vector.load %arg2[%c2_153, %c0_154] : memref<27x512xf32, #tpu.memory_space<vmem>>, vector<1x512xf32>
    %292 = vector.broadcast %291 : vector<1x512xf32> to vector<8x512xf32>
    %293 = arith.mulf %290, %292 : vector<8x512xf32>
    %c16_155 = arith.constant 16 : index
    %c0_156 = arith.constant 0 : index
    %294 = vector.load %arg18[%c16_155, %c0_156] : memref<216x512xf32, #tpu.memory_space<vmem>>, vector<8x512xf32>
    tpu.vector_store %arg18[%c16_155, %c0_156], %293 {strides = array<i32>} : memref<216x512xf32, #tpu.memory_space<vmem>>, vector<8x512xf32>,
    %c65_i32_157 = arith.constant 65 : i32
    %295 = tpu.dynamic_rotate %279 by %c65_i32_157 dim 1 : vector<8x512xf32>, i32 -> vector<8x512xf32>
    %c3_158 = arith.constant 3 : index
    %c0_159 = arith.constant 0 : index
    %296 = vector.load %arg2[%c3_158, %c0_159] : memref<27x512xf32, #tpu.memory_space<vmem>>, vector<1x512xf32>
    %297 = vector.broadcast %296 : vector<1x512xf32> to vector<8x512xf32>
    %298 = arith.mulf %295, %297 : vector<8x512xf32>
    %c24_160 = arith.constant 24 : index
    %c0_161 = arith.constant 0 : index
    %299 = vector.load %arg18[%c24_160, %c0_161] : memref<216x512xf32, #tpu.memory_space<vmem>>, vector<8x512xf32>
    tpu.vector_store %arg18[%c24_160, %c0_161], %298 {strides = array<i32>} : memref<216x512xf32, #tpu.memory_space<vmem>>, vector<8x512xf32>,
    %c64_i32_162 = arith.constant 64 : i32
    %300 = tpu.dynamic_rotate %279 by %c64_i32_162 dim 1 : vector<8x512xf32>, i32 -> vector<8x512xf32>
    %c4_163 = arith.constant 4 : index
    %c0_164 = arith.constant 0 : index
    %301 = vector.load %arg2[%c4_163, %c0_164] : memref<27x512xf32, #tpu.memory_space<vmem>>, vector<1x512xf32>
    %302 = vector.broadcast %301 : vector<1x512xf32> to vector<8x512xf32>
    %303 = arith.mulf %300, %302 : vector<8x512xf32>
    %c32_165 = arith.constant 32 : index
    %c0_166 = arith.constant 0 : index
    %304 = vector.load %arg18[%c32_165, %c0_166] : memref<216x512xf32, #tpu.memory_space<vmem>>, vector<8x512xf32>
    tpu.vector_store %arg18[%c32_165, %c0_166], %303 {strides = array<i32>} : memref<216x512xf32, #tpu.memory_space<vmem>>, vector<8x512xf32>,
    %c63_i32_167 = arith.constant 63 : i32
    %305 = tpu.dynamic_rotate %279 by %c63_i32_167 dim 1 : vector<8x512xf32>, i32 -> vector<8x512xf32>
    %c5_168 = arith.constant 5 : index
    %c0_169 = arith.constant 0 : index
    %306 = vector.load %arg2[%c5_168, %c0_169] : memref<27x512xf32, #tpu.memory_space<vmem>>, vector<1x512xf32>
    %307 = vector.broadcast %306 : vector<1x512xf32> to vector<8x512xf32>
    %308 = arith.mulf %305, %307 : vector<8x512xf32>
    %c40_170 = arith.constant 40 : index
    %c0_171 = arith.constant 0 : index
    %309 = vector.load %arg18[%c40_170, %c0_171] : memref<216x512xf32, #tpu.memory_space<vmem>>, vector<8x512xf32>
    tpu.vector_store %arg18[%c40_170, %c0_171], %308 {strides = array<i32>} : memref<216x512xf32, #tpu.memory_space<vmem>>, vector<8x512xf32>,
    %c57_i32_172 = arith.constant 57 : i32
    %310 = tpu.dynamic_rotate %279 by %c57_i32_172 dim 1 : vector<8x512xf32>, i32 -> vector<8x512xf32>
    %c6_173 = arith.constant 6 : index
    %c0_174 = arith.constant 0 : index
    %311 = vector.load %arg2[%c6_173, %c0_174] : memref<27x512xf32, #tpu.memory_space<vmem>>, vector<1x512xf32>
    %312 = vector.broadcast %311 : vector<1x512xf32> to vector<8x512xf32>
    %313 = arith.mulf %310, %312 : vector<8x512xf32>
    %c48_175 = arith.constant 48 : index
    %c0_176 = arith.constant 0 : index
    %314 = vector.load %arg18[%c48_175, %c0_176] : memref<216x512xf32, #tpu.memory_space<vmem>>, vector<8x512xf32>
    tpu.vector_store %arg18[%c48_175, %c0_176], %313 {strides = array<i32>} : memref<216x512xf32, #tpu.memory_space<vmem>>, vector<8x512xf32>,
    %c56_i32_177 = arith.constant 56 : i32
    %315 = tpu.dynamic_rotate %279 by %c56_i32_177 dim 1 : vector<8x512xf32>, i32 -> vector<8x512xf32>
    %c7_178 = arith.constant 7 : index
    %c0_179 = arith.constant 0 : index
    %316 = vector.load %arg2[%c7_178, %c0_179] : memref<27x512xf32, #tpu.memory_space<vmem>>, vector<1x512xf32>
    %317 = vector.broadcast %316 : vector<1x512xf32> to vector<8x512xf32>
    %318 = arith.mulf %315, %317 : vector<8x512xf32>
    %c56_180 = arith.constant 56 : index
    %c0_181 = arith.constant 0 : index
    %319 = vector.load %arg18[%c56_180, %c0_181] : memref<216x512xf32, #tpu.memory_space<vmem>>, vector<8x512xf32>
    tpu.vector_store %arg18[%c56_180, %c0_181], %318 {strides = array<i32>} : memref<216x512xf32, #tpu.memory_space<vmem>>, vector<8x512xf32>,
    %c55_i32_182 = arith.constant 55 : i32
    %320 = tpu.dynamic_rotate %279 by %c55_i32_182 dim 1 : vector<8x512xf32>, i32 -> vector<8x512xf32>
    %c8_183 = arith.constant 8 : index
    %c0_184 = arith.constant 0 : index
    %321 = vector.load %arg2[%c8_183, %c0_184] : memref<27x512xf32, #tpu.memory_space<vmem>>, vector<1x512xf32>
    %322 = vector.broadcast %321 : vector<1x512xf32> to vector<8x512xf32>
    %323 = arith.mulf %320, %322 : vector<8x512xf32>
    %c64_185 = arith.constant 64 : index
    %c0_186 = arith.constant 0 : index
    %324 = vector.load %arg18[%c64_185, %c0_186] : memref<216x512xf32, #tpu.memory_space<vmem>>, vector<8x512xf32>
    tpu.vector_store %arg18[%c64_185, %c0_186], %323 {strides = array<i32>} : memref<216x512xf32, #tpu.memory_space<vmem>>, vector<8x512xf32>,
    %c9_i32_187 = arith.constant 9 : i32
    %325 = tpu.dynamic_rotate %279 by %c9_i32_187 dim 1 : vector<8x512xf32>, i32 -> vector<8x512xf32>
    %c9_188 = arith.constant 9 : index
    %c0_189 = arith.constant 0 : index
    %326 = vector.load %arg2[%c9_188, %c0_189] : memref<27x512xf32, #tpu.memory_space<vmem>>, vector<1x512xf32>
    %327 = vector.broadcast %326 : vector<1x512xf32> to vector<8x512xf32>
    %328 = arith.mulf %325, %327 : vector<8x512xf32>
    %c72_190 = arith.constant 72 : index
    %c0_191 = arith.constant 0 : index
    %329 = vector.load %arg18[%c72_190, %c0_191] : memref<216x512xf32, #tpu.memory_space<vmem>>, vector<8x512xf32>
    tpu.vector_store %arg18[%c72_190, %c0_191], %328 {strides = array<i32>} : memref<216x512xf32, #tpu.memory_space<vmem>>, vector<8x512xf32>,
    %c8_i32_192 = arith.constant 8 : i32
    %330 = tpu.dynamic_rotate %279 by %c8_i32_192 dim 1 : vector<8x512xf32>, i32 -> vector<8x512xf32>
    %c10_193 = arith.constant 10 : index
    %c0_194 = arith.constant 0 : index
    %331 = vector.load %arg2[%c10_193, %c0_194] : memref<27x512xf32, #tpu.memory_space<vmem>>, vector<1x512xf32>
    %332 = vector.broadcast %331 : vector<1x512xf32> to vector<8x512xf32>
    %333 = arith.mulf %330, %332 : vector<8x512xf32>
    %c80_195 = arith.constant 80 : index
    %c0_196 = arith.constant 0 : index
    %334 = vector.load %arg18[%c80_195, %c0_196] : memref<216x512xf32, #tpu.memory_space<vmem>>, vector<8x512xf32>
    tpu.vector_store %arg18[%c80_195, %c0_196], %333 {strides = array<i32>} : memref<216x512xf32, #tpu.memory_space<vmem>>, vector<8x512xf32>,
    %c7_i32_197 = arith.constant 7 : i32
    %335 = tpu.dynamic_rotate %279 by %c7_i32_197 dim 1 : vector<8x512xf32>, i32 -> vector<8x512xf32>
    %c11_198 = arith.constant 11 : index
    %c0_199 = arith.constant 0 : index
    %336 = vector.load %arg2[%c11_198, %c0_199] : memref<27x512xf32, #tpu.memory_space<vmem>>, vector<1x512xf32>
    %337 = vector.broadcast %336 : vector<1x512xf32> to vector<8x512xf32>
    %338 = arith.mulf %335, %337 : vector<8x512xf32>
    %c88_200 = arith.constant 88 : index
    %c0_201 = arith.constant 0 : index
    %339 = vector.load %arg18[%c88_200, %c0_201] : memref<216x512xf32, #tpu.memory_space<vmem>>, vector<8x512xf32>
    tpu.vector_store %arg18[%c88_200, %c0_201], %338 {strides = array<i32>} : memref<216x512xf32, #tpu.memory_space<vmem>>, vector<8x512xf32>,
    %c1_i32_202 = arith.constant 1 : i32
    %340 = tpu.dynamic_rotate %279 by %c1_i32_202 dim 1 : vector<8x512xf32>, i32 -> vector<8x512xf32>
    %c12_203 = arith.constant 12 : index
    %c0_204 = arith.constant 0 : index
    %341 = vector.load %arg2[%c12_203, %c0_204] : memref<27x512xf32, #tpu.memory_space<vmem>>, vector<1x512xf32>
    %342 = vector.broadcast %341 : vector<1x512xf32> to vector<8x512xf32>
    %343 = arith.mulf %340, %342 : vector<8x512xf32>
    %c96_205 = arith.constant 96 : index
    %c0_206 = arith.constant 0 : index
    %344 = vector.load %arg18[%c96_205, %c0_206] : memref<216x512xf32, #tpu.memory_space<vmem>>, vector<8x512xf32>
    tpu.vector_store %arg18[%c96_205, %c0_206], %343 {strides = array<i32>} : memref<216x512xf32, #tpu.memory_space<vmem>>, vector<8x512xf32>,
    %c104_207 = arith.constant 104 : index
    %c0_208 = arith.constant 0 : index
    %345 = vector.load %arg18[%c104_207, %c0_208] : memref<216x512xf32, #tpu.memory_space<vmem>>, vector<8x512xf32>
    tpu.vector_store %arg18[%c104_207, %c0_208], %279 {strides = array<i32>} : memref<216x512xf32, #tpu.memory_space<vmem>>, vector<8x512xf32>,
    %c511_i32_209 = arith.constant 511 : i32
    %346 = tpu.dynamic_rotate %279 by %c511_i32_209 dim 1 : vector<8x512xf32>, i32 -> vector<8x512xf32>
    %c14_210 = arith.constant 14 : index
    %c0_211 = arith.constant 0 : index
    %347 = vector.load %arg2[%c14_210, %c0_211] : memref<27x512xf32, #tpu.memory_space<vmem>>, vector<1x512xf32>
    %348 = vector.broadcast %347 : vector<1x512xf32> to vector<8x512xf32>
    %349 = arith.mulf %346, %348 : vector<8x512xf32>
    %c112_212 = arith.constant 112 : index
    %c0_213 = arith.constant 0 : index
    %350 = vector.load %arg18[%c112_212, %c0_213] : memref<216x512xf32, #tpu.memory_space<vmem>>, vector<8x512xf32>
    tpu.vector_store %arg18[%c112_212, %c0_213], %349 {strides = array<i32>} : memref<216x512xf32, #tpu.memory_space<vmem>>, vector<8x512xf32>,
    %c505_i32_214 = arith.constant 505 : i32
    %351 = tpu.dynamic_rotate %279 by %c505_i32_214 dim 1 : vector<8x512xf32>, i32 -> vector<8x512xf32>
    %c15_215 = arith.constant 15 : index
    %c0_216 = arith.constant 0 : index
    %352 = vector.load %arg2[%c15_215, %c0_216] : memref<27x512xf32, #tpu.memory_space<vmem>>, vector<1x512xf32>
    %353 = vector.broadcast %352 : vector<1x512xf32> to vector<8x512xf32>
    %354 = arith.mulf %351, %353 : vector<8x512xf32>
    %c120_217 = arith.constant 120 : index
    %c0_218 = arith.constant 0 : index
    %355 = vector.load %arg18[%c120_217, %c0_218] : memref<216x512xf32, #tpu.memory_space<vmem>>, vector<8x512xf32>
    tpu.vector_store %arg18[%c120_217, %c0_218], %354 {strides = array<i32>} : memref<216x512xf32, #tpu.memory_space<vmem>>, vector<8x512xf32>,
    %c504_i32_219 = arith.constant 504 : i32
    %356 = tpu.dynamic_rotate %279 by %c504_i32_219 dim 1 : vector<8x512xf32>, i32 -> vector<8x512xf32>
    %c16_220 = arith.constant 16 : index
    %c0_221 = arith.constant 0 : index
    %357 = vector.load %arg2[%c16_220, %c0_221] : memref<27x512xf32, #tpu.memory_space<vmem>>, vector<1x512xf32>
    %358 = vector.broadcast %357 : vector<1x512xf32> to vector<8x512xf32>
    %359 = arith.mulf %356, %358 : vector<8x512xf32>
    %c128_222 = arith.constant 128 : index
    %c0_223 = arith.constant 0 : index
    %360 = vector.load %arg18[%c128_222, %c0_223] : memref<216x512xf32, #tpu.memory_space<vmem>>, vector<8x512xf32>
    tpu.vector_store %arg18[%c128_222, %c0_223], %359 {strides = array<i32>} : memref<216x512xf32, #tpu.memory_space<vmem>>, vector<8x512xf32>,
    %c503_i32_224 = arith.constant 503 : i32
    %361 = tpu.dynamic_rotate %279 by %c503_i32_224 dim 1 : vector<8x512xf32>, i32 -> vector<8x512xf32>
    %c17_225 = arith.constant 17 : index
    %c0_226 = arith.constant 0 : index
    %362 = vector.load %arg2[%c17_225, %c0_226] : memref<27x512xf32, #tpu.memory_space<vmem>>, vector<1x512xf32>
    %363 = vector.broadcast %362 : vector<1x512xf32> to vector<8x512xf32>
    %364 = arith.mulf %361, %363 : vector<8x512xf32>
    %c136_227 = arith.constant 136 : index
    %c0_228 = arith.constant 0 : index
    %365 = vector.load %arg18[%c136_227, %c0_228] : memref<216x512xf32, #tpu.memory_space<vmem>>, vector<8x512xf32>
    tpu.vector_store %arg18[%c136_227, %c0_228], %364 {strides = array<i32>} : memref<216x512xf32, #tpu.memory_space<vmem>>, vector<8x512xf32>,
    %c457_i32_229 = arith.constant 457 : i32
    %366 = tpu.dynamic_rotate %279 by %c457_i32_229 dim 1 : vector<8x512xf32>, i32 -> vector<8x512xf32>
    %c18_230 = arith.constant 18 : index
    %c0_231 = arith.constant 0 : index
    %367 = vector.load %arg2[%c18_230, %c0_231] : memref<27x512xf32, #tpu.memory_space<vmem>>, vector<1x512xf32>
    %368 = vector.broadcast %367 : vector<1x512xf32> to vector<8x512xf32>
    %369 = arith.mulf %366, %368 : vector<8x512xf32>
    %c144_232 = arith.constant 144 : index
    %c0_233 = arith.constant 0 : index
    %370 = vector.load %arg18[%c144_232, %c0_233] : memref<216x512xf32, #tpu.memory_space<vmem>>, vector<8x512xf32>
    tpu.vector_store %arg18[%c144_232, %c0_233], %369 {strides = array<i32>} : memref<216x512xf32, #tpu.memory_space<vmem>>, vector<8x512xf32>,
    %c456_i32_234 = arith.constant 456 : i32
    %371 = tpu.dynamic_rotate %279 by %c456_i32_234 dim 1 : vector<8x512xf32>, i32 -> vector<8x512xf32>
    %c19_235 = arith.constant 19 : index
    %c0_236 = arith.constant 0 : index
    %372 = vector.load %arg2[%c19_235, %c0_236] : memref<27x512xf32, #tpu.memory_space<vmem>>, vector<1x512xf32>
    %373 = vector.broadcast %372 : vector<1x512xf32> to vector<8x512xf32>
    %374 = arith.mulf %371, %373 : vector<8x512xf32>
    %c152_237 = arith.constant 152 : index
    %c0_238 = arith.constant 0 : index
    %375 = vector.load %arg18[%c152_237, %c0_238] : memref<216x512xf32, #tpu.memory_space<vmem>>, vector<8x512xf32>
    tpu.vector_store %arg18[%c152_237, %c0_238], %374 {strides = array<i32>} : memref<216x512xf32, #tpu.memory_space<vmem>>, vector<8x512xf32>,
    %c455_i32_239 = arith.constant 455 : i32
    %376 = tpu.dynamic_rotate %279 by %c455_i32_239 dim 1 : vector<8x512xf32>, i32 -> vector<8x512xf32>
    %c20_240 = arith.constant 20 : index
    %c0_241 = arith.constant 0 : index
    %377 = vector.load %arg2[%c20_240, %c0_241] : memref<27x512xf32, #tpu.memory_space<vmem>>, vector<1x512xf32>
    %378 = vector.broadcast %377 : vector<1x512xf32> to vector<8x512xf32>
    %379 = arith.mulf %376, %378 : vector<8x512xf32>
    %c160_242 = arith.constant 160 : index
    %c0_243 = arith.constant 0 : index
    %380 = vector.load %arg18[%c160_242, %c0_243] : memref<216x512xf32, #tpu.memory_space<vmem>>, vector<8x512xf32>
    tpu.vector_store %arg18[%c160_242, %c0_243], %379 {strides = array<i32>} : memref<216x512xf32, #tpu.memory_space<vmem>>, vector<8x512xf32>,
    %c449_i32_244 = arith.constant 449 : i32
    %381 = tpu.dynamic_rotate %279 by %c449_i32_244 dim 1 : vector<8x512xf32>, i32 -> vector<8x512xf32>
    %c21_245 = arith.constant 21 : index
    %c0_246 = arith.constant 0 : index
    %382 = vector.load %arg2[%c21_245, %c0_246] : memref<27x512xf32, #tpu.memory_space<vmem>>, vector<1x512xf32>
    %383 = vector.broadcast %382 : vector<1x512xf32> to vector<8x512xf32>
    %384 = arith.mulf %381, %383 : vector<8x512xf32>
    %c168_247 = arith.constant 168 : index
    %c0_248 = arith.constant 0 : index
    %385 = vector.load %arg18[%c168_247, %c0_248] : memref<216x512xf32, #tpu.memory_space<vmem>>, vector<8x512xf32>
    tpu.vector_store %arg18[%c168_247, %c0_248], %384 {strides = array<i32>} : memref<216x512xf32, #tpu.memory_space<vmem>>, vector<8x512xf32>,
    %c448_i32_249 = arith.constant 448 : i32
    %386 = tpu.dynamic_rotate %279 by %c448_i32_249 dim 1 : vector<8x512xf32>, i32 -> vector<8x512xf32>
    %c22_250 = arith.constant 22 : index
    %c0_251 = arith.constant 0 : index
    %387 = vector.load %arg2[%c22_250, %c0_251] : memref<27x512xf32, #tpu.memory_space<vmem>>, vector<1x512xf32>
    %388 = vector.broadcast %387 : vector<1x512xf32> to vector<8x512xf32>
    %389 = arith.mulf %386, %388 : vector<8x512xf32>
    %c176_252 = arith.constant 176 : index
    %c0_253 = arith.constant 0 : index
    %390 = vector.load %arg18[%c176_252, %c0_253] : memref<216x512xf32, #tpu.memory_space<vmem>>, vector<8x512xf32>
    tpu.vector_store %arg18[%c176_252, %c0_253], %389 {strides = array<i32>} : memref<216x512xf32, #tpu.memory_space<vmem>>, vector<8x512xf32>,
    %c447_i32_254 = arith.constant 447 : i32
    %391 = tpu.dynamic_rotate %279 by %c447_i32_254 dim 1 : vector<8x512xf32>, i32 -> vector<8x512xf32>
    %c23_255 = arith.constant 23 : index
    %c0_256 = arith.constant 0 : index
    %392 = vector.load %arg2[%c23_255, %c0_256] : memref<27x512xf32, #tpu.memory_space<vmem>>, vector<1x512xf32>
    %393 = vector.broadcast %392 : vector<1x512xf32> to vector<8x512xf32>
    %394 = arith.mulf %391, %393 : vector<8x512xf32>
    %c184_257 = arith.constant 184 : index
    %c0_258 = arith.constant 0 : index
    %395 = vector.load %arg18[%c184_257, %c0_258] : memref<216x512xf32, #tpu.memory_space<vmem>>, vector<8x512xf32>
    tpu.vector_store %arg18[%c184_257, %c0_258], %394 {strides = array<i32>} : memref<216x512xf32, #tpu.memory_space<vmem>>, vector<8x512xf32>,
    %c441_i32_259 = arith.constant 441 : i32
    %396 = tpu.dynamic_rotate %279 by %c441_i32_259 dim 1 : vector<8x512xf32>, i32 -> vector<8x512xf32>
    %c24_260 = arith.constant 24 : index
    %c0_261 = arith.constant 0 : index
    %397 = vector.load %arg2[%c24_260, %c0_261] : memref<27x512xf32, #tpu.memory_space<vmem>>, vector<1x512xf32>
    %398 = vector.broadcast %397 : vector<1x512xf32> to vector<8x512xf32>
    %399 = arith.mulf %396, %398 : vector<8x512xf32>
    %c192_262 = arith.constant 192 : index
    %c0_263 = arith.constant 0 : index
    %400 = vector.load %arg18[%c192_262, %c0_263] : memref<216x512xf32, #tpu.memory_space<vmem>>, vector<8x512xf32>
    tpu.vector_store %arg18[%c192_262, %c0_263], %399 {strides = array<i32>} : memref<216x512xf32, #tpu.memory_space<vmem>>, vector<8x512xf32>,
    %c440_i32_264 = arith.constant 440 : i32
    %401 = tpu.dynamic_rotate %279 by %c440_i32_264 dim 1 : vector<8x512xf32>, i32 -> vector<8x512xf32>
    %c25_265 = arith.constant 25 : index
    %c0_266 = arith.constant 0 : index
    %402 = vector.load %arg2[%c25_265, %c0_266] : memref<27x512xf32, #tpu.memory_space<vmem>>, vector<1x512xf32>
    %403 = vector.broadcast %402 : vector<1x512xf32> to vector<8x512xf32>
    %404 = arith.mulf %401, %403 : vector<8x512xf32>
    %c200_267 = arith.constant 200 : index
    %c0_268 = arith.constant 0 : index
    %405 = vector.load %arg18[%c200_267, %c0_268] : memref<216x512xf32, #tpu.memory_space<vmem>>, vector<8x512xf32>
    tpu.vector_store %arg18[%c200_267, %c0_268], %404 {strides = array<i32>} : memref<216x512xf32, #tpu.memory_space<vmem>>, vector<8x512xf32>,
    %c439_i32_269 = arith.constant 439 : i32
    %406 = tpu.dynamic_rotate %279 by %c439_i32_269 dim 1 : vector<8x512xf32>, i32 -> vector<8x512xf32>
    %c26_270 = arith.constant 26 : index
    %c0_271 = arith.constant 0 : index
    %407 = vector.load %arg2[%c26_270, %c0_271] : memref<27x512xf32, #tpu.memory_space<vmem>>, vector<1x512xf32>
    %408 = vector.broadcast %407 : vector<1x512xf32> to vector<8x512xf32>
    %409 = arith.mulf %406, %408 : vector<8x512xf32>
    %c208_272 = arith.constant 208 : index
    %c0_273 = arith.constant 0 : index
    %410 = vector.load %arg18[%c208_272, %c0_273] : memref<216x512xf32, #tpu.memory_space<vmem>>, vector<8x512xf32>
    tpu.vector_store %arg18[%c208_272, %c0_273], %409 {strides = array<i32>} : memref<216x512xf32, #tpu.memory_space<vmem>>, vector<8x512xf32>,
    %c1_274 = arith.constant 1 : index
    %c0_275 = arith.constant 0 : index
    %c0_276 = arith.constant 0 : index
    %411 = vector.load %arg9[%c1_274, %c0_275, %c0_276] : memref<2x8x216xf32, #tpu.memory_space<vmem>>, vector<1x8x216xf32>
    %412 = vector.shape_cast %411 : vector<1x8x216xf32> to vector<8x216xf32>
    %c0_277 = arith.constant 0 : index
    %c0_278 = arith.constant 0 : index
    %413 = vector.load %arg18[%c0_277, %c0_278] : memref<216x512xf32, #tpu.memory_space<vmem>>, vector<216x512xf32>
    %cst_279 = arith.constant dense<0.000000e+00> : vector<8x512xf32>
    %414 = tpu.matmul %412, %413, %cst_279 {dimension_numbers = #tpu.dot_dimension_numbers<[1], [0], [0], [1], [0, 0, 1, 1], [], []>} : vector<8x216xf32>, vector<216x512xf32>, vector<8x512xf32> -> vector<8x512xf32>
    %c1_280 = arith.constant 1 : index
    %c0_281 = arith.constant 0 : index
    %c0_282 = arith.constant 0 : index
    %415 = vector.load %arg10[%c1_280, %c0_281, %c0_282] : memref<2x8x1xf32, #tpu.memory_space<vmem>>, vector<1x8x1xf32>
    %416 = vector.shape_cast %415 : vector<1x8x1xf32> to vector<8x1xf32>
    %417 = vector.broadcast %416 : vector<8x1xf32> to vector<8x512xf32>
    %418 = arith.addf %414, %417 : vector<8x512xf32>
    %c1_283 = arith.constant 1 : index
    %c0_284 = arith.constant 0 : index
    %c0_285 = arith.constant 0 : index
    %419 = vector.load %arg11[%c1_283, %c0_284, %c0_285] : memref<2x8x1xf32, #tpu.memory_space<vmem>>, vector<1x8x1xf32>
    %420 = vector.shape_cast %419 : vector<1x8x1xf32> to vector<8x1xf32>
    %c1_286 = arith.constant 1 : index
    %c0_287 = arith.constant 0 : index
    %c0_288 = arith.constant 0 : index
    %421 = vector.load %arg12[%c1_286, %c0_287, %c0_288] : memref<2x8x1xf32, #tpu.memory_space<vmem>>, vector<1x8x1xf32>
    %422 = vector.shape_cast %421 : vector<1x8x1xf32> to vector<8x1xf32>
    %cst_289 = arith.constant dense<0.000000e+00> : vector<8xf32>
    %423 = vector.multi_reduction <add>, %418, %cst_289 [1] : vector<8x512xf32> to vector<8xf32>
    %424 = vector.shape_cast %423 : vector<8xf32> to vector<8x1xf32>
    %cst_290 = arith.constant 5.120000e+02 : f32
    %425 = vector.broadcast %cst_290 : f32 to vector<8x1xf32>
    %426 = arith.divf %424, %425 : vector<8x1xf32>
    %427 = vector.broadcast %426 : vector<8x1xf32> to vector<8x512xf32>
    %428 = arith.subf %418, %427 : vector<8x512xf32>
    %429 = arith.mulf %428, %428 : vector<8x512xf32>
    %cst_291 = arith.constant dense<0.000000e+00> : vector<8xf32>
    %430 = vector.multi_reduction <add>, %429, %cst_291 [1] : vector<8x512xf32> to vector<8xf32>
    %431 = vector.shape_cast %430 : vector<8xf32> to vector<8x1xf32>
    %cst_292 = arith.constant 5.120000e+02 : f32
    %432 = vector.broadcast %cst_292 : f32 to vector<8x1xf32>
    %433 = arith.divf %431, %432 : vector<8x1xf32>
    %434 = vector.broadcast %426 : vector<8x1xf32> to vector<8x512xf32>
    %435 = arith.subf %418, %434 : vector<8x512xf32>
    %cst_293 = arith.constant 9.99999974E-6 : f32
    %436 = vector.broadcast %cst_293 : f32 to vector<8x1xf32>
    %437 = arith.addf %433, %436 : vector<8x1xf32>
    %438 = math.rsqrt %437 : vector<8x1xf32>
    %439 = vector.broadcast %438 : vector<8x1xf32> to vector<8x512xf32>
    %440 = arith.mulf %435, %439 : vector<8x512xf32>
    %441 = vector.broadcast %420 : vector<8x1xf32> to vector<8x512xf32>
    %442 = arith.mulf %440, %441 : vector<8x512xf32>
    %443 = vector.broadcast %422 : vector<8x1xf32> to vector<8x512xf32>
    %444 = arith.addf %442, %443 : vector<8x512xf32>
    %cst_294 = arith.constant 0.000000e+00 : f32
    %445 = vector.broadcast %cst_294 : f32 to vector<8x512xf32>
    %446 = arith.maximumf %444, %445 : vector<8x512xf32>
    %c1_295 = arith.constant 1 : index
    %c0_296 = arith.constant 0 : index
    %c0_297 = arith.constant 0 : index
    %447 = vector.load %arg13[%c1_295, %c0_296, %c0_297] : memref<2x16x8xf32, #tpu.memory_space<vmem>>, vector<1x16x8xf32>
    %448 = vector.shape_cast %447 : vector<1x16x8xf32> to vector<16x8xf32>
    %cst_298 = arith.constant dense<0.000000e+00> : vector<16x512xf32>
    %449 = tpu.matmul %448, %446, %cst_298 {dimension_numbers = #tpu.dot_dimension_numbers<[1], [0], [0], [1], [0, 0, 1, 1], [], []>} : vector<16x8xf32>, vector<8x512xf32>, vector<16x512xf32> -> vector<16x512xf32>
    %c1_299 = arith.constant 1 : index
    %c0_300 = arith.constant 0 : index
    %c0_301 = arith.constant 0 : index
    %450 = vector.load %arg14[%c1_299, %c0_300, %c0_301] : memref<2x16x1xf32, #tpu.memory_space<vmem>>, vector<1x16x1xf32>
    %451 = vector.shape_cast %450 : vector<1x16x1xf32> to vector<16x1xf32>
    %452 = vector.broadcast %451 : vector<16x1xf32> to vector<16x512xf32>
    %453 = arith.addf %449, %452 : vector<16x512xf32>
    %c1_302 = arith.constant 1 : index
    %c0_303 = arith.constant 0 : index
    %c0_304 = arith.constant 0 : index
    %454 = vector.load %arg15[%c1_302, %c0_303, %c0_304] : memref<2x16x1xf32, #tpu.memory_space<vmem>>, vector<1x16x1xf32>
    %455 = vector.shape_cast %454 : vector<1x16x1xf32> to vector<16x1xf32>
    %c1_305 = arith.constant 1 : index
    %c0_306 = arith.constant 0 : index
    %c0_307 = arith.constant 0 : index
    %456 = vector.load %arg16[%c1_305, %c0_306, %c0_307] : memref<2x16x1xf32, #tpu.memory_space<vmem>>, vector<1x16x1xf32>
    %457 = vector.shape_cast %456 : vector<1x16x1xf32> to vector<16x1xf32>
    %cst_308 = arith.constant dense<0.000000e+00> : vector<16xf32>
    %458 = vector.multi_reduction <add>, %453, %cst_308 [1] : vector<16x512xf32> to vector<16xf32>
    %459 = vector.shape_cast %458 : vector<16xf32> to vector<16x1xf32>
    %cst_309 = arith.constant 5.120000e+02 : f32
    %460 = vector.broadcast %cst_309 : f32 to vector<16x1xf32>
    %461 = arith.divf %459, %460 : vector<16x1xf32>
    %462 = vector.broadcast %461 : vector<16x1xf32> to vector<16x512xf32>
    %463 = arith.subf %453, %462 : vector<16x512xf32>
    %464 = arith.mulf %463, %463 : vector<16x512xf32>
    %cst_310 = arith.constant dense<0.000000e+00> : vector<16xf32>
    %465 = vector.multi_reduction <add>, %464, %cst_310 [1] : vector<16x512xf32> to vector<16xf32>
    %466 = vector.shape_cast %465 : vector<16xf32> to vector<16x1xf32>
    %cst_311 = arith.constant 5.120000e+02 : f32
    %467 = vector.broadcast %cst_311 : f32 to vector<16x1xf32>
    %468 = arith.divf %466, %467 : vector<16x1xf32>
    %469 = vector.broadcast %461 : vector<16x1xf32> to vector<16x512xf32>
    %470 = arith.subf %453, %469 : vector<16x512xf32>
    %cst_312 = arith.constant 9.99999974E-6 : f32
    %471 = vector.broadcast %cst_312 : f32 to vector<16x1xf32>
    %472 = arith.addf %468, %471 : vector<16x1xf32>
    %473 = math.rsqrt %472 : vector<16x1xf32>
    %474 = vector.broadcast %473 : vector<16x1xf32> to vector<16x512xf32>
    %475 = arith.mulf %470, %474 : vector<16x512xf32>
    %476 = vector.broadcast %455 : vector<16x1xf32> to vector<16x512xf32>
    %477 = arith.mulf %475, %476 : vector<16x512xf32>
    %478 = vector.broadcast %457 : vector<16x1xf32> to vector<16x512xf32>
    %479 = arith.addf %477, %478 : vector<16x512xf32>
    %480 = arith.addf %244, %479 : vector<16x512xf32>
    %cst_313 = arith.constant 0.000000e+00 : f32
    %481 = vector.broadcast %cst_313 : f32 to vector<16x512xf32>
    %482 = arith.maximumf %480, %481 : vector<16x512xf32>
    %c0_314 = arith.constant 0 : index
    %c0_315 = arith.constant 0 : index
    %c0_316 = arith.constant 0 : index
    %483 = vector.load %arg17[%c0_314, %c0_315, %c0_316] : memref<1x16x512xf32, #tpu.memory_space<vmem>>, vector<1x16x512xf32>
    %484 = vector.shape_cast %483 : vector<1x16x512xf32> to vector<16x512xf32>
    %485 = vector.shape_cast %482 : vector<16x512xf32> to vector<1x16x512xf32>
    tpu.vector_store %arg17[%c0_314, %c0_315, %c0_316], %485 {strides = array<i32>} : memref<1x16x512xf32, #tpu.memory_space<vmem>>, vector<1x16x512xf32>,
    return
  }
  func.func @transform_0(%arg0: i32) -> (i32, i32, i32) {
    %c0_i32 = arith.constant 0 : i32
    %c0_i32_0 = arith.constant 0 : i32
    %c0_i32_1 = arith.constant 0 : i32
    return %arg0, %c0_i32, %c0_i32_0 : i32, i32, i32
  }
  func.func @transform_1(%arg0: i32) -> (i32, i32) {
    %c0_i32 = arith.constant 0 : i32
    %c0_i32_0 = arith.constant 0 : i32
    %c0_i32_1 = arith.constant 0 : i32
    return %c0_i32, %c0_i32_0 : i32, i32
  }
  func.func @transform_2(%arg0: i32) -> (i32, i32) {
    %c0_i32 = arith.constant 0 : i32
    %c0_i32_0 = arith.constant 0 : i32
    %c0_i32_1 = arith.constant 0 : i32
    return %c0_i32, %c0_i32_0 : i32, i32
  }
  func.func @transform_3(%arg0: i32) -> (i32, i32) {
    %c0_i32 = arith.constant 0 : i32
    %c0_i32_0 = arith.constant 0 : i32
    %c0_i32_1 = arith.constant 0 : i32
    return %c0_i32, %c0_i32_0 : i32, i32
  }
  func.func @transform_4(%arg0: i32) -> (i32, i32, i32) {
    %c0_i32 = arith.constant 0 : i32
    %c0_i32_0 = arith.constant 0 : i32
    %c0_i32_1 = arith.constant 0 : i32
    %c0_i32_2 = arith.constant 0 : i32
    return %c0_i32, %c0_i32_0, %c0_i32_1 : i32, i32, i32
  }
  func.func @transform_5(%arg0: i32) -> (i32, i32, i32) {
    %c0_i32 = arith.constant 0 : i32
    %c0_i32_0 = arith.constant 0 : i32
    %c0_i32_1 = arith.constant 0 : i32
    %c0_i32_2 = arith.constant 0 : i32
    return %c0_i32, %c0_i32_0, %c0_i32_1 : i32, i32, i32
  }
  func.func @transform_6(%arg0: i32) -> (i32, i32, i32) {
    %c0_i32 = arith.constant 0 : i32
    %c0_i32_0 = arith.constant 0 : i32
    %c0_i32_1 = arith.constant 0 : i32
    %c0_i32_2 = arith.constant 0 : i32
    return %c0_i32, %c0_i32_0, %c0_i32_1 : i32, i32, i32
  }
  func.func @transform_7(%arg0: i32) -> (i32, i32, i32) {
    %c0_i32 = arith.constant 0 : i32
    %c0_i32_0 = arith.constant 0 : i32
    %c0_i32_1 = arith.constant 0 : i32
    %c0_i32_2 = arith.constant 0 : i32
    return %c0_i32, %c0_i32_0, %c0_i32_1 : i32, i32, i32
  }
  func.func @transform_8(%arg0: i32) -> (i32, i32, i32) {
    %c0_i32 = arith.constant 0 : i32
    %c0_i32_0 = arith.constant 0 : i32
    %c0_i32_1 = arith.constant 0 : i32
    %c0_i32_2 = arith.constant 0 : i32
    return %c0_i32, %c0_i32_0, %c0_i32_1 : i32, i32, i32
  }
  func.func @transform_9(%arg0: i32) -> (i32, i32, i32) {
    %c0_i32 = arith.constant 0 : i32
    %c0_i32_0 = arith.constant 0 : i32
    %c0_i32_1 = arith.constant 0 : i32
    %c0_i32_2 = arith.constant 0 : i32
    return %c0_i32, %c0_i32_0, %c0_i32_1 : i32, i32, i32
  }
  func.func @transform_10(%arg0: i32) -> (i32, i32, i32) {
    %c0_i32 = arith.constant 0 : i32
    %c0_i32_0 = arith.constant 0 : i32
    %c0_i32_1 = arith.constant 0 : i32
    %c0_i32_2 = arith.constant 0 : i32
    return %c0_i32, %c0_i32_0, %c0_i32_1 : i32, i32, i32
  }
  func.func @transform_11(%arg0: i32) -> (i32, i32, i32) {
    %c0_i32 = arith.constant 0 : i32
    %c0_i32_0 = arith.constant 0 : i32
    %c0_i32_1 = arith.constant 0 : i32
    %c0_i32_2 = arith.constant 0 : i32
    return %c0_i32, %c0_i32_0, %c0_i32_1 : i32, i32, i32
  }
  func.func @transform_12(%arg0: i32) -> (i32, i32, i32) {
    %c0_i32 = arith.constant 0 : i32
    %c0_i32_0 = arith.constant 0 : i32
    %c0_i32_1 = arith.constant 0 : i32
    %c0_i32_2 = arith.constant 0 : i32
    return %c0_i32, %c0_i32_0, %c0_i32_1 : i32, i32, i32
  }
  func.func @transform_13(%arg0: i32) -> (i32, i32, i32) {
    %c0_i32 = arith.constant 0 : i32
    %c0_i32_0 = arith.constant 0 : i32
    %c0_i32_1 = arith.constant 0 : i32
    %c0_i32_2 = arith.constant 0 : i32
    return %c0_i32, %c0_i32_0, %c0_i32_1 : i32, i32, i32
  }
  func.func @transform_14(%arg0: i32) -> (i32, i32, i32) {
    %c0_i32 = arith.constant 0 : i32
    %c0_i32_0 = arith.constant 0 : i32
    %c0_i32_1 = arith.constant 0 : i32
    %c0_i32_2 = arith.constant 0 : i32
    return %c0_i32, %c0_i32_0, %c0_i32_1 : i32, i32, i32
  }
  func.func @transform_15(%arg0: i32) -> (i32, i32, i32) {
    %c0_i32 = arith.constant 0 : i32
    %c0_i32_0 = arith.constant 0 : i32
    %c0_i32_1 = arith.constant 0 : i32
    %c0_i32_2 = arith.constant 0 : i32
    return %c0_i32, %c0_i32_0, %c0_i32_1 : i32, i32, i32
  }
  func.func @transform_16(%arg0: i32) -> (i32, i32, i32) {
    %c0_i32 = arith.constant 0 : i32
    %c0_i32_0 = arith.constant 0 : i32
    %c0_i32_1 = arith.constant 0 : i32
    return %arg0, %c0_i32, %c0_i32_0 : i32, i32, i32
  }
}

</mosaic_0001>

<bundles_post_ra>
// kernel: up_smooth_bottom_3d.1
= control target key start
LH: loop header
LB: loop body
LE: loop exit
PB: predicated region body
PF: predicated region fallthrough
CT: control target
= control target key end

     0   :  { %s4664_s21 = smov 0   ;;  %s6641_s0 = inlined_call_operand.vmem [shape: f32[2,4,512], index: 0, kind: input, shape index: {}]   ;;  %s6642_s1 = inlined_call_operand.vmem [shape: f32[27,512], index: 1, kind: input, shape index: {}]   ;;  %s6643_s2 = inlined_call_operand.vmem [shape: f32[16,4], index: 2, kind: input, shape index: {}]   ;;  %s6644_s3 = inlined_call_operand.vmem [shape: f32[16,1], index: 3, kind: input, shape index: {}]   ;;  %s6645_s4 = inlined_call_operand.vmem [shape: f32[2,8,16], index: 4, kind: input, shape index: {}]   ;;  %s6646_s5 = inlined_call_operand.vmem [shape: f32[2,8,1], index: 5, kind: input, shape index: {}]   ;;  %s6647_s6 = inlined_call_operand.vmem [shape: f32[2,8,1], index: 6, kind: input, shape index: {}]   ;;  %s6648_s7 = inlined_call_operand.vmem [shape: f32[2,8,1], index: 7, kind: input, shape index: {}]   ;;  %s6649_s8 = inlined_call_operand.vmem [shape: f32[2,8,216], index: 8, kind: input, shape index: {}]   ;;  %s6650_s9 = inlined_call_operand.vmem [shape: f32[2,8,1], index: 9, kind: input, shape index: {}]   ;;  %s6651_s10 = inlined_call_operand.vmem [shape: f32[2,8,1], index: 10, kind: input, shape index: {}]   ;;  %s6652_s11 = inlined_call_operand.vmem [shape: f32[2,8,1], index: 11, kind: input, shape index: {}]   ;;  %s6653_s12 = inlined_call_operand.vmem [shape: f32[2,16,8], index: 12, kind: input, shape index: {}]   ;;  %s6654_s13 = inlined_call_operand.vmem [shape: f32[2,16,1], index: 13, kind: input, shape index: {}]   ;;  %s6655_s14 = inlined_call_operand.vmem [shape: f32[2,16,1], index: 14, kind: input, shape index: {}]   ;;  %s6656_s15 = inlined_call_operand.vmem [shape: f32[2,16,1], index: 15, kind: input, shape index: {}]   ;;  %s6657_s16 = inlined_call_operand.vmem [shape: f32[2,16,512], index: 16, kind: output, shape index: {}]  }
   0x1   :  { %6718 = sst [smem:[#allocation14_spill]] %s6641_s0 }
   0x2 LB: > { %s4401_s22 = sadd.s32 4294967295, %s4558_s21   ;;  %p4405_p0 = scmp.ge.s32.totalorder %s4558_s21, 1  ;;  %s4558_s21 = sphi %s4664_s21, %s26_s21  }
   0x3   : > { %p462_p1 = scmp.lt.s32.totalorder %s4558_s21, 3 }
   0x5   : > { %p463_p2 = pnand %p4405_p0, %p462_p1 }
   0x7   : > { %466 = sbr.rel (%p463_p2) target bundleno = 3876 (0xf24), region = 84 }
   0xc   : > { %p512_p3 = scmp.lt.s32.totalorder %s4401_s22, 1  ;;  %v6683_v0 = vmov 0.0   ;;  %v527_v1 = vld [vmem:[%s6644_s3 + $0x8] sm:$0xff]  ;;  %v4561_v2 = vmov 0   ;;  %v526_v3 = vld [vmem:[%s6644_s3] sm:$0xff]  ;;  %s6719_s30 = sld [smem:[#allocation14_spill]] }
   0xd   : > { %622 = vmatprep.mubr.f32.mxu0 %v6683_v0  ;;  %699 = vmatprep.mubr.f32.mxu1 %v6683_v0  ;;  %vm549_vm0 = vcmask 1043456   ;;  %v524_v8 = vld [vmem:[%s6643_s2] sm:$0xff]  ;;  %vm542_vm1 = vcmask 31744   ;;  %v525_v10 = vld [vmem:[%s6643_s2 + $0x8] sm:$0xff]  ;;  %vm719_vm2 = vcmask 130048   ;;  %s4563_s17 = smov 127  }
   0xe   : > { %s6833_s22 = smov (!%p512_p3, %s4401_s22), 1  ;;  %4532 = vset.pattern.permute.xlu0 %v4561_v2  ;;  %4533 = vset.pattern.permute.xlu1 %v4561_v2  ;;  %v865_v9 = vld [vmem:[%s6647_s6] sm:$0xff]  ;;  %s4564_s18 = smov 1   ;;  %vm2064_vm5 = vcmask 719872  }
   0xf   : > { %535 = vperm.xlu0 %4532, %v527_v1   ;;  %s4503_s25 = sshll.u32 %s6833_s22, 4  ;;  %v713_v11 = vld [vmem:[%s6646_s5] sm:$0xff]  ;;  %s4565_s19 = smov 7  }
  0x10   : > { %716 = vperm.xlu1 %4533, %v713_v11   ;;  %v712_v30 = vld [vmem:[%s6645_s4] sm:$0xff]  ;;  %s4566_s20 = smov 8   ;;  %s6680_s23 = smov 9  }
  0x11   : > { %v866_v43 = vld [vmem:[%s6648_s7] sm:$0xff]  ;;  %s6678_s24 = smov 55   ;;  %s6658_s26 = smov 57  }
  0x12   : > { %s516_s0 = scalar_lea.vmem %s6719_s30, %s4503_s25  ;;  %s6664_s25 = smov 56  }
  0x13   : > { %v522_v4 = vld [vmem:[%s516_s0] sm:$0xff]  ;;  %v523_v5 = vld [vmem:[%s516_s0 + $0x8] sm:$0xff]  ;;  %530 = vperm.xlu0 %4532, %v526_v3   ;;  %s4562_s0 = smov 121   ;;  %s6660_s27 = smov 63  }
  0x14   : > { %v540_v6 = vcombine.high %v522_v4, %v522_v4  ;;  %v541_v7 = vcombine.high %v523_v5, %v523_v5  ;;  %s6662_s28 = smov 64   ;;  %s6672_s29 = smov 65  }
  0x15   : > { %s6670_s30 = smov 71  }
  0x16   : > { %4410 = vmatprep.subr.msk.mxu0 %vm549_vm0, %v540_v6  ;;  %4414 = vmatprep.subr.msk.mxu1 %vm549_vm0, %v541_v7 }
  0x17   : > { %4411 = vmatpush1.msk.msra.mxu0 %vm549_vm0, %v522_v4  ;;  %4415 = vmatpush1.msk.msra.mxu1 %vm549_vm0, %v523_v5 }
  0x18   : > { %4412 = vmatmul.mubr.msk.f32.vlgmr.msra.gmra.mxu0 %vm542_vm1, %v524_v8  ;;  %4416 = vmatmul.mubr.msk.f32.vlgmr.msra.gmra.mxu1 %vm542_vm1, %v524_v8 }
  0x19   : > { %628 = vmatprep.mubr.f32.mxu0 %v6683_v0  ;;  %705 = vmatprep.mubr.f32.mxu1 %v6683_v0 }
  0x1a   : > { %896 = vperm.xlu0 %4532, %v865_v9  }
  0x1c   : > { %4413 = vmatmul.mubr.msk.f32.gmra.mxu0 %vm542_vm1, %v525_v10  ;;  %4417 = vmatmul.mubr.msk.f32.gmra.mxu1 %vm542_vm1, %v525_v10 }
  0x1d   : > { %787 = vmatprep.mubr.f32.mxu0 %v6683_v0  ;;  %858 = vmatprep.mubr.f32.mxu1 %v6683_v0 }
  0x8a   : > { %v536_v14 = vpop.permute.xlu0 %535 }
  0x8b   : > { %v717_v31 = vpop.permute.xlu1 %716 }
  0x8e   : > { %v531_v21 = vpop.permute.xlu0 %530 }
  0x95   : > { %v897_v57 = vpop.permute.xlu0 %896 }
  0xd8   : > { %v624_v12 = vpop.f32.mrf.mxu0  ;;  %v701_v13 = vpop.f32.mrf.mxu1 }
  0xd9   : > { %v4716_v28 = vadd.f32 %v624_v12, %v531_v21  ;;  %v4718_v29 = vadd.f32 %v701_v13, %v531_v21 }
  0xda   : > { %v626_v15 = vpop.f32.mrf.mxu0  ;;  %v703_v16 = vpop.f32.mrf.mxu1 }
  0xdb   : > { %v4710_v26 = vadd.f32 %v626_v15, %v531_v21  ;;  %v4712_v27 = vadd.f32 %v703_v16, %v531_v21  ;;  %6726 = vst [vmem:[#allocation9_spill] sm:$0xff] %v4716_v28  ;;  %6727 = vst [vmem:[#allocation10_spill] sm:$0xff] %v4718_v29  ;;  %v924_v16 = vlaneseq }
  0xdc   : > { %v630_v17 = vpop.f32.mrf.mxu0  ;;  %v707_v18 = vpop.f32.mrf.mxu1 }
  0xdd   : > { %v4706_v24 = vadd.f32 %v630_v17, %v536_v14  ;;  %v4708_v25 = vadd.f32 %v707_v18, %v536_v14  ;;  %6724 = vst [vmem:[#allocation7_spill] sm:$0xff] %v4710_v26  ;;  %6725 = vst [vmem:[#allocation8_spill] sm:$0xff] %v4712_v27  ;;  %v934_v17 = vshrl.u32 %v924_v16, 7  ;;  %v4854_v18 = vand.u32 127, %v924_v16 }
  0xde   : > { %v632_v19 = vpop.f32.mrf.mxu0  ;;  %v709_v20 = vpop.f32.mrf.mxu1 }
  0xdf   : > { %v4702_v22 = vadd.f32 %v632_v19, %v536_v14  ;;  %v4704_v23 = vadd.f32 %v709_v20, %v536_v14  ;;  %6722 = vst [vmem:[#allocation5_spill] sm:$0xff] %v4706_v24  ;;  %6723 = vst [vmem:[#allocation6_spill] sm:$0xff] %v4708_v25  ;;  %v4856_v19 = vsub.s32 1, %v934_v17  ;;  %v4433_v20 = vld [vmem:[%s6642_s1 + $0x27] ss:$8 sm:$0xf] }
  0xe0   : > { %v4865_v21 = vsub.s32 0, %v934_v17  ;;  %vm1545_vm3 = vcmp.lt.s32.totalorder %v4854_v18, 121  ;;  %vm1501_vm4 = vcmp.lt.s32.totalorder %v4854_v18, 127  ;;  %vm1453_vm6 = vcmp.lt.s32.totalorder %v4854_v18, 1 }
  0xe1   : > { %6720 = vst [vmem:[#allocation3_spill] sm:$0xff] %v4702_v22  ;;  %6721 = vst [vmem:[#allocation4_spill] sm:$0xff] %v4704_v23  ;;  %751 = vmatprep.subr.mxu0 %v4702_v22  ;;  %822 = vmatprep.subr.mxu1 %v4704_v23  ;;  %vm1409_vm7 = vcmp.lt.s32.totalorder %v4854_v18, 7  ;;  %vm1365_vm8 = vcmp.lt.s32.totalorder %v4854_v18, 8  ;;  %vm1321_vm9 = vcmp.lt.s32.totalorder %v4854_v18, 9  ;;  %vm1277_vm10 = vcmp.lt.s32.totalorder %v4854_v18, 55 }
  0xe2   : > { %752 = vmatpush1.msra.mxu0 %v4706_v24  ;;  %823 = vmatpush1.msra.mxu1 %v4708_v25  ;;  %vm1233_vm11 = vcmp.lt.s32.totalorder %v4854_v18, 56  ;;  %vm1189_vm12 = vcmp.lt.s32.totalorder %v4854_v18, 57  ;;  %vm1145_vm13 = vcmp.lt.s32.totalorder %v4854_v18, 63  ;;  %vm6682_vm14 = vcmp.lt.s32.totalorder %v4854_v18, 64 }
  0xe3   : > { %753 = vmatprep.subr.mxu0 %v4710_v26  ;;  %824 = vmatprep.subr.mxu1 %v4712_v27  ;;  %vm1057_vm15 = vcmp.lt.s32.totalorder %v4854_v18, 65  ;;  %vm1013_vm0 = vcmp.lt.s32.totalorder %v4854_v18, 71  ;;  %vm6696_vm1 = vcmp.lt.s32.totalorder %v4854_v18, 72 }
  0xe4   : > { %754 = vmatpush1.msra.mxu0 %v4716_v28  ;;  %825 = vmatpush1.msra.mxu1 %v4718_v29 }
  0xe5   : > { %4418 = vmatmul.mubr.msk.f32.vlgmr.msra.gmra.mxu0 %vm719_vm2, %v712_v30  ;;  %4419 = vmatmul.mubr.msk.f32.vlgmr.msra.gmra.mxu1 %vm719_vm2, %v712_v30  ;;  %v1560_v30 = vrot.slane %v4433_v20, %v4856_v19 }
 0x1a5   : > { %v789_v32 = vpop.f32.mrf.mxu0  ;;  %v860_v33 = vpop.f32.mrf.mxu1 }
 0x1a6   : > { %v790_v35 = vadd.f32 %v789_v32, %v717_v31  ;;  %v861_v38 = vadd.f32 %v860_v33, %v717_v31 }
 0x1a7   : > { %v791_v34 = vpop.f32.mrf.mxu0  ;;  %v862_v37 = vpop.f32.mrf.mxu1 }
 0x1a8   : > { %v792_v36 = vadd.f32 %v791_v34, %v717_v31  ;;  %v863_v40 = vadd.f32 %v862_v37, %v717_v31 }
 0x1aa   : > { %v867_v39 = vadd.f32 %v792_v36, %v790_v35 }
 0x1ac   : > { %v868_v41 = vadd.f32 %v867_v39, %v861_v38  ;;  %v4879_v39 = vsub.s32 2, %v934_v17 }
 0x1ae   : > { %v869_v42 = vadd.f32 %v868_v41, %v863_v40 }
 0x1b0   : > { %870 = vadd.xlane.f32.xlu1 %v869_v42 }
 0x1c1   : > { %905 = vperm.xlu1 %4533, %v866_v43  }
 0x239   : > { %v871_v44 = vpop.xlane.xlu1 %870 }
 0x23a   : > { %v873_v45 = vmul.f32 0.001953125, %v871_v44 }
 0x23c   : > { %v874_v46 = vsub.f32 %v790_v35, %v873_v45  ;;  %v875_v47 = vsub.f32 %v792_v36, %v873_v45  ;;  %v876_v48 = vsub.f32 %v861_v38, %v873_v45  ;;  %v877_v49 = vsub.f32 %v863_v40, %v873_v45  ;;  %v4432_v36 = vld [vmem:[%s6642_s1 + $0x26] ss:$8 sm:$0xf] }
 0x23d   : > { %v906_v5 = vpop.permute.xlu1 %905  ;;  %v1556_v35 = vrot.slane %v4433_v20, %v4865_v21  ;;  %v4881_v40 = vsub.s32 3, %v934_v17  ;;  %v1512_v43 = vrot.slane %v4432_v36, %v4865_v21  ;;  %v1516_v44 = vrot.slane %v4432_v36, %v4856_v19 }
 0x23e   : > { %v878_v50 = vmul.f32 %v874_v46, %v874_v46  ;;  %v879_v51 = vmul.f32 %v875_v47, %v875_v47  ;;  %v880_v52 = vmul.f32 %v876_v48, %v876_v48  ;;  %v881_v54 = vmul.f32 %v877_v49, %v877_v49 }
 0x240   : > { %v882_v53 = vadd.f32 %v879_v51, %v878_v50 }
 0x242   : > { %v883_v55 = vadd.f32 %v882_v53, %v880_v52  ;;  %v1568_v52 = vrot.slane %v4433_v20, %v4881_v40  ;;  %v4905_v53 = vld [vmem:[%s6642_s1 + $0x24] ss:$8 sm:$0xf] }
 0x244   : > { %v884_v56 = vadd.f32 %v883_v55, %v881_v54  ;;  %v1949_v54 = vld [vmem:[%s6649_s8 + $0x8] sm:$0xff] }
 0x245   : > { %4445 = vmatprep.mubr.msk.f32.mxu0 %vm2064_vm5, %v1949_v54  ;;  %4446 = vmatprep.mubr.msk.f32.mxu1 %vm2064_vm5, %v1949_v54 }
 0x246   : > { %885 = vadd.xlane.f32.xlu0 %v884_v56 }
 0x2cf   : > { %v886_v58 = vpop.xlane.xlu0 %885 }
 0x2d0   : > { %v887_v59 = vmul.f32 0.001953125, %v886_v58 }
 0x2d2   : > { %v888_v60 = vadd.f32 1e-05, %v887_v59  ;;  %v1520_v59 = vrot.slane %v4432_v36, %v4879_v39 }
 0x2d4   : > { %4536 = vrsqrt.f32 %v888_v60  ;;  %v1468_v60 = vrot.slane %v4905_v53, %v4856_v19 }
 0x2e1   : > { %v4537_v61 = vpop.eup %4536 }
 0x2e2   : > { %v890_v62 = vmul.f32 %v4537_v61, %v874_v46  ;;  %v891_v63 = vmul.f32 %v4537_v61, %v875_v47  ;;  %v892_v1 = vmul.f32 %v4537_v61, %v876_v48  ;;  %v893_v8 = vmul.f32 %v4537_v61, %v877_v49 }
 0x2e3   : > { %v1564_v49 = vrot.slane %v4433_v20, %v4879_v39 }
 0x2e4   : > { %v899_v2 = vmul.f32 %v897_v57, %v890_v62  ;;  %v900_v3 = vmul.f32 %v897_v57, %v891_v63  ;;  %v901_v4 = vmul.f32 %v897_v57, %v892_v1  ;;  %v902_v12 = vmul.f32 %v897_v57, %v893_v8 }
 0x2e5   : > { %v1524_v63 = vrot.slane %v4432_v36, %v4881_v40 }
 0x2e6   : > { %v909_v6 = vadd.f32 %v906_v5, %v900_v3  ;;  %v910_v7 = vadd.f32 %v906_v5, %v901_v4  ;;  %v908_v9 = vadd.f32 %v906_v5, %v899_v2  ;;  %v911_v14 = vadd.f32 %v906_v5, %v902_v12  ;;  %v4945_v12 = vld [vmem:[%s6642_s1 + $0x23] ss:$8 sm:$0xf] }
 0x2e7   : > { %v1420_v20 = vrot.slane %v4945_v12, %v4865_v21 }
 0x2e8   : > { %v4734_v10 = vmax.f32 %v909_v6, 0.0  ;;  %v4736_v11 = vmax.f32 %v910_v7, 0.0  ;;  %v4742_v13 = vmax.f32 %v908_v9, 0.0  ;;  %v4752_v15 = vmax.f32 %v911_v14, 0.0 }
 0x2e9   : > { %v1464_v6 = vrot.slane %v4905_v53, %v4865_v21 }
 0x2ea   : > { %1541 = vrot.lane.b32.xlu0 %v4736_v11, %s4562_s0  ;;  %1539 = vrot.lane.b32.xlu1 %v4734_v10, %s4562_s0 }
 0x2ee   : > { %1495 = vrot.lane.b32.xlu0 %v4734_v10, %s4563_s17  ;;  %1537 = vrot.lane.b32.xlu1 %v4742_v13, %s4562_s0 }
 0x2f2   : > { %1493 = vrot.lane.b32.xlu0 %v4742_v13, %s4563_s17  ;;  %1497 = vrot.lane.b32.xlu1 %v4736_v11, %s4563_s17 }
 0x2f6   : > { %1445 = vrot.lane.b32.xlu0 %v4742_v13, %s4564_s18  ;;  %1543 = vrot.lane.b32.xlu1 %v4752_v15, %s4562_s0 }
 0x2fa   : > { %1499 = vrot.lane.b32.xlu0 %v4752_v15, %s4563_s17  ;;  %1447 = vrot.lane.b32.xlu1 %v4734_v10, %s4564_s18 }
 0x2fe   : > { %1401 = vrot.lane.b32.xlu0 %v4742_v13, %s4565_s19  ;;  %1451 = vrot.lane.b32.xlu1 %v4752_v15, %s4564_s18 }
 0x302   : > { %1407 = vrot.lane.b32.xlu0 %v4752_v15, %s4565_s19  ;;  %1403 = vrot.lane.b32.xlu1 %v4734_v10, %s4565_s19 }
 0x306   : > { %1359 = vrot.lane.b32.xlu0 %v4734_v10, %s4566_s20  ;;  %1357 = vrot.lane.b32.xlu1 %v4742_v13, %s4566_s20 }
 0x30a   : > { %1363 = vrot.lane.b32.xlu0 %v4752_v15, %s4566_s20  ;;  %1449 = vrot.lane.b32.xlu1 %v4736_v11, %s4564_s18 }
 0x30e   : > { %1315 = vrot.lane.b32.xlu0 %v4734_v10, %s6680_s23  ;;  %1313 = vrot.lane.b32.xlu1 %v4742_v13, %s6680_s23 }
 0x312   : > { %1319 = vrot.lane.b32.xlu0 %v4752_v15, %s6680_s23  ;;  %1405 = vrot.lane.b32.xlu1 %v4736_v11, %s4565_s19 }
 0x316   : > { %1271 = vrot.lane.b32.xlu0 %v4734_v10, %s6678_s24  ;;  %1269 = vrot.lane.b32.xlu1 %v4742_v13, %s6678_s24 }
 0x31a   : > { %1275 = vrot.lane.b32.xlu0 %v4752_v15, %s6678_s24  ;;  %1361 = vrot.lane.b32.xlu1 %v4736_v11, %s4566_s20 }
 0x31e   : > { %1227 = vrot.lane.b32.xlu0 %v4734_v10, %s6664_s25  ;;  %1225 = vrot.lane.b32.xlu1 %v4742_v13, %s6664_s25 }
 0x322   : > { %1231 = vrot.lane.b32.xlu0 %v4752_v15, %s6664_s25  ;;  %1317 = vrot.lane.b32.xlu1 %v4736_v11, %s6680_s23  ;;  %s6775_s23 = smov 72  }
 0x326   : > { %1183 = vrot.lane.b32.xlu0 %v4734_v10, %s6658_s26  ;;  %1181 = vrot.lane.b32.xlu1 %v4742_v13, %s6658_s26 }
 0x32a   : > { %1187 = vrot.lane.b32.xlu0 %v4752_v15, %s6658_s26  ;;  %1273 = vrot.lane.b32.xlu1 %v4736_v11, %s6678_s24  ;;  %s6776_s24 = smov 73  }
 0x32e   : > { %1139 = vrot.lane.b32.xlu0 %v4734_v10, %s6660_s27  ;;  %1137 = vrot.lane.b32.xlu1 %v4742_v13, %s6660_s27 }
 0x332   : > { %1143 = vrot.lane.b32.xlu0 %v4752_v15, %s6660_s27  ;;  %1229 = vrot.lane.b32.xlu1 %v4736_v11, %s6664_s25  ;;  %s6674_s25 = smov 120  }
 0x336   : > { %1095 = vrot.lane.b32.xlu0 %v4734_v10, %s6662_s28  ;;  %1093 = vrot.lane.b32.xlu1 %v4742_v13, %s6662_s28 }
 0x33a   : > { %1099 = vrot.lane.b32.xlu0 %v4752_v15, %s6662_s28  ;;  %1185 = vrot.lane.b32.xlu1 %v4736_v11, %s6658_s26  ;;  %s6668_s26 = smov 72  }
 0x33e   : > { %1051 = vrot.lane.b32.xlu0 %v4734_v10, %s6672_s29  ;;  %1049 = vrot.lane.b32.xlu1 %v4742_v13, %s6672_s29 }
 0x342   : > { %1055 = vrot.lane.b32.xlu0 %v4752_v15, %s6672_s29  ;;  %1141 = vrot.lane.b32.xlu1 %v4736_v11, %s6660_s27  ;;  %s6666_s27 = smov 73  }
 0x346   : > { %1007 = vrot.lane.b32.xlu0 %v4734_v10, %s6670_s30  ;;  %1005 = vrot.lane.b32.xlu1 %v4742_v13, %s6670_s30 }
 0x34a   : > { %1011 = vrot.lane.b32.xlu0 %v4752_v15, %s6670_s30  ;;  %1097 = vrot.lane.b32.xlu1 %v4736_v11, %s6662_s28  ;;  %s6773_s28 = smov 65  }
 0x34e   : > { %963 = vrot.lane.b32.xlu0 %v4734_v10, %s6668_s26  ;;  %961 = vrot.lane.b32.xlu1 %v4742_v13, %s6668_s26 }
 0x352   : > { %967 = vrot.lane.b32.xlu0 %v4752_v15, %s6668_s26  ;;  %1053 = vrot.lane.b32.xlu1 %v4736_v11, %s6672_s29  ;;  %s4504_s29 = sshll.u32 %s6833_s22, 6 }
 0x356   : > { %918 = vrot.lane.b32.xlu0 %v4734_v10, %s6666_s27  ;;  %916 = vrot.lane.b32.xlu1 %v4742_v13, %s6666_s27 }
 0x35a   : > { %922 = vrot.lane.b32.xlu0 %v4752_v15, %s6666_s27  ;;  %1009 = vrot.lane.b32.xlu1 %v4736_v11, %s6670_s30  ;;  %s6772_s30 = smov 64  }
 0x35c   : > { %v1542_v31 = vpop.permute.xlu0 %1541  ;;  %v1540_v32 = vpop.permute.xlu1 %1539 }
 0x35d   : > { %v1547_v33 = vsel %vm1545_vm3, %v1540_v32, %v1542_v31 }
 0x35e   : > { %920 = vrot.lane.b32.xlu0 %v4736_v11, %s6666_s27  ;;  %965 = vrot.lane.b32.xlu1 %v4736_v11, %s6668_s26  ;;  %v1574_v34 = vmul.f32 %v1560_v30, %v1547_v33  ;;  %s6676_s27 = smov 119   ;;  %v1424_v30 = vrot.slane %v4945_v12, %v4856_v19 }
 0x360   : > { %v1496_v37 = vpop.permute.xlu0 %1495  ;;  %2068 = vmatprep.subr.mxu0 %v1574_v34  ;;  %v1538_v38 = vpop.permute.xlu1 %1537 }
 0x361   : > { %v1548_v41 = vsel %vm1545_vm3, %v1538_v38, %v1540_v32 }
 0x362   : > { %v1573_v42 = vmul.f32 %v1556_v35, %v1548_v41  ;;  %1629 = vrot.lane.b32.xlu0 %v4736_v11, %s6676_s27  ;;  %1627 = vrot.lane.b32.xlu1 %v4734_v10, %s6676_s27 }
 0x364   : > { %v1494_v45 = vpop.permute.xlu0 %1493  ;;  %2069 = vmatpush1.msra.mxu0 %v1573_v42  ;;  %v1498_v46 = vpop.permute.xlu1 %1497 }
 0x365   : > { %v1504_v47 = vsel %vm1501_vm4, %v1494_v45, %v1496_v37  ;;  %v1503_v48 = vsel %vm1501_vm4, %v1496_v37, %v1498_v46 }
 0x366   : > { %v1529_v50 = vmul.f32 %v1512_v43, %v1504_v47  ;;  %1583 = vrot.lane.b32.xlu0 %v4734_v10, %s6674_s25  ;;  %1625 = vrot.lane.b32.xlu1 %v4742_v13, %s6676_s27  ;;  %v1530_v51 = vmul.f32 %v1516_v44, %v1503_v48  ;;  %v1472_v44 = vrot.slane %v4905_v53, %v4879_v39 }
 0x368   : > { %v1446_v55 = vpop.permute.xlu0 %1445  ;;  %2070 = vmatprep.subr.mxu0 %v1530_v51  ;;  %v1544_v56 = vpop.permute.xlu1 %1543 }
 0x369   : > { %v1546_v57 = vsel %vm1545_vm3, %v1542_v31, %v1544_v56  ;;  %v1549_v58 = vsel %vm1545_vm3, %v1544_v56, %v1538_v38  ;;  %2071 = vmatpush1.msra.mxu0 %v1529_v50  ;;  %v4959_v31 = vld [vmem:[%s6642_s1 + $0x22] ss:$8 sm:$0xf] }
 0x36a   : > { %v1575_v61 = vmul.f32 %v1564_v49, %v1546_v57  ;;  %1581 = vrot.lane.b32.xlu0 %v4742_v13, %s6674_s25  ;;  %1585 = vrot.lane.b32.xlu1 %v4736_v11, %s6674_s25  ;;  %v1576_v62 = vmul.f32 %v1568_v52, %v1549_v58  ;;  %v1376_v42 = vrot.slane %v4959_v31, %v4865_v21 }
 0x36b   : > { %2072 = vmatprep.subr.mxu0 %v4734_v10  ;;  %v2058_v10 = vld [vmem:[%s6650_s9] sm:$0xff] }
 0x36c   : > { %2073 = vmatpush1.msra.mxu0 %v4742_v13  ;;  %v1500_v1 = vpop.permute.xlu0 %1499  ;;  %2139 = vmatprep.subr.mxu1 %v1576_v62  ;;  %v1448_v2 = vpop.permute.xlu1 %1447  ;;  %v1432_v62 = vrot.slane %v4945_v12, %v4881_v40 }
 0x36d   : > { %v1502_v3 = vsel %vm1501_vm4, %v1498_v46, %v1500_v1  ;;  %v1505_v4 = vsel %vm1501_vm4, %v1500_v1, %v1494_v45  ;;  %v1456_v5 = vsel %vm1453_vm6, %v1446_v55, %v1448_v2  ;;  %2140 = vmatpush1.msra.mxu1 %v1575_v61  ;;  %v1476_v45 = vrot.slane %v4905_v53, %v4881_v40  ;;  %v4979_v46 = vld [vmem:[%s6642_s1 + $0x21] ss:$8 sm:$0xf] }
 0x36e   : > { %v1531_v7 = vmul.f32 %v1520_v59, %v1502_v3  ;;  %1587 = vrot.lane.b32.xlu0 %v4752_v15, %s6674_s25  ;;  %1631 = vrot.lane.b32.xlu1 %v4752_v15, %s6676_s27  ;;  %v1482_v8 = vmul.f32 %v1468_v60, %v1456_v5  ;;  %v1532_v9 = vmul.f32 %v1524_v63, %v1505_v4  ;;  %v5001_v63 = vld [vmem:[%s6642_s1 + $0x20] ss:$8 sm:$0xf]  ;;  %s6774_s27 = smov 71  }
 0x36f   : > { %v1332_v59 = vrot.slane %v4979_v46, %v4865_v21  ;;  %v1428_v61 = vrot.slane %v4945_v12, %v4879_v39 }
 0x370   : > { %v1402_v13 = vpop.permute.xlu0 %1401  ;;  %2074 = vmatprep.subr.mxu0 %v1482_v8  ;;  %2141 = vmatprep.subr.mxu1 %v1532_v9  ;;  %v1452_v14 = vpop.permute.xlu1 %1451  ;;  %v1292_v9 = vrot.slane %v5001_v63, %v4856_v19 }
 0x371   : > { %v1457_v16 = vsel %vm1453_vm6, %v1452_v14, %v1446_v55  ;;  %2142 = vmatpush1.msra.mxu1 %v1531_v7  ;;  %v1336_v55 = vrot.slane %v4979_v46, %v4856_v19 }
 0x372   : > { %v1481_v17 = vmul.f32 %v1464_v6, %v1457_v16  ;;  %2061 = vperm.xlu1 %4533, %v2058_v10   ;;  %2143 = vmatprep.subr.mxu1 %v4752_v15 }
 0x373   : > { %2144 = vmatpush1.msra.mxu1 %v4736_v11  ;;  %v1380_v11 = vrot.slane %v4959_v31, %v4856_v19 }
 0x374   : > { %v1408_v32 = vpop.permute.xlu0 %1407  ;;  %2075 = vmatpush1.msra.mxu0 %v1481_v17  ;;  %v1404_v33 = vpop.permute.xlu1 %1403  ;;  %v1384_v17 = vrot.slane %v4959_v31, %v4879_v39 }
 0x375   : > { %v1413_v15 = vsel %vm1409_vm7, %v1408_v32, %v1402_v13  ;;  %v1412_v34 = vsel %vm1409_vm7, %v1402_v13, %v1404_v33 }
 0x376   : > { %v1437_v35 = vmul.f32 %v1420_v20, %v1413_v15  ;;  %v1438_v36 = vmul.f32 %v1424_v30, %v1412_v34  ;;  %v1388_v20 = vrot.slane %v4959_v31, %v4881_v40  ;;  %v5026_v30 = vld [vmem:[%s6642_s1 + $0x7] ss:$8 sm:$0xf] }
 0x378   : > { %v1360_v37 = vpop.permute.xlu0 %1359  ;;  %2076 = vmatprep.subr.mxu0 %v1438_v36  ;;  %v1358_v38 = vpop.permute.xlu1 %1357 }
 0x379   : > { %v1368_v41 = vsel %vm1365_vm8, %v1358_v38, %v1360_v37  ;;  %2077 = vmatpush1.msra.mxu0 %v1437_v35 }
 0x37a   : > { %v1394_v43 = vmul.f32 %v1380_v11, %v1368_v41 }
 0x37c   : > { %v1364_v47 = vpop.permute.xlu0 %1363  ;;  %2078 = vmatprep.subr.mxu0 %v1394_v43  ;;  %v1450_v48 = vpop.permute.xlu1 %1449 }
 0x37d   : > { %v1369_v49 = vsel %vm1365_vm8, %v1364_v47, %v1358_v38  ;;  %v1454_v50 = vsel %vm1453_vm6, %v1450_v48, %v1452_v14  ;;  %v1455_v51 = vsel %vm1453_vm6, %v1448_v2, %v1450_v48  ;;  %v1288_v14 = vrot.slane %v5001_v63, %v4865_v21  ;;  %v5054_v48 = vld [vmem:[%s6642_s1 + $0x6] ss:$8 sm:$0xf] }
 0x37e   : > { %v1393_v52 = vmul.f32 %v1376_v42, %v1369_v49  ;;  %v1483_v53 = vmul.f32 %v1472_v44, %v1455_v51  ;;  %v1484_v54 = vmul.f32 %v1476_v45, %v1454_v50  ;;  %v1248_v38 = vrot.slane %v5026_v30, %v4856_v19 }
 0x37f   : > { %v1340_v45 = vrot.slane %v4979_v46, %v4879_v39 }
 0x380   : > { %v1316_v56 = vpop.permute.xlu0 %1315  ;;  %2079 = vmatpush1.msra.mxu0 %v1393_v52  ;;  %2145 = vmatprep.subr.mxu1 %v1484_v54  ;;  %v1314_v57 = vpop.permute.xlu1 %1313 }
 0x381   : > { %v1324_v58 = vsel %vm1321_vm9, %v1314_v57, %v1316_v56  ;;  %2146 = vmatpush1.msra.mxu1 %v1483_v53 }
 0x382   : > { %v1350_v60 = vmul.f32 %v1336_v55, %v1324_v58 }
 0x384   : > { %v1320_v1 = vpop.permute.xlu0 %1319  ;;  %2080 = vmatprep.subr.mxu0 %v1350_v60  ;;  %v1406_v2 = vpop.permute.xlu1 %1405 }
 0x385   : > { %v1325_v3 = vsel %vm1321_vm9, %v1320_v1, %v1314_v57  ;;  %v1410_v4 = vsel %vm1409_vm7, %v1406_v2, %v1408_v32  ;;  %v1411_v5 = vsel %vm1409_vm7, %v1404_v33, %v1406_v2  ;;  %v1204_v57 = vrot.slane %v5054_v48, %v4856_v19  ;;  %v5082_v2 = vld [vmem:[%s6642_s1 + $0x5] ss:$8 sm:$0xf] }
 0x386   : > { %v1349_v6 = vmul.f32 %v1332_v59, %v1325_v3  ;;  %v1439_v7 = vmul.f32 %v1428_v61, %v1411_v5  ;;  %v1440_v8 = vmul.f32 %v1432_v62, %v1410_v4  ;;  %v1296_v62 = vrot.slane %v5001_v63, %v4879_v39 }
 0x388   : > { %v1272_v10 = vpop.permute.xlu0 %1271  ;;  %2081 = vmatpush1.msra.mxu0 %v1349_v6  ;;  %2147 = vmatprep.subr.mxu1 %v1440_v8  ;;  %v1270_v12 = vpop.permute.xlu1 %1269 }
 0x389   : > { %v5014_v13 = vsel %vm1277_vm10, %v1270_v12, %v1272_v10  ;;  %2148 = vmatpush1.msra.mxu1 %v1439_v7 }
 0x38a   : > { %v1306_v16 = vmul.f32 %v1292_v9, %v5014_v13 }
 0x38c   : > { %v1276_v32 = vpop.permute.xlu0 %1275  ;;  %2082 = vmatprep.subr.mxu0 %v1306_v16  ;;  %v1362_v33 = vpop.permute.xlu1 %1361 }
 0x38d   : > { %v5030_v15 = vsel %vm1277_vm10, %v1276_v32, %v1270_v12  ;;  %v1366_v34 = vsel %vm1365_vm8, %v1362_v33, %v1364_v47  ;;  %v1367_v35 = vsel %vm1365_vm8, %v1360_v37, %v1362_v33  ;;  %v1244_v37 = vrot.slane %v5026_v30, %v4865_v21 }
 0x38e   : > { %v1305_v31 = vmul.f32 %v1288_v14, %v5030_v15  ;;  %v1395_v36 = vmul.f32 %v1384_v17, %v1367_v35  ;;  %v1396_v11 = vmul.f32 %v1388_v20, %v1366_v34  ;;  %v1344_v47 = vrot.slane %v4979_v46, %v4881_v40  ;;  %v5116_v34 = vld [vmem:[%s6642_s1 + $0x4] ss:$8 sm:$0xf] }
 0x38f   : > { %v1160_v12 = vrot.slane %v5082_v2, %v4856_v19  ;;  %v1256_v33 = vrot.slane %v5026_v30, %v4881_v40 }
 0x390   : > { %v1228_v41 = vpop.permute.xlu0 %1227  ;;  %2083 = vmatpush1.msra.mxu0 %v1305_v31  ;;  %2149 = vmatprep.subr.mxu1 %v1396_v11  ;;  %v1226_v42 = vpop.permute.xlu1 %1225 }
 0x391   : > { %v5042_v43 = vsel %vm1233_vm11, %v1226_v42, %v1228_v41  ;;  %2150 = vmatpush1.msra.mxu1 %v1395_v36 }
 0x392   : > { %v1262_v44 = vmul.f32 %v1248_v38, %v5042_v43 }
 0x394   : > { %v1232_v49 = vpop.permute.xlu0 %1231  ;;  %2084 = vmatprep.subr.mxu0 %v1262_v44  ;;  %v1318_v50 = vpop.permute.xlu1 %1317  ;;  %v1116_v44 = vrot.slane %v5116_v34, %v4856_v19 }
 0x395   : > { %v5058_v51 = vsel %vm1233_vm11, %v1232_v49, %v1226_v42  ;;  %v1322_v52 = vsel %vm1321_vm9, %v1318_v50, %v1320_v1  ;;  %v1323_v53 = vsel %vm1321_vm9, %v1316_v56, %v1318_v50  ;;  %v1200_v56 = vrot.slane %v5054_v48, %v4865_v21 }
 0x396   : > { %v1261_v46 = vmul.f32 %v1244_v37, %v5058_v51  ;;  %v1351_v54 = vmul.f32 %v1340_v45, %v1323_v53  ;;  %v1352_v55 = vmul.f32 %v1344_v47, %v1322_v52  ;;  %v1300_v1 = vrot.slane %v5001_v63, %v4881_v40 }
 0x397   : > { %v1208_v52 = vrot.slane %v5054_v48, %v4879_v39  ;;  %v1212_v53 = vrot.slane %v5054_v48, %v4881_v40 }
 0x398   : > { %v1184_v58 = vpop.permute.xlu0 %1183  ;;  %2085 = vmatpush1.msra.mxu0 %v1261_v46  ;;  %2151 = vmatprep.subr.mxu1 %v1352_v55  ;;  %v1182_v59 = vpop.permute.xlu1 %1181  ;;  %v5150_v46 = vld [vmem:[%s6642_s1 + $0x3] ss:$8 sm:$0xf] }
 0x399   : > { %v5070_v60 = vsel %vm1189_vm12, %v1182_v59, %v1184_v58  ;;  %2152 = vmatpush1.msra.mxu1 %v1351_v54 }
 0x39a   : > { %v1218_v61 = vmul.f32 %v1204_v57, %v5070_v60 }
 0x39c   : > { %v1188_v3 = vpop.permute.xlu0 %1187  ;;  %2086 = vmatprep.subr.mxu0 %v1218_v61  ;;  %v1274_v4 = vpop.permute.xlu1 %1273 }
 0x39d   : > { %v5086_v5 = vsel %vm1189_vm12, %v1188_v3, %v1182_v59  ;;  %v5090_v6 = vsel %vm1277_vm10, %v1274_v4, %v1276_v32  ;;  %v5094_v7 = vsel %vm1277_vm10, %v1272_v10, %v1274_v4  ;;  %v1156_v10 = vrot.slane %v5082_v2, %v4865_v21 }
 0x39e   : > { %v1217_v63 = vmul.f32 %v1200_v56, %v5086_v5  ;;  %v1307_v8 = vmul.f32 %v1296_v62, %v5094_v7  ;;  %v1308_v9 = vmul.f32 %v1300_v1, %v5090_v6  ;;  %v1252_v32 = vrot.slane %v5026_v30, %v4879_v39 }
 0x39f   : > { %v1072_v1 = vrot.slane %v5150_v46, %v4856_v19 }
 0x3a0   : > { %v1140_v14 = vpop.permute.xlu0 %1139  ;;  %2087 = vmatpush1.msra.mxu0 %v1217_v63  ;;  %2153 = vmatprep.subr.mxu1 %v1308_v9  ;;  %v1138_v16 = vpop.permute.xlu1 %1137  ;;  %v1068_v63 = vrot.slane %v5150_v46, %v4865_v21  ;;  %v1164_v9 = vrot.slane %v5082_v2, %v4879_v39 }
 0x3a1   : > { %v5104_v17 = vsel %vm1145_vm13, %v1138_v16, %v1140_v14  ;;  %2154 = vmatpush1.msra.mxu1 %v1307_v8 }
 0x3a2   : > { %v1174_v20 = vmul.f32 %v1160_v12, %v5104_v17  ;;  %v1168_v12 = vrot.slane %v5082_v2, %v4881_v40 }
 0x3a4   : > { %v1144_v35 = vpop.permute.xlu0 %1143  ;;  %2088 = vmatprep.subr.mxu0 %v1174_v20  ;;  %v1230_v31 = vpop.permute.xlu1 %1229 }
 0x3a5   : > { %v5120_v36 = vsel %vm1145_vm13, %v1144_v35, %v1138_v16  ;;  %v5124_v11 = vsel %vm1233_vm11, %v1230_v31, %v1232_v49  ;;  %v5128_v38 = vsel %vm1233_vm11, %v1228_v41, %v1230_v31  ;;  %v1112_v41 = vrot.slane %v5116_v34, %v4865_v21  ;;  %v5187_v16 = vld [vmem:[%s6642_s1 + $0x2] ss:$8 sm:$0xf] }
 0x3a6   : > { %v1173_v30 = vmul.f32 %v1156_v10, %v5120_v36  ;;  %v1263_v42 = vmul.f32 %v1252_v32, %v5128_v38  ;;  %v1264_v37 = vmul.f32 %v1256_v33, %v5124_v11  ;;  %v1036_v28 = vrot.slane %v5187_v16, %v4881_v40 }
 0x3a8   : > { %v1096_v45 = vpop.permute.xlu0 %1095  ;;  %2089 = vmatpush1.msra.mxu0 %v1173_v30  ;;  %2155 = vmatprep.subr.mxu1 %v1264_v37  ;;  %v1094_v47 = vpop.permute.xlu1 %1093  ;;  %v1028_v37 = vrot.slane %v5187_v16, %v4856_v19 }
 0x3a9   : > { %v5138_v49 = vsel %vm6682_vm14, %v1094_v47, %v1096_v45  ;;  %2156 = vmatpush1.msra.mxu1 %v1263_v42 }
 0x3aa   : > { %v1130_v50 = vmul.f32 %v1116_v44, %v5138_v49 }
 0x3ac   : > { %v1100_v54 = vpop.permute.xlu0 %1099  ;;  %2090 = vmatprep.subr.mxu0 %v1130_v50  ;;  %v1186_v55 = vpop.permute.xlu1 %1185  ;;  %v1120_v50 = vrot.slane %v5116_v34, %v4879_v39 }
 0x3ad   : > { %v5154_v57 = vsel %vm6682_vm14, %v1100_v54, %v1094_v47  ;;  %v5158_v59 = vsel %vm1189_vm12, %v1186_v55, %v1188_v3  ;;  %v5162_v56 = vsel %vm1189_vm12, %v1184_v58, %v1186_v55  ;;  %v1024_v47 = vrot.slane %v5187_v16, %v4865_v21 }
 0x3ae   : > { %v1129_v48 = vmul.f32 %v1112_v41, %v5154_v57  ;;  %v1219_v61 = vmul.f32 %v1208_v52, %v5162_v56  ;;  %v1220_v62 = vmul.f32 %v1212_v53, %v5158_v59  ;;  %v1124_v52 = vrot.slane %v5116_v34, %v4881_v40  ;;  %v5224_v53 = vld [vmem:[%s6642_s1 + $0x1] ss:$8 sm:$0xf] }
 0x3b0   : > { %v5170_v4 = vpop.permute.xlu0 %1051  ;;  %2091 = vmatpush1.msra.mxu0 %v1129_v48  ;;  %2157 = vmatprep.subr.mxu1 %v1220_v62  ;;  %v1050_v3 = vpop.permute.xlu1 %1049 }
 0x3b1   : > { %v5175_v58 = vsel %vm1057_vm15, %v1050_v3, %v5170_v4  ;;  %2158 = vmatpush1.msra.mxu1 %v1219_v61 }
 0x3b2   : > { %v1086_v8 = vmul.f32 %v1072_v1, %v5175_v58 }
 0x3b4   : > { %v1056_v10 = vpop.permute.xlu0 %1055  ;;  %2092 = vmatprep.subr.mxu0 %v1086_v8  ;;  %v1142_v20 = vpop.permute.xlu1 %1141  ;;  %v984_v8 = vrot.slane %v5224_v53, %v4856_v19 }
 0x3b5   : > { %v5191_v32 = vsel %vm1057_vm15, %v1056_v10, %v1050_v3  ;;  %v5195_v33 = vsel %vm1145_vm13, %v1142_v20, %v1144_v35  ;;  %v5199_v31 = vsel %vm1145_vm13, %v1140_v14, %v1142_v20 }
 0x3b6   : > { %v1085_v2 = vmul.f32 %v1068_v63, %v5191_v32  ;;  %v1175_v30 = vmul.f32 %v1164_v9, %v5199_v31  ;;  %v1176_v42 = vmul.f32 %v1168_v12, %v5195_v33  ;;  %v980_v12 = vrot.slane %v5224_v53, %v4865_v21 }
 0x3b8   : > { %v5207_v44 = vpop.permute.xlu0 %1007  ;;  %2093 = vmatpush1.msra.mxu0 %v1085_v2  ;;  %2159 = vmatprep.subr.mxu1 %v1176_v42  ;;  %v1006_v35 = vpop.permute.xlu1 %1005  ;;  %v1076_v2 = vrot.slane %v5150_v46, %v4879_v39  ;;  %v5264_v42 = vld [vmem:[%s6642_s1] ss:$8 sm:$0xf] }
 0x3b9   : > { %v5212_v14 = vsel %vm1013_vm0, %v1006_v35, %v5207_v44  ;;  %2160 = vmatpush1.msra.mxu1 %v1175_v30  ;;  %v1080_v30 = vrot.slane %v5150_v46, %v4881_v40  ;;  %v5281_v46 = vld [vmem:[%s6642_s1 + $0x60] ss:$8 sm:$0xf] }
 0x3ba   : > { %v1042_v41 = vmul.f32 %v1028_v37, %v5212_v14  ;;  %v5269_v37 = vld [vmem:[%s6642_s1 + $0x62] ss:$8 sm:$0xf]  ;;  %v1865_v26 = vrot.slane %v5281_v46, %v4856_v19 }
 0x3bc   : > { %v5226_v55 = vpop.permute.xlu0 %1011  ;;  %2094 = vmatprep.subr.mxu0 %v1042_v41  ;;  %v1098_v48 = vpop.permute.xlu1 %1097 }
 0x3bd   : > { %v5231_v61 = vsel %vm1013_vm0, %v5226_v55, %v1006_v35  ;;  %v5235_v62 = vsel %vm6682_vm14, %v1098_v48, %v1100_v54  ;;  %v5239_v34 = vsel %vm6682_vm14, %v1096_v45, %v1098_v48  ;;  %v5274_v35 = vld [vmem:[%s6642_s1 + $0x61] ss:$8 sm:$0xf]  ;;  %vm6695_vm14 = vcmp.lt.s32.totalorder %v4854_v18, 73 }
 0x3be   : > { %6728 = vst [vmem:[#allocation11_spill] sm:$0xff] %v5231_v61  ;;  %v1041_v1 = vmul.f32 %v1024_v47, %v5231_v61  ;;  %v1131_v3 = vmul.f32 %v1120_v50, %v5239_v34  ;;  %v1132_v63 = vmul.f32 %v1124_v52, %v5235_v62 }
 0x3c0   : > { %v5247_v9 = vpop.permute.xlu0 %963  ;;  %2095 = vmatpush1.msra.mxu0 %v1041_v1  ;;  %2161 = vmatprep.subr.mxu1 %v1132_v63  ;;  %v962_v54 = vpop.permute.xlu1 %961  ;;  %v5301_v1 = vld [vmem:[%s6642_s1 + $0x47] ss:$8 sm:$0xf] }
 0x3c1   : > { %v5252_v45 = vsel %vm6696_vm1, %v962_v54, %v5247_v9  ;;  %2162 = vmatpush1.msra.mxu1 %v1131_v3  ;;  %v1834_v23 = vrot.slane %v5301_v1, %v4856_v19 }
 0x3c2   : > { %v998_v20 = vmul.f32 %v984_v8, %v5252_v45 }
 0x3c4   : > { %v5276_v47 = vpop.permute.xlu0 %967  ;;  %2096 = vmatprep.subr.mxu0 %v998_v20  ;;  %v1054_v41 = vpop.permute.xlu1 %1053  ;;  %v1927_v20 = vrot.slane %v5269_v37, %v4856_v19 }
 0x3c5   : > { %v5286_v50 = vsel %vm6696_vm1, %v5276_v47, %v962_v54  ;;  %v5290_v52 = vsel %vm1057_vm15, %v1054_v41, %v1056_v10  ;;  %v5295_v48 = vsel %vm1057_vm15, %v5170_v4, %v1054_v41  ;;  %v940_v10 = vrot.slane %v5264_v42, %v4856_v19 }
 0x3c6   : > { %6729 = vst [vmem:[#allocation12_spill] sm:$0xff] %v5286_v50  ;;  %v997_v3 = vmul.f32 %v980_v12, %v5286_v50  ;;  %v1087_v63 = vmul.f32 %v1076_v2, %v5295_v48  ;;  %v1088_v8 = vmul.f32 %v1080_v30, %v5290_v52  ;;  %v1923_v4 = vrot.slane %v5269_v37, %v4865_v21  ;;  %v5323_v30 = vld [vmem:[%s6642_s1 + $0x46] ss:$8 sm:$0xf] }
 0x3c7   : > { %v5334_v2 = vld [vmem:[%s6642_s1 + $0x45] ss:$8 sm:$0xf]  ;;  %v1032_v12 = vrot.slane %v5187_v16, %v4879_v39  ;;  %v5364_v16 = vld [vmem:[%s6642_s1 + $0x44] ss:$8 sm:$0xf]  ;;  %v988_v50 = vrot.slane %v5224_v53, %v4879_v39  ;;  %v1941_v61 = vmul.f32 %v1927_v20, %v5094_v7  ;;  %v1803_v7 = vrot.slane %v5323_v30, %v4856_v19 }
 0x3c8   : > { %v919_v0 = vpop.permute.xlu0 %918  ;;  %2097 = vmatpush1.msra.mxu0 %v997_v3  ;;  %2163 = vmatprep.subr.mxu1 %v1088_v8  ;;  %v917_v54 = vpop.permute.xlu1 %916  ;;  %v936_v8 = vrot.slane %v5264_v42, %v4865_v21  ;;  %v1896_v3 = vrot.slane %v5274_v35, %v4856_v19  ;;  %v1940_v20 = vmul.f32 %v1923_v4, %v5014_v13 }
 0x3c9   : > { %v5338_v29 = vsel %vm6695_vm14, %v917_v54, %v919_v0  ;;  %2164 = vmatpush1.msra.mxu1 %v1087_v63  ;;  %v944_v13 = vrot.slane %v5264_v42, %v4879_v39 }
 0x3ca   : > { %v954_v41 = vmul.f32 %v940_v10, %v5338_v29 }
 0x3cc   : > { %v923_v25 = vpop.permute.xlu0 %922  ;;  %2098 = vmatprep.subr.mxu0 %v954_v41  ;;  %v1010_v63 = vpop.permute.xlu1 %1009 }
 0x3cd   : > { %v5372_v10 = vsel %vm6695_vm14, %v923_v25, %v917_v54  ;;  %v5377_v27 = vsel %vm1013_vm0, %v1010_v63, %v5226_v55  ;;  %v5382_v41 = vsel %vm1013_vm0, %v5207_v44, %v1010_v63  ;;  %v992_v44 = vrot.slane %v5224_v53, %v4881_v40 }
 0x3ce   : > { %v953_v22 = vmul.f32 %v936_v8, %v5372_v10  ;;  %v1043_v24 = vmul.f32 %v1032_v12, %v5382_v41  ;;  %v1044_v54 = vmul.f32 %v1036_v28, %v5377_v27  ;;  %v5403_v28 = vld [vmem:[%s6642_s1 + $0x43] ss:$8 sm:$0xf] }
 0x3cf   : > { %v1706_v53 = vrot.slane %v5403_v28, %v4865_v21 }
 0x3d0   : > { %v921_v12 = vpop.permute.xlu0 %920  ;;  %2099 = vmatpush1.msra.mxu0 %v953_v22  ;;  %2165 = vmatprep.subr.mxu1 %v1044_v54  ;;  %v966_v55 = vpop.permute.xlu1 %965  ;;  %v948_v22 = vrot.slane %v5264_v42, %v4881_v40  ;;  %v5425_v54 = vld [vmem:[%s6642_s1 + $0x42] ss:$8 sm:$0xf] }
 0x3d1   : > { %v5413_v63 = vsel %vm6696_vm1, %v966_v55, %v5276_v47  ;;  %v5418_v8 = vsel %vm6696_vm1, %v5247_v9, %v966_v55  ;;  %2110 = vmatprep.subr.mxu0 %v1941_v61  ;;  %v5431_v47 = vsel %vm6695_vm14, %v921_v12, %v923_v25  ;;  %2166 = vmatpush1.msra.mxu1 %v1043_v24  ;;  %vm6697_vm1 = vcmp.lt.s32.totalorder %v4854_v18, 120 }
 0x3d2   : > { %v999_v4 = vmul.f32 %v988_v50, %v5418_v8  ;;  %v1910_v61 = vmul.f32 %v1896_v3, %v5128_v38  ;;  %v6730_v9 = vrot.slane %v5274_v35, %v4865_v21  ;;  %v5443_v42 = vsel %vm6695_vm14, %v919_v0, %v921_v12  ;;  %2111 = vmatpush2.msra.mxu0 %v1940_v20 }
 0x3d3   : > { %v1000_v25 = vmul.f32 %v992_v44, %v5413_v63  ;;  %v1776_v24 = vrot.slane %v5334_v2, %v4879_v39  ;;  %v1772_v3 = vrot.slane %v5334_v2, %v4856_v19  ;;  %v1718_v0 = vrot.slane %v5403_v28, %v4881_v40 }
 0x3d4   : > { %v1909_v55 = vmul.f32 %v6730_v9, %v5042_v43  ;;  %2112 = vmatprep.subr.mxu0 %v1910_v61  ;;  %v5448_v38 = vpop.permute.xlu0 %1629  ;;  %v5450_v50 = vpop.permute.xlu1 %1627  ;;  %v1879_v43 = vmul.f32 %v1865_v26, %v5162_v56  ;;  %v6731_v44 = vrot.slane %v5281_v46, %v4865_v21  ;;  %v1675_v20 = vrot.slane %v5425_v54, %v4865_v21 }
 0x3d5   : > { %2167 = vmatprep.subr.mxu1 %v1000_v25  ;;  %v956_v61 = vmul.f32 %v948_v22, %v5431_v47  ;;  %v1745_v26 = vrot.slane %v5364_v16, %v4879_v39  ;;  %v955_v56 = vmul.f32 %v944_v13, %v5443_v42  ;;  %v1848_v9 = vmul.f32 %v1834_v23, %v5199_v31 }
 0x3d6   : > { %v1878_v12 = vmul.f32 %v6731_v44, %v5070_v60  ;;  %2113 = vmatpush2.msra.mxu0 %v1909_v55  ;;  %2168 = vmatpush1.msra.mxu1 %v999_v4  ;;  %v6732_v60 = vrot.slane %v5301_v1, %v4865_v21  ;;  %v6733_v22 = vrot.slane %v5269_v37, %v4881_v40  ;;  %vm1633_vm14 = vcmp.lt.s32.totalorder %v4854_v18, 119 }
 0x3d7   : > { %2114 = vmatprep.subr.mxu0 %v1879_v43  ;;  %2169 = vmatprep.subr.mxu1 %v956_v61  ;;  %v1741_v25 = vrot.slane %v5364_v16, %v4856_v19  ;;  %v6734_v13 = vrot.slane %v5269_v37, %v4879_v39  ;;  %v1714_v31 = vrot.slane %v5403_v28, %v4879_v39 }
 0x3d8   : > { %v1847_v44 = vmul.f32 %v6732_v60, %v5104_v17  ;;  %2115 = vmatpush2.msra.mxu0 %v1878_v12  ;;  %v1943_v55 = vmul.f32 %v6733_v22, %v5030_v15  ;;  %2170 = vmatpush1.msra.mxu1 %v955_v56  ;;  %v5487_v17 = vld [vmem:[%s6642_s1 + $0x41] ss:$8 sm:$0xf]  ;;  %v5489_v4 = vpop.permute.xlu1 %1625  ;;  %v1817_v15 = vmul.f32 %v1803_v7, %v5239_v34 }
 0x3d9   : > { %v1942_v23 = vmul.f32 %v6734_v13, %v5090_v6  ;;  %2116 = vmatprep.subr.mxu0 %v1848_v9  ;;  %v6735_v43 = vrot.slane %v5323_v30, %v4865_v21  ;;  %v1584_v6 = vpop.permute.xlu0 %1583  ;;  %v6736_v12 = vrot.slane %v5274_v35, %v4881_v40  ;;  %v1710_v56 = vrot.slane %v5403_v28, %v4856_v19  ;;  %v5510_v9 = vld [vmem:[%s6642_s1 + $0x40] ss:$8 sm:$0xf] }
 0x3da   : > { %2117 = vmatpush2.msra.mxu0 %v1847_v44  ;;  %2181 = vmatprep.subr.mxu1 %v1943_v55  ;;  %v6737_v34 = vrot.slane %v5274_v35, %v4879_v39  ;;  %v6738_v60 = vrot.slane %v5334_v2, %v4865_v21  ;;  %v1755_v55 = vmul.f32 %v1741_v25, %v5382_v41 }
 0x3db   : > { %v1816_v37 = vmul.f32 %v6735_v43, %v5138_v49  ;;  %v1912_v61 = vmul.f32 %v6736_v12, %v5058_v51  ;;  %2118 = vmatprep.subr.mxu0 %v1817_v15  ;;  %2182 = vmatpush2.msra.mxu1 %v1942_v23  ;;  %v1786_v49 = vmul.f32 %v1772_v3, %v5295_v48 }
 0x3dc   : > { %v1911_v7 = vmul.f32 %v6737_v34, %v5124_v11  ;;  %v1679_v51 = vrot.slane %v5425_v54, %v4856_v19  ;;  %v1785_v44 = vmul.f32 %v6738_v60, %v5175_v58  ;;  %v6739_v11 = vrot.slane %v5281_v46, %v4881_v40 }
 0x3dd   : > { %2119 = vmatpush2.msra.mxu0 %v1816_v37  ;;  %2183 = vmatprep.subr.mxu1 %v1912_v61  ;;  %v1648_v48 = vrot.slane %v5487_v17, %v4856_v19  ;;  %v6740_v3 = vrot.slane %v5281_v46, %v4879_v39  ;;  %v1644_v58 = vrot.slane %v5487_v17, %v4865_v21 }
 0x3de   : > { %v1881_v35 = vmul.f32 %v6739_v11, %v5086_v5  ;;  %2120 = vmatprep.subr.mxu0 %v1786_v49  ;;  %2184 = vmatpush2.msra.mxu1 %v1911_v7  ;;  %v6741_v5 = vrot.slane %v5364_v16, %v4865_v21  ;;  %v1600_v23 = vrot.slane %v5510_v9, %v4865_v21  ;;  %v6747_v7 = vld [vmem:[#allocation11_spill] sm:$0xff] }
 0x3df   : > { %v1880_v22 = vmul.f32 %v6740_v3, %v5158_v59  ;;  %2121 = vmatpush2.msra.mxu0 %v1785_v44  ;;  %v5538_v59 = vpop.permute.xlu1 %1585  ;;  %v6742_v46 = vrot.slane %v5301_v1, %v4881_v40  ;;  %v6743_v41 = vrot.slane %v5301_v1, %v4879_v39  ;;  %v1604_v43 = vrot.slane %v5510_v9, %v4856_v19  ;;  %v6749_v44 = vld [vmem:[#allocation12_spill] sm:$0xff] }
 0x3e0   : > { %v1754_v13 = vmul.f32 %v6741_v5, %v5212_v14  ;;  %2185 = vmatprep.subr.mxu1 %v1881_v35  ;;  %2122 = vmatprep.subr.mxu0 %v1755_v55  ;;  %v1724_v14 = vmul.f32 %v1710_v56, %v5418_v8  ;;  %v1723_v37 = vmul.f32 %v1706_v53, %v5252_v45 }
 0x3e1   : > { %v1850_v15 = vmul.f32 %v6742_v46, %v5120_v36  ;;  %v1849_v25 = vmul.f32 %v6743_v41, %v5195_v33  ;;  %2186 = vmatpush2.msra.mxu1 %v1880_v22  ;;  %v1635_v36 = vsel %vm1633_vm14, %v5450_v50, %v5448_v38  ;;  %v1582_v33 = vpop.permute.xlu0 %1581  ;;  %v6744_v1 = vrot.slane %v5323_v30, %v4881_v40 }
 0x3e2   : > { %2123 = vmatpush2.msra.mxu0 %v1754_v13  ;;  %v6745_v12 = vrot.slane %v5323_v30, %v4879_v39  ;;  %v1636_v45 = vsel %vm1633_vm14, %v5489_v4, %v5450_v50  ;;  %v1693_v53 = vmul.f32 %v1679_v51, %v5443_v42  ;;  %v1692_v56 = vmul.f32 %v1675_v20, %v5338_v29 }
 0x3e3   : > { %2187 = vmatprep.subr.mxu1 %v1850_v15  ;;  %v1819_v8 = vmul.f32 %v6744_v1, %v5154_v57  ;;  %2124 = vmatprep.subr.mxu0 %v1724_v14  ;;  %v1591_v57 = vsel %vm6697_vm1, %v1584_v6, %v5538_v59  ;;  %v1787_v42 = vmul.f32 %v1776_v24, %v5290_v52  ;;  %v1632_v34 = vpop.permute.xlu1 %1631 }
 0x3e4   : > { %v1818_v61 = vmul.f32 %v6745_v12, %v5235_v62  ;;  %2188 = vmatpush2.msra.mxu1 %v1849_v25  ;;  %2125 = vmatpush2.msra.mxu0 %v1723_v37  ;;  %v6746_v62 = vrot.slane %v5334_v2, %v4881_v40  ;;  %v1592_v50 = vsel %vm6697_vm1, %v1582_v33, %v1584_v6  ;;  %v2263_v37 = vld [vmem:[%s6654_s13 + $0x8] sm:$0xff] }
 0x3e5   : > { %2189 = vmatprep.subr.mxu1 %v1819_v8  ;;  %2126 = vmatprep.subr.mxu0 %v1693_v53  ;;  %v1662_v29 = vmul.f32 %v1648_v48, %v1635_v36  ;;  %v1661_v20 = vmul.f32 %v1644_v58, %v1636_v45  ;;  %v6748_v49 = vrot.slane %v5364_v16, %v4881_v40  ;;  %v1588_v60 = vpop.permute.xlu0 %1587  ;;  %v1948_v16 = vld [vmem:[%s6649_s8] sm:$0xff] }
 0x3e6   : > { %v1788_v30 = vmul.f32 %v6746_v62, %v5191_v32  ;;  %2190 = vmatpush2.msra.mxu1 %v1818_v61  ;;  %2127 = vmatpush2.msra.mxu0 %v1692_v56  ;;  %v1687_v51 = vrot.slane %v5425_v54, %v4881_v40  ;;  %v1756_v52 = vmul.f32 %v1745_v26, %v5377_v27 }
 0x3e7   : > { %v1757_v32 = vmul.f32 %v6748_v49, %v6747_v7  ;;  %v1683_v2 = vrot.slane %v5425_v54, %v4879_v39  ;;  %2128 = vmatprep.subr.mxu0 %v1662_v29  ;;  %v1618_v24 = vmul.f32 %v1604_v43, %v1591_v57  ;;  %v1617_v6 = vmul.f32 %v1600_v23, %v1592_v50  ;;  %v2210_v43 = vld [vmem:[%s6651_s10] sm:$0xff] }
 0x3e8   : > { %2191 = vmatprep.subr.mxu1 %v1788_v30  ;;  %2129 = vmatpush2.msra.mxu0 %v1661_v20  ;;  %v1726_v11 = vmul.f32 %v1718_v0, %v6749_v44  ;;  %v1656_v27 = vrot.slane %v5487_v17, %v4881_v40  ;;  %v1725_v54 = vmul.f32 %v1714_v31, %v5413_v63  ;;  %v2211_v50 = vld [vmem:[%s6652_s11] sm:$0xff] }
 0x3e9   : > { %2192 = vmatpush2.msra.mxu1 %v1787_v42  ;;  %v1652_v26 = vrot.slane %v5487_v17, %v4879_v39  ;;  %v1637_v35 = vsel %vm1633_vm14, %v1632_v34, %v5489_v4  ;;  %2130 = vmatprep.subr.mxu0 %v1618_v24  ;;  %v1634_v0 = vsel %vm1633_vm14, %v5448_v38, %v1632_v34  ;;  %v2262_v29 = vld [vmem:[%s6654_s13] sm:$0xff] }
 0x3ea   : > { %2193 = vmatprep.subr.mxu1 %v1757_v32  ;;  %2131 = vmatpush2.msra.mxu0 %v1617_v6  ;;  %v1695_v48 = vmul.f32 %v1687_v51, %v5372_v10  ;;  %v1612_v63 = vrot.slane %v5510_v9, %v4881_v40  ;;  %v1694_v28 = vmul.f32 %v1683_v2, %v5431_v47  ;;  %v6750_v10 = vmov 0.0  }
 0x3eb   : > { %2194 = vmatpush2.msra.mxu1 %v1756_v52  ;;  %v1608_v31 = vrot.slane %v5510_v9, %v4879_v39  ;;  %v1593_v17 = vsel %vm6697_vm1, %v1588_v60, %v1582_v33  ;;  %2133 = vmatmul.mubr.f32.vlgmr.msra.gmra.mxu0 %v1948_v16  ;;  %v1590_v38 = vsel %vm6697_vm1, %v5538_v59, %v1588_v60  ;;  %vm2274_vm1 = vcmask 64512  }
 0x3ec   : > { %2195 = vmatprep.subr.mxu1 %v1726_v11  ;;  %v1664_v4 = vmul.f32 %v1656_v27, %v1637_v35  ;;  %2345 = vmatprep.mubr.f32.mxu0 %v6750_v10  ;;  %v1663_v3 = vmul.f32 %v1652_v26, %v1634_v0  ;;  %v1620_v47 = vmul.f32 %v1612_v63, %v1593_v17  ;;  %v2261_v17 = vld [vmem:[%s6653_s12 + $0x8] sm:$0xff] }
 0x3ed   : > { %2196 = vmatpush2.msra.mxu1 %v1725_v54  ;;  %v1619_v22 = vmul.f32 %v1608_v31, %v1590_v38  ;;  %v2062_v55 = vpop.permute.xlu1 %2061  ;;  %v2260_v31 = vld [vmem:[%s6653_s12] sm:$0xff] }
 0x3ee   : > { %2197 = vmatprep.subr.mxu1 %v1695_v48 }
 0x3ef   : > { %2198 = vmatpush2.msra.mxu1 %v1694_v28 }
 0x3f0   : > { %2199 = vmatprep.subr.mxu1 %v1664_v4 }
 0x3f1   : > { %2200 = vmatpush2.msra.mxu1 %v1663_v3 }
 0x3f2   : > { %2201 = vmatprep.subr.mxu1 %v1620_v47 }
 0x3f3   : > { %2202 = vmatpush2.msra.mxu1 %v1619_v22 }
 0x3f4   : > { %2204 = vmatmul.mubr.f32.vlgmr.msra.gmra.mxu1 %v1948_v16 }
 0x3f5   : > { %2422 = vmatprep.mubr.f32.mxu1 %v6750_v10 }
 0x4ab   : > { %v2134_v9 = vpop.f32.mrf.mxu0 }
 0x4ac   : > { %v2135_v13 = vadd.f32 %v2134_v9, %v2062_v55 }
 0x4ad   : > { %v2136_v58 = vpop.f32.mrf.mxu0 }
 0x4ae   : > { %v2137_v5 = vadd.f32 %v2136_v58, %v2062_v55 }
 0x4b0   : > { %v2212_v59 = vadd.f32 %v2137_v5, %v2135_v13 }
 0x4b4   : > { %v2205_v23 = vpop.f32.mrf.mxu1 }
 0x4b5   : > { %v2206_v46 = vadd.f32 %v2205_v23, %v2062_v55 }
 0x4b6   : > { %v2207_v15 = vpop.f32.mrf.mxu1 }
 0x4b7   : > { %v2213_v41 = vadd.f32 %v2212_v59, %v2206_v46  ;;  %v2208_v25 = vadd.f32 %v2207_v15, %v2062_v55 }
 0x4b9   : > { %v2214_v14 = vadd.f32 %v2213_v41, %v2208_v25 }
 0x4bb   : > { %2215 = vadd.xlane.f32.xlu0 %v2214_v14 }
 0x4d1   : > { %2240 = vperm.xlu0 %4532, %v2210_v43  }
 0x4d5   : > { %2271 = vperm.xlu0 %4532, %v2263_v37  }
 0x544   : > { %v2216_v36 = vpop.xlane.xlu0 %2215 }
 0x545   : > { %v2217_v33 = vmul.f32 0.001953125, %v2216_v36 }
 0x547   : > { %v2218_v1 = vsub.f32 %v2135_v13, %v2217_v33  ;;  %v2219_v8 = vsub.f32 %v2137_v5, %v2217_v33  ;;  %v2220_v12 = vsub.f32 %v2206_v46, %v2217_v33  ;;  %v2221_v61 = vsub.f32 %v2208_v25, %v2217_v33 }
 0x549   : > { %v2222_v45 = vmul.f32 %v2218_v1, %v2218_v1  ;;  %v2223_v53 = vmul.f32 %v2219_v8, %v2219_v8  ;;  %v2224_v56 = vmul.f32 %v2220_v12, %v2220_v12  ;;  %v2225_v62 = vmul.f32 %v2221_v61, %v2221_v61 }
 0x54b   : > { %v2226_v57 = vadd.f32 %v2223_v53, %v2222_v45  ;;  %v2438_v45 = vld [vmem:[%s6656_s15 + $0x8] sm:$0xff]  ;;  %v2437_v53 = vld [vmem:[%s6656_s15] sm:$0xff] }
 0x54c   : > { %v2241_v24 = vpop.permute.xlu0 %2240 }
 0x54d   : > { %v2227_v30 = vadd.f32 %v2226_v57, %v2224_v56 }
 0x54f   : > { %v2228_v42 = vadd.f32 %v2227_v30, %v2225_v62 }
 0x550   : > { %v2272_v59 = vpop.permute.xlu0 %2271 }
 0x551   : > { %2229 = vadd.xlane.f32.xlu1 %v2228_v42 }
 0x562   : > { %2249 = vperm.xlu1 %4533, %v2211_v50  }
 0x566   : > { %2266 = vperm.xlu1 %4533, %v2262_v29  }
 0x5da   : > { %v2230_v20 = vpop.xlane.xlu1 %2229 }
 0x5db   : > { %v2231_v34 = vmul.f32 0.001953125, %v2230_v20 }
 0x5dd   : > { %v2232_v7 = vadd.f32 1e-05, %v2231_v34 }
 0x5de   : > { %v2250_v16 = vpop.permute.xlu1 %2249 }
 0x5df   : > { %4538 = vrsqrt.f32 %v2232_v7 }
 0x5e2   : > { %v2267_v3 = vpop.permute.xlu1 %2266 }
 0x5ec   : > { %v4539_v49 = vpop.eup %4538 }
 0x5ed   : > { %v2235_v32 = vmul.f32 %v4539_v49, %v2219_v8  ;;  %v2237_v51 = vmul.f32 %v4539_v49, %v2221_v61  ;;  %v2234_v52 = vmul.f32 %v4539_v49, %v2218_v1  ;;  %v2236_v2 = vmul.f32 %v4539_v49, %v2220_v12  ;;  %v2436_v61 = vld [vmem:[%s6655_s14 + $0x8] sm:$0xff] }
 0x5ef   : > { %v2244_v6 = vmul.f32 %v2241_v24, %v2235_v32  ;;  %v2246_v60 = vmul.f32 %v2241_v24, %v2237_v51  ;;  %v2243_v44 = vmul.f32 %v2241_v24, %v2234_v52  ;;  %v2245_v11 = vmul.f32 %v2241_v24, %v2236_v2 }
 0x5f1   : > { %v2253_v27 = vadd.f32 %v2250_v16, %v2244_v6  ;;  %v2255_v54 = vadd.f32 %v2250_v16, %v2246_v60  ;;  %v2252_v26 = vadd.f32 %v2250_v16, %v2243_v44  ;;  %v2254_v35 = vadd.f32 %v2250_v16, %v2245_v11 }
 0x5f3   : > { %v2257_v0 = vmax.f32 %v2253_v27, 0.0  ;;  %v2259_v48 = vmax.f32 %v2255_v54, 0.0  ;;  %v2256_v63 = vmax.f32 %v2252_v26, 0.0  ;;  %v2258_v28 = vmax.f32 %v2254_v35, 0.0 }
 0x5f5   : > { %2311 = vmatprep.subr.mxu0 %v2257_v0  ;;  %2388 = vmatprep.subr.mxu1 %v2259_v48  ;;  %v2435_v48 = vld [vmem:[%s6655_s14] sm:$0xff] }
 0x5f6   : > { %2312 = vmatpush1.msra.mxu0 %v2256_v63  ;;  %2389 = vmatpush1.msra.mxu1 %v2258_v28  ;;  %v4452_v63 = vld [vmem:[%s6646_s5 + $0x8] sm:$0xff] }
 0x5f7   : > { %4447 = vmatmul.mubr.msk.f32.vlgmr.msra.gmra.mxu0 %vm2274_vm1, %v2260_v31  ;;  %4449 = vmatmul.mubr.msk.f32.vlgmr.msra.gmra.mxu1 %vm2274_vm1, %v2260_v31  ;;  %v4455_v28 = vld [vmem:[%s6647_s6 + $0x8] sm:$0xff] }
 0x5f8   : > { %2351 = vmatprep.mubr.f32.mxu0 %v6750_v10  ;;  %2428 = vmatprep.mubr.f32.mxu1 %v6750_v10 }
 0x5fb   : > { %4448 = vmatmul.mubr.msk.f32.gmra.mxu0 %vm2274_vm1, %v2261_v17  ;;  %4450 = vmatmul.mubr.msk.f32.gmra.mxu1 %vm2274_vm1, %v2261_v17 }
 0x5fc   : > { %2619 = vmatprep.mubr.f32.mxu0 %v6750_v10  ;;  %2690 = vmatprep.mubr.f32.mxu1 %v6750_v10  ;;  %v6331_v10 = vld [vmem:[%s6642_s1 + $0x44] ss:$8 sm:$0xf] }
 0x6b7   : > { %v2347_v38 = vpop.f32.mrf.mxu0  ;;  %v2424_v4 = vpop.f32.mrf.mxu1 }
 0x6b8   : > { %v2348_v9 = vadd.f32 %v2347_v38, %v2267_v3  ;;  %v2425_v13 = vadd.f32 %v2424_v4, %v2267_v3 }
 0x6b9   : > { %v2349_v47 = vpop.f32.mrf.mxu0  ;;  %v2426_v22 = vpop.f32.mrf.mxu1 }
 0x6ba   : > { %v2350_v58 = vadd.f32 %v2349_v47, %v2267_v3  ;;  %v2427_v15 = vadd.f32 %v2426_v22, %v2267_v3 }
 0x6bb   : > { %v2353_v55 = vpop.f32.mrf.mxu0  ;;  %v2430_v5 = vpop.f32.mrf.mxu1 }
 0x6bc   : > { %v2439_v23 = vadd.f32 %v2350_v58, %v2348_v9  ;;  %v2354_v41 = vadd.f32 %v2353_v55, %v2272_v59  ;;  %v2431_v37 = vadd.f32 %v2430_v5, %v2272_v59 }
 0x6bd   : > { %v2355_v46 = vpop.f32.mrf.mxu0  ;;  %v2432_v43 = vpop.f32.mrf.mxu1 }
 0x6be   : > { %v2356_v25 = vadd.f32 %v2355_v46, %v2272_v59  ;;  %v2440_v14 = vadd.f32 %v2439_v23, %v2425_v13  ;;  %v2433_v1 = vadd.f32 %v2432_v43, %v2272_v59 }
 0x6c0   : > { %v2444_v36 = vadd.f32 %v2356_v25, %v2354_v41  ;;  %v2441_v33 = vadd.f32 %v2440_v14, %v2427_v15 }
 0x6c2   : > { %2442 = vadd.xlane.f32.xlu1 %v2441_v33  ;;  %v2445_v8 = vadd.f32 %v2444_v36, %v2431_v37 }
 0x6c4   : > { %v2446_v12 = vadd.f32 %v2445_v8, %v2433_v1 }
 0x6c6   : > { %2447 = vadd.xlane.f32.xlu0 %v2446_v12 }
 0x6d3   : > { %2498 = vperm.xlu1 %4533, %v2436_v61  }
 0x6d7   : > { %2516 = vperm.xlu1 %4533, %v2438_v45  }
 0x6db   : > { %2511 = vperm.xlu1 %4533, %v2437_v53  }
 0x74b   : > { %v2443_v56 = vpop.xlane.xlu1 %2442 }
 0x74c   : > { %v2449_v57 = vmul.f32 0.001953125, %v2443_v56 }
 0x74e   : > { %v2451_v62 = vsub.f32 %v2348_v9, %v2449_v57  ;;  %v2452_v30 = vsub.f32 %v2350_v58, %v2449_v57  ;;  %v2453_v42 = vsub.f32 %v2425_v13, %v2449_v57  ;;  %v2454_v29 = vsub.f32 %v2427_v15, %v2449_v57 }
 0x74f   : > { %v2448_v50 = vpop.xlane.xlu0 %2447  ;;  %v2499_v22 = vpop.permute.xlu1 %2498 }
 0x750   : > { %v2450_v20 = vmul.f32 0.001953125, %v2448_v50  ;;  %v2459_v34 = vmul.f32 %v2451_v62, %v2451_v62  ;;  %v2460_v7 = vmul.f32 %v2452_v30, %v2452_v30  ;;  %v2461_v49 = vmul.f32 %v2453_v42, %v2453_v42 }
 0x751   : > { %v2462_v24 = vmul.f32 %v2454_v29, %v2454_v29 }
 0x752   : > { %v2455_v32 = vsub.f32 %v2354_v41, %v2450_v20  ;;  %v2456_v51 = vsub.f32 %v2356_v25, %v2450_v20  ;;  %v2467_v52 = vadd.f32 %v2460_v7, %v2459_v34  ;;  %v2457_v2 = vsub.f32 %v2431_v37, %v2450_v20  ;;  %v6753_v7 = vld [vmem:[#allocation4_spill] sm:$0xff] }
 0x753   : > { %v2458_v60 = vsub.f32 %v2433_v1, %v2450_v20  ;;  %v2517_v58 = vpop.permute.xlu1 %2516  ;;  %v6751_v20 = vld [vmem:[#allocation3_spill] sm:$0xff] }
 0x754   : > { %v2468_v6 = vadd.f32 %v2467_v52, %v2461_v49  ;;  %v2463_v44 = vmul.f32 %v2455_v32, %v2455_v32  ;;  %v2464_v11 = vmul.f32 %v2456_v51, %v2456_v51  ;;  %v2465_v27 = vmul.f32 %v2457_v2, %v2457_v2  ;;  %v6757_v52 = vld [vmem:[#allocation8_spill] sm:$0xff] }
 0x755   : > { %v2466_v26 = vmul.f32 %v2458_v60, %v2458_v60 }
 0x756   : > { %v2469_v16 = vadd.f32 %v2468_v6, %v2462_v24  ;;  %v2472_v54 = vadd.f32 %v2464_v11, %v2463_v44  ;;  %v6759_v24 = vld [vmem:[#allocation5_spill] sm:$0xff] }
 0x757   : > { %v2512_v36 = vpop.permute.xlu1 %2511  ;;  %v6763_v11 = vld [vmem:[#allocation9_spill] sm:$0xff] }
 0x758   : > { %2470 = vadd.xlane.f32.xlu0 %v2469_v16  ;;  %v2473_v35 = vadd.f32 %v2472_v54, %v2465_v27  ;;  %v6765_v27 = vld [vmem:[#allocation10_spill] sm:$0xff] }
 0x75a   : > { %v2474_v0 = vadd.f32 %v2473_v35, %v2466_v26 }
 0x75c   : > { %2475 = vadd.xlane.f32.xlu0 %v2474_v0 }
 0x772   : > { %2493 = vperm.xlu0 %4532, %v2435_v48  }
 0x776   : > { %2549 = vperm.xlu0 %4532, %v4452_v63  }
 0x77a   : > { %2729 = vperm.xlu0 %4532, %v4455_v28  }
 0x7e1   : > { %v2471_v31 = vpop.xlane.xlu0 %2470 }
 0x7e2   : > { %v2477_v17 = vmul.f32 0.001953125, %v2471_v31 }
 0x7e4   : > { %v2479_v38 = vadd.f32 1e-05, %v2477_v17 }
 0x7e5   : > { %v2476_v4 = vpop.xlane.xlu0 %2475 }
 0x7e6   : > { %4540 = vrsqrt.f32 %v2479_v38  ;;  %v2478_v3 = vmul.f32 0.001953125, %v2476_v4  ;;  %v4451_v38 = vld [vmem:[%s6645_s4 + $0x8] sm:$0xff] }
 0x7e8   : > { %v2480_v47 = vadd.f32 1e-05, %v2478_v3 }
 0x7ea   : > { %4542 = vrsqrt.f32 %v2480_v47 }
 0x7ed   : > { %v2494_v59 = vpop.permute.xlu0 %2493 }
 0x7f1   : > { %v2550_v47 = vpop.permute.xlu0 %2549 }
 0x7f3   : > { %v4541_v9 = vpop.eup %4540 }
 0x7f4   : > { %v2483_v55 = vmul.f32 %v4541_v9, %v2451_v62  ;;  %v2484_v5 = vmul.f32 %v4541_v9, %v2452_v30  ;;  %v2485_v13 = vmul.f32 %v4541_v9, %v2453_v42  ;;  %v2486_v23 = vmul.f32 %v4541_v9, %v2454_v29 }
 0x7f6   : > { %v2502_v46 = vmul.f32 %v2494_v59, %v2484_v5  ;;  %v2504_v15 = vmul.f32 %v2494_v59, %v2486_v23  ;;  %v2501_v25 = vmul.f32 %v2494_v59, %v2483_v55  ;;  %v2503_v14 = vmul.f32 %v2494_v59, %v2485_v13 }
 0x7f7   : > { %v4543_v41 = vpop.eup %4542 }
 0x7f8   : > { %v2488_v43 = vmul.f32 %v4543_v41, %v2456_v51  ;;  %v2490_v37 = vmul.f32 %v4543_v41, %v2458_v60  ;;  %v2487_v33 = vmul.f32 %v4543_v41, %v2455_v32  ;;  %v2489_v1 = vmul.f32 %v4543_v41, %v2457_v2  ;;  %v6755_v32 = vld [vmem:[#allocation7_spill] sm:$0xff]  ;;  %v6761_v60 = vld [vmem:[#allocation6_spill] sm:$0xff] }
 0x7f9   : > { %v2520_v61 = vadd.f32 %v2512_v36, %v2502_v46  ;;  %v2522_v45 = vadd.f32 %v2512_v36, %v2504_v15  ;;  %v2519_v53 = vadd.f32 %v2512_v36, %v2501_v25  ;;  %v2521_v56 = vadd.f32 %v2512_v36, %v2503_v14  ;;  %v4456_v15 = vld [vmem:[%s6648_s7 + $0x8] sm:$0xff] }
 0x7fa   : > { %v2506_v8 = vmul.f32 %v2499_v22, %v2488_v43  ;;  %v2508_v12 = vmul.f32 %v2499_v22, %v2490_v37  ;;  %v2505_v57 = vmul.f32 %v2499_v22, %v2487_v33  ;;  %v2507_v62 = vmul.f32 %v2499_v22, %v2489_v1 }
 0x7fb   : > { %v5687_v51 = vadd.f32 %v2520_v61, %v6755_v32  ;;  %v5690_v2 = vadd.f32 %v2522_v45, %v6757_v52  ;;  %v5699_v16 = vadd.f32 %v2519_v53, %v6763_v11  ;;  %v5702_v54 = vadd.f32 %v2521_v56, %v6765_v27  ;;  %v2730_v56 = vpop.permute.xlu0 %2729 }
 0x7fc   : > { %v2524_v30 = vadd.f32 %v2517_v58, %v2506_v8  ;;  %v2526_v42 = vadd.f32 %v2517_v58, %v2508_v12  ;;  %v2523_v50 = vadd.f32 %v2517_v58, %v2505_v57  ;;  %v2525_v29 = vadd.f32 %v2517_v58, %v2507_v62 }
 0x7fd   : > { %6756 = vst [vmem:[#allocation3_spill] sm:$0xff] %v5687_v51  ;;  %6758 = vst [vmem:[#allocation4_spill] sm:$0xff] %v5690_v2  ;;  %v6704_v63 = vmax.f32 %v5687_v51, 0.0  ;;  %v6702_v28 = vmax.f32 %v5690_v2, 0.0  ;;  %v6705_v31 = vmax.f32 %v5699_v16, 0.0  ;;  %v6703_v17 = vmax.f32 %v5702_v54, 0.0 }
 0x7fe   : > { %v5681_v34 = vadd.f32 %v2524_v30, %v6751_v20  ;;  %v5684_v49 = vadd.f32 %v2526_v42, %v6753_v7  ;;  %v5693_v6 = vadd.f32 %v2523_v50, %v6759_v24  ;;  %v5696_v44 = vadd.f32 %v2525_v29, %v6761_v60  ;;  %6764 = vst [vmem:[#allocation5_spill] sm:$0xff] %v5699_v16  ;;  %v6316_v2 = vld [vmem:[%s6642_s1 + $0x45] ss:$8 sm:$0xf] }
 0x7ff   : > { %6766 = vst [vmem:[#allocation6_spill] sm:$0xff] %v5702_v54  ;;  %v3562_v16 = vrot.slane %v6316_v2, %v4865_v21 }
 0x800   : > { %6752 = vst [vmem:[#allocation11_spill] sm:$0xff] %v5681_v34  ;;  %6754 = vst [vmem:[#allocation12_spill] sm:$0xff] %v5684_v49  ;;  %v6700_v26 = vmax.f32 %v5681_v34, 0.0  ;;  %v6698_v35 = vmax.f32 %v5684_v49, 0.0  ;;  %v6701_v0 = vmax.f32 %v5693_v6, 0.0  ;;  %v6699_v48 = vmax.f32 %v5696_v44, 0.0 }
 0x801   : > { %6760 = vst [vmem:[#allocation7_spill] sm:$0xff] %v5693_v6  ;;  %6762 = vst [vmem:[#allocation8_spill] sm:$0xff] %v5696_v44 }
 0x802   : > { %2583 = vmatprep.subr.mxu0 %v6700_v26  ;;  %2654 = vmatprep.subr.mxu1 %v6698_v35 }
 0x803   : > { %2584 = vmatpush1.msra.mxu0 %v6701_v0  ;;  %2655 = vmatpush1.msra.mxu1 %v6699_v48 }
 0x804   : > { %2585 = vmatprep.subr.mxu0 %v6704_v63  ;;  %2656 = vmatprep.subr.mxu1 %v6702_v28  ;;  %v6292_v63 = vld [vmem:[%s6642_s1 + $0x46] ss:$8 sm:$0xf] }
 0x805   : > { %2586 = vmatpush1.msra.mxu0 %v6705_v31  ;;  %2657 = vmatpush1.msra.mxu1 %v6703_v17 }
 0x806   : > { %4453 = vmatmul.mubr.msk.f32.vlgmr.msra.gmra.mxu0 %vm719_vm2, %v4451_v38  ;;  %4454 = vmatmul.mubr.msk.f32.vlgmr.msra.gmra.mxu1 %vm719_vm2, %v4451_v38  ;;  %vm6779_vm2 = vcmp.lt.s32.totalorder %v4854_v18, 64 }
 0x8c6   : > { %v2621_v4 = vpop.f32.mrf.mxu0  ;;  %v2692_v3 = vpop.f32.mrf.mxu1 }
 0x8c7   : > { %v2622_v9 = vadd.f32 %v2621_v4, %v2550_v47  ;;  %v2693_v5 = vadd.f32 %v2692_v3, %v2550_v47 }
 0x8c8   : > { %v2623_v22 = vpop.f32.mrf.mxu0  ;;  %v2694_v55 = vpop.f32.mrf.mxu1 }
 0x8c9   : > { %v2624_v58 = vadd.f32 %v2623_v22, %v2550_v47  ;;  %v2695_v23 = vadd.f32 %v2694_v55, %v2550_v47  ;;  %v4470_v55 = vld [vmem:[%s6642_s1 + $0x27] ss:$8 sm:$0xf] }
 0x8cb   : > { %v2701_v13 = vadd.f32 %v2624_v58, %v2622_v9 }
 0x8cd   : > { %v2702_v59 = vadd.f32 %v2701_v13, %v2693_v5 }
 0x8cf   : > { %v2703_v46 = vadd.f32 %v2702_v59, %v2695_v23 }
 0x8d1   : > { %2704 = vadd.xlane.f32.xlu1 %v2703_v46 }
 0x8e2   : > { %2738 = vperm.xlu1 %4533, %v4456_v15   ;;  %v3358_v15 = vrot.slane %v4470_v55, %v4865_v21 }
 0x95a   : > { %v2705_v41 = vpop.xlane.xlu1 %2704 }
 0x95b   : > { %v2706_v25 = vmul.f32 0.001953125, %v2705_v41  ;;  %v4469_v41 = vld [vmem:[%s6642_s1 + $0x26] ss:$8 sm:$0xf] }
 0x95d   : > { %v2707_v14 = vsub.f32 %v2622_v9, %v2706_v25  ;;  %v2708_v43 = vsub.f32 %v2624_v58, %v2706_v25  ;;  %v2709_v37 = vsub.f32 %v2693_v5, %v2706_v25  ;;  %v2710_v36 = vsub.f32 %v2695_v23, %v2706_v25 }
 0x95e   : > { %v2739_v24 = vpop.permute.xlu1 %2738  ;;  %v3362_v5 = vrot.slane %v4470_v55, %v4856_v19 }
 0x95f   : > { %v2711_v33 = vmul.f32 %v2707_v14, %v2707_v14  ;;  %v2712_v1 = vmul.f32 %v2708_v43, %v2708_v43  ;;  %v2713_v8 = vmul.f32 %v2709_v37, %v2709_v37  ;;  %v2714_v61 = vmul.f32 %v2710_v36, %v2710_v36 }
 0x961   : > { %v2715_v12 = vadd.f32 %v2712_v1, %v2711_v33  ;;  %v3320_v33 = vrot.slane %v4469_v41, %v4856_v19 }
 0x963   : > { %v2716_v45 = vadd.f32 %v2715_v12, %v2713_v8 }
 0x965   : > { %v2717_v53 = vadd.f32 %v2716_v45, %v2714_v61  ;;  %v3366_v45 = vrot.slane %v4470_v55, %v4879_v39 }
 0x967   : > { %2718 = vadd.xlane.f32.xlu0 %v2717_v53 }
 0x9f0   : > { %v2719_v57 = vpop.xlane.xlu0 %2718 }
 0x9f1   : > { %v2720_v62 = vmul.f32 0.001953125, %v2719_v57  ;;  %v3370_v57 = vrot.slane %v4470_v55, %v4881_v40 }
 0x9f3   : > { %v2721_v30 = vadd.f32 1e-05, %v2720_v62  ;;  %v5895_v62 = vld [vmem:[%s6642_s1 + $0x24] ss:$8 sm:$0xf] }
 0x9f4   : > { %v3270_v55 = vrot.slane %v5895_v62, %v4865_v21 }
 0x9f5   : > { %4544 = vrsqrt.f32 %v2721_v30  ;;  %v4483_v30 = vld [vmem:[%s6649_s8 + $0x18] sm:$0xff] }
 0x9f6   : > { %4485 = vmatprep.mubr.msk.f32.mxu0 %vm2064_vm5, %v4483_v30  ;;  %4486 = vmatprep.mubr.msk.f32.mxu1 %vm2064_vm5, %v4483_v30  ;;  %v3282_v30 = vrot.slane %v5895_v62, %v4881_v40  ;;  %vm6783_vm5 = vmmov %vm6779_vm2 }
 0xa02   : > { %v4545_v42 = vpop.eup %4544 }
 0xa03   : > { %v2723_v50 = vmul.f32 %v4545_v42, %v2707_v14  ;;  %v2724_v29 = vmul.f32 %v4545_v42, %v2708_v43  ;;  %v2725_v20 = vmul.f32 %v4545_v42, %v2709_v37  ;;  %v2726_v27 = vmul.f32 %v4545_v42, %v2710_v36 }
 0xa04   : > { %v3316_v36 = vrot.slane %v4469_v41, %v4865_v21 }
 0xa05   : > { %v2732_v7 = vmul.f32 %v2730_v56, %v2723_v50  ;;  %v2733_v32 = vmul.f32 %v2730_v56, %v2724_v29  ;;  %v2734_v52 = vmul.f32 %v2730_v56, %v2725_v20  ;;  %v2735_v47 = vmul.f32 %v2730_v56, %v2726_v27 }
 0xa06   : > { %v3324_v29 = vrot.slane %v4469_v41, %v4879_v39 }
 0xa07   : > { %v2742_v60 = vadd.f32 %v2739_v24, %v2733_v32  ;;  %v2743_v11 = vadd.f32 %v2739_v24, %v2734_v52  ;;  %v2741_v38 = vadd.f32 %v2739_v24, %v2732_v7  ;;  %v2744_v9 = vadd.f32 %v2739_v24, %v2735_v47 }
 0xa08   : > { %v3328_v32 = vrot.slane %v4469_v41, %v4881_v40 }
 0xa09   : > { %v5736_v4 = vmax.f32 %v2742_v60, 0.0  ;;  %v5738_v3 = vmax.f32 %v2743_v11, 0.0  ;;  %v5744_v22 = vmax.f32 %v2741_v38, 0.0  ;;  %v5754_v58 = vmax.f32 %v2744_v9, 0.0 }
 0xa0a   : > { %v3274_v60 = vrot.slane %v5895_v62, %v4856_v19 }
 0xa0b   : > { %3345 = vrot.lane.b32.xlu0 %v5738_v3, %s4562_s0  ;;  %3343 = vrot.lane.b32.xlu1 %v5736_v4, %s4562_s0 }
 0xa0f   : > { %3301 = vrot.lane.b32.xlu0 %v5736_v4, %s4563_s17  ;;  %3341 = vrot.lane.b32.xlu1 %v5744_v22, %s4562_s0 }
 0xa13   : > { %3299 = vrot.lane.b32.xlu0 %v5744_v22, %s4563_s17  ;;  %3303 = vrot.lane.b32.xlu1 %v5738_v3, %s4563_s17 }
 0xa17   : > { %3253 = vrot.lane.b32.xlu0 %v5744_v22, %s4564_s18  ;;  %3347 = vrot.lane.b32.xlu1 %v5754_v58, %s4562_s0  ;;  %s6767_s0 = smov 9  }
 0xa1b   : > { %3305 = vrot.lane.b32.xlu0 %v5754_v58, %s4563_s17  ;;  %3255 = vrot.lane.b32.xlu1 %v5736_v4, %s4564_s18  ;;  %s6768_s17 = smov 55  }
 0xa1f   : > { %3211 = vrot.lane.b32.xlu0 %v5744_v22, %s4565_s19  ;;  %3259 = vrot.lane.b32.xlu1 %v5754_v58, %s4564_s18 }
 0xa23   : > { %3217 = vrot.lane.b32.xlu0 %v5754_v58, %s4565_s19  ;;  %3213 = vrot.lane.b32.xlu1 %v5736_v4, %s4565_s19 }
 0xa27   : > { %3171 = vrot.lane.b32.xlu0 %v5736_v4, %s4566_s20  ;;  %3169 = vrot.lane.b32.xlu1 %v5744_v22, %s4566_s20 }
 0xa2b   : > { %3175 = vrot.lane.b32.xlu0 %v5754_v58, %s4566_s20  ;;  %3257 = vrot.lane.b32.xlu1 %v5738_v3, %s4564_s18  ;;  %s6769_s18 = smov 56  }
 0xa2f   : > { %3129 = vrot.lane.b32.xlu0 %v5736_v4, %s6767_s0  ;;  %3127 = vrot.lane.b32.xlu1 %v5744_v22, %s6767_s0 }
 0xa33   : > { %3133 = vrot.lane.b32.xlu0 %v5754_v58, %s6767_s0  ;;  %3215 = vrot.lane.b32.xlu1 %v5738_v3, %s4565_s19  ;;  %s6770_s19 = smov 57  }
 0xa37   : > { %3087 = vrot.lane.b32.xlu0 %v5736_v4, %s6768_s17  ;;  %3085 = vrot.lane.b32.xlu1 %v5744_v22, %s6768_s17 }
 0xa3b   : > { %3091 = vrot.lane.b32.xlu0 %v5754_v58, %s6768_s17  ;;  %3173 = vrot.lane.b32.xlu1 %v5738_v3, %s4566_s20  ;;  %s6771_s20 = smov 63  }
 0xa3f   : > { %3045 = vrot.lane.b32.xlu0 %v5736_v4, %s6769_s18  ;;  %3043 = vrot.lane.b32.xlu1 %v5744_v22, %s6769_s18 }
 0xa43   : > { %3049 = vrot.lane.b32.xlu0 %v5754_v58, %s6769_s18  ;;  %3131 = vrot.lane.b32.xlu1 %v5738_v3, %s6767_s0 }
 0xa47   : > { %3003 = vrot.lane.b32.xlu0 %v5736_v4, %s6770_s19  ;;  %3001 = vrot.lane.b32.xlu1 %v5744_v22, %s6770_s19 }
 0xa4b   : > { %3007 = vrot.lane.b32.xlu0 %v5754_v58, %s6770_s19  ;;  %3089 = vrot.lane.b32.xlu1 %v5738_v3, %s6768_s17  ;;  %s6777_s17 = smov 119  }
 0xa4f   : > { %2961 = vrot.lane.b32.xlu0 %v5736_v4, %s6771_s20  ;;  %2959 = vrot.lane.b32.xlu1 %v5744_v22, %s6771_s20 }
 0xa53   : > { %2965 = vrot.lane.b32.xlu0 %v5754_v58, %s6771_s20  ;;  %3047 = vrot.lane.b32.xlu1 %v5738_v3, %s6769_s18  ;;  %s6778_s18 = smov 120  }
 0xa57   : > { %2919 = vrot.lane.b32.xlu0 %v5736_v4, %s6772_s30  ;;  %2917 = vrot.lane.b32.xlu1 %v5744_v22, %s6772_s30 }
 0xa5b   : > { %2923 = vrot.lane.b32.xlu0 %v5754_v58, %s6772_s30  ;;  %3005 = vrot.lane.b32.xlu1 %v5738_v3, %s6770_s19 }
 0xa5f   : > { %2877 = vrot.lane.b32.xlu0 %v5736_v4, %s6773_s28  ;;  %2875 = vrot.lane.b32.xlu1 %v5744_v22, %s6773_s28 }
 0xa63   : > { %2881 = vrot.lane.b32.xlu0 %v5754_v58, %s6773_s28  ;;  %2963 = vrot.lane.b32.xlu1 %v5738_v3, %s6771_s20 }
 0xa67   : > { %2835 = vrot.lane.b32.xlu0 %v5736_v4, %s6774_s27  ;;  %2833 = vrot.lane.b32.xlu1 %v5744_v22, %s6774_s27 }
 0xa6b   : > { %2839 = vrot.lane.b32.xlu0 %v5754_v58, %s6774_s27  ;;  %2921 = vrot.lane.b32.xlu1 %v5738_v3, %s6772_s30 }
 0xa6f   : > { %2793 = vrot.lane.b32.xlu0 %v5736_v4, %s6775_s23  ;;  %2791 = vrot.lane.b32.xlu1 %v5744_v22, %s6775_s23 }
 0xa73   : > { %2797 = vrot.lane.b32.xlu0 %v5754_v58, %s6775_s23  ;;  %2879 = vrot.lane.b32.xlu1 %v5738_v3, %s6773_s28 }
 0xa77   : > { %2751 = vrot.lane.b32.xlu0 %v5736_v4, %s6776_s24  ;;  %2749 = vrot.lane.b32.xlu1 %v5744_v22, %s6776_s24 }
 0xa7b   : > { %2755 = vrot.lane.b32.xlu0 %v5754_v58, %s6776_s24  ;;  %2837 = vrot.lane.b32.xlu1 %v5738_v3, %s6774_s27 }
 0xa7d   : > { %v3346_v13 = vpop.permute.xlu0 %3345  ;;  %v3344_v23 = vpop.permute.xlu1 %3343 }
 0xa7e   : > { %v3350_v59 = vsel %vm1545_vm3, %v3344_v23, %v3346_v13 }
 0xa7f   : > { %v3376_v46 = vmul.f32 %v3362_v5, %v3350_v59  ;;  %2753 = vrot.lane.b32.xlu0 %v5738_v3, %s6776_s24  ;;  %2795 = vrot.lane.b32.xlu1 %v5738_v3, %s6775_s23 }
 0xa81   : > { %v3302_v25 = vpop.permute.xlu0 %3301  ;;  %3858 = vmatprep.subr.mxu0 %v3376_v46  ;;  %v3342_v14 = vpop.permute.xlu1 %3341 }
 0xa82   : > { %v3351_v43 = vsel %vm1545_vm3, %v3342_v14, %v3344_v23  ;;  %v4467_v23 = vld [vmem:[%s6642_s1 + $0x23] ss:$8 sm:$0xf] }
 0xa83   : > { %v3375_v37 = vmul.f32 %v3358_v15, %v3351_v43  ;;  %3429 = vrot.lane.b32.xlu0 %v5738_v3, %s6777_s17  ;;  %3427 = vrot.lane.b32.xlu1 %v5736_v4, %s6777_s17  ;;  %v5943_v43 = vld [vmem:[%s6642_s1 + $0x22] ss:$8 sm:$0xf] }
 0xa85   : > { %v3300_v1 = vpop.permute.xlu0 %3299  ;;  %3859 = vmatpush1.msra.mxu0 %v3375_v37  ;;  %v3304_v8 = vpop.permute.xlu1 %3303 }
 0xa86   : > { %v3309_v12 = vsel %vm1501_vm4, %v3300_v1, %v3302_v25  ;;  %v3308_v61 = vsel %vm1501_vm4, %v3302_v25, %v3304_v8  ;;  %v3228_v25 = vrot.slane %v4467_v23, %v4865_v21 }
 0xa87   : > { %v3333_v53 = vmul.f32 %v3316_v36, %v3309_v12  ;;  %v3334_v56 = vmul.f32 %v3320_v33, %v3308_v61  ;;  %3385 = vrot.lane.b32.xlu0 %v5736_v4, %s6778_s18  ;;  %3425 = vrot.lane.b32.xlu1 %v5744_v22, %s6777_s17  ;;  %v3190_v12 = vrot.slane %v5943_v43, %v4856_v19 }
 0xa89   : > { %v3254_v42 = vpop.permute.xlu0 %3253  ;;  %3860 = vmatprep.subr.mxu0 %v3334_v56  ;;  %v3348_v50 = vpop.permute.xlu1 %3347  ;;  %v3186_v56 = vrot.slane %v5943_v43, %v4865_v21 }
 0xa8a   : > { %v3349_v20 = vsel %vm1545_vm3, %v3346_v13, %v3348_v50  ;;  %v3352_v7 = vsel %vm1545_vm3, %v3348_v50, %v3342_v14  ;;  %3861 = vmatpush1.msra.mxu0 %v3333_v53  ;;  %v3232_v14 = vrot.slane %v4467_v23, %v4856_v19  ;;  %vm6780_vm3 = vmmov %vm6779_vm2 }
 0xa8b   : > { %v3377_v52 = vmul.f32 %v3366_v45, %v3349_v20  ;;  %v3378_v24 = vmul.f32 %v3370_v57, %v3352_v7  ;;  %3383 = vrot.lane.b32.xlu0 %v5744_v22, %s6778_s18  ;;  %3387 = vrot.lane.b32.xlu1 %v5738_v3, %s6778_s18  ;;  %v3278_v57 = vrot.slane %v5895_v62, %v4879_v39 }
 0xa8c   : > { %3862 = vmatprep.subr.mxu0 %v5736_v4 }
 0xa8d   : > { %3863 = vmatpush1.msra.mxu0 %v5744_v22  ;;  %v3306_v11 = vpop.permute.xlu0 %3305  ;;  %3929 = vmatprep.subr.mxu1 %v3378_v24  ;;  %v3256_v27 = vpop.permute.xlu1 %3255  ;;  %v4484_v22 = vld [vmem:[%s6650_s9 + $0x8] sm:$0xff] }
 0xa8e   : > { %v3307_v38 = vsel %vm1501_vm4, %v3304_v8, %v3306_v11  ;;  %v3310_v47 = vsel %vm1501_vm4, %v3306_v11, %v3300_v1  ;;  %v3263_v9 = vsel %vm1453_vm6, %v3254_v42, %v3256_v27  ;;  %3930 = vmatpush1.msra.mxu1 %v3377_v52  ;;  %vm6782_vm4 = vmmov %vm6779_vm2 }
 0xa8f   : > { %v3335_v5 = vmul.f32 %v3324_v29, %v3307_v38  ;;  %v3336_v4 = vmul.f32 %v3328_v32, %v3310_v47  ;;  %v3288_v13 = vmul.f32 %v3274_v60, %v3263_v9  ;;  %3389 = vrot.lane.b32.xlu0 %v5754_v58, %s6778_s18  ;;  %3431 = vrot.lane.b32.xlu1 %v5754_v58, %s6777_s17  ;;  %s521_s17 = scalar_lea.vmem %s6657_s16, %s4504_s29 }
 0xa91   : > { %v3212_v59 = vpop.permute.xlu0 %3211  ;;  %3864 = vmatprep.subr.mxu0 %v3288_v13  ;;  %3931 = vmatprep.subr.mxu1 %v3336_v4  ;;  %v3260_v46 = vpop.permute.xlu1 %3259  ;;  %v5981_v4 = vld [vmem:[%s6642_s1 + $0x20] ss:$8 sm:$0xf] }
 0xa92   : > { %v3264_v15 = vsel %vm1453_vm6, %v3260_v46, %v3254_v42  ;;  %3932 = vmatpush1.msra.mxu1 %v3335_v5  ;;  %v5962_v42 = vld [vmem:[%s6642_s1 + $0x21] ss:$8 sm:$0xf]  ;;  %v3240_v5 = vrot.slane %v4467_v23, %v4881_v40 }
 0xa93   : > { %v3287_v41 = vmul.f32 %v3270_v55, %v3264_v15  ;;  %3852 = vperm.xlu1 %4533, %v4484_v22   ;;  %3933 = vmatprep.subr.mxu1 %v5754_v58  ;;  %v3148_v60 = vrot.slane %v5962_v42, %v4856_v19  ;;  %v3144_v55 = vrot.slane %v5962_v42, %v4865_v21 }
 0xa94   : > { %3934 = vmatpush1.msra.mxu1 %v5738_v3 }
 0xa95   : > { %v3218_v37 = vpop.permute.xlu0 %3217  ;;  %3865 = vmatpush1.msra.mxu0 %v3287_v41  ;;  %v3214_v36 = vpop.permute.xlu1 %3213 }
 0xa96   : > { %v3222_v33 = vsel %vm1409_vm7, %v3218_v37, %v3212_v59  ;;  %v3221_v58 = vsel %vm1409_vm7, %v3212_v59, %v3214_v36 }
 0xa97   : > { %v3245_v1 = vmul.f32 %v3228_v25, %v3222_v33  ;;  %v3246_v8 = vmul.f32 %v3232_v14, %v3221_v58  ;;  %v3106_v14 = vrot.slane %v5981_v4, %v4856_v19 }
 0xa99   : > { %v3172_v3 = vpop.permute.xlu0 %3171  ;;  %3866 = vmatprep.subr.mxu0 %v3246_v8  ;;  %v3170_v61 = vpop.permute.xlu1 %3169  ;;  %v3194_v8 = vrot.slane %v5943_v43, %v4879_v39 }
 0xa9a   : > { %v3179_v45 = vsel %vm1365_vm8, %v3170_v61, %v3172_v3  ;;  %3867 = vmatpush1.msra.mxu0 %v3245_v1 }
 0xa9b   : > { %v3204_v53 = vmul.f32 %v3190_v12, %v3179_v45  ;;  %v3198_v12 = vrot.slane %v5943_v43, %v4881_v40 }
 0xa9d   : > { %v3176_v50 = vpop.permute.xlu0 %3175  ;;  %3868 = vmatprep.subr.mxu0 %v3204_v53  ;;  %v3258_v29 = vpop.permute.xlu1 %3257 }
 0xa9e   : > { %v3180_v20 = vsel %vm1365_vm8, %v3176_v50, %v3170_v61  ;;  %v3261_v7 = vsel %vm1453_vm6, %v3258_v29, %v3260_v46  ;;  %v3262_v32 = vsel %vm1453_vm6, %v3256_v27, %v3258_v29  ;;  %v3236_v27 = vrot.slane %v4467_v23, %v4879_v39  ;;  %v6005_v61 = vld [vmem:[%s6642_s1 + $0x7] ss:$8 sm:$0xf] }
 0xa9f   : > { %v3203_v52 = vmul.f32 %v3186_v56, %v3180_v20  ;;  %v3289_v24 = vmul.f32 %v3278_v57, %v3262_v32  ;;  %v3290_v62 = vmul.f32 %v3282_v30, %v3261_v7  ;;  %v3064_v7 = vrot.slane %v6005_v61, %v4856_v19 }
 0xaa0   : > { %vm6784_vm6 = vcmp.lt.s32.totalorder %v4854_v18, 72 }
 0xaa1   : > { %v3130_v11 = vpop.permute.xlu0 %3129  ;;  %3869 = vmatpush1.msra.mxu0 %v3203_v52  ;;  %3935 = vmatprep.subr.mxu1 %v3290_v62  ;;  %v3128_v38 = vpop.permute.xlu1 %3127  ;;  %v3152_v62 = vrot.slane %v5962_v42, %v4879_v39 }
 0xaa2   : > { %v3137_v47 = vsel %vm1321_vm9, %v3128_v38, %v3130_v11  ;;  %3936 = vmatpush1.msra.mxu1 %v3289_v24 }
 0xaa3   : > { %v3162_v9 = vmul.f32 %v3148_v60, %v3137_v47  ;;  %v3156_v60 = vrot.slane %v5962_v42, %v4881_v40 }
 0xaa5   : > { %v3134_v13 = vpop.permute.xlu0 %3133  ;;  %3870 = vmatprep.subr.mxu0 %v3162_v9  ;;  %v3216_v22 = vpop.permute.xlu1 %3215 }
 0xaa6   : > { %v3138_v59 = vsel %vm1321_vm9, %v3134_v13, %v3128_v38  ;;  %v3219_v46 = vsel %vm1409_vm7, %v3216_v22, %v3218_v37  ;;  %v3220_v15 = vsel %vm1409_vm7, %v3214_v36, %v3216_v22  ;;  %v3102_v36 = vrot.slane %v5981_v4, %v4865_v21  ;;  %v6032_v38 = vld [vmem:[%s6642_s1 + $0x6] ss:$8 sm:$0xf]  ;;  %vm6785_vm7 = vmmov %vm6784_vm6 }
 0xaa7   : > { %v3161_v41 = vmul.f32 %v3144_v55, %v3138_v59  ;;  %v3247_v25 = vmul.f32 %v3236_v27, %v3220_v15  ;;  %v3248_v23 = vmul.f32 %v3240_v5, %v3219_v46  ;;  %v3022_v46 = vrot.slane %v6032_v38, %v4856_v19 }
 0xaa9   : > { %v3088_v33 = vpop.permute.xlu0 %3087  ;;  %3871 = vmatpush1.msra.mxu0 %v3161_v41  ;;  %3937 = vmatprep.subr.mxu1 %v3248_v23  ;;  %v3086_v58 = vpop.permute.xlu1 %3085  ;;  %v3110_v23 = vrot.slane %v5981_v4, %v4879_v39 }
 0xaaa   : > { %v5993_v1 = vsel %vm1277_vm10, %v3086_v58, %v3088_v33  ;;  %3938 = vmatpush1.msra.mxu1 %v3247_v25 }
 0xaab   : > { %v3120_v37 = vmul.f32 %v3106_v14, %v5993_v1  ;;  %v3114_v14 = vrot.slane %v5981_v4, %v4881_v40 }
 0xaad   : > { %v3092_v45 = vpop.permute.xlu0 %3091  ;;  %3872 = vmatprep.subr.mxu0 %v3120_v37  ;;  %v3174_v53 = vpop.permute.xlu1 %3173 }
 0xaae   : > { %v6009_v56 = vsel %vm1277_vm10, %v3092_v45, %v3086_v58  ;;  %v3177_v57 = vsel %vm1365_vm8, %v3174_v53, %v3176_v50  ;;  %v3178_v30 = vsel %vm1365_vm8, %v3172_v3, %v3174_v53  ;;  %v3060_v3 = vrot.slane %v6005_v61, %v4865_v21  ;;  %v6059_v58 = vld [vmem:[%s6642_s1 + $0x5] ss:$8 sm:$0xf] }
 0xaaf   : > { %v3119_v43 = vmul.f32 %v3102_v36, %v6009_v56  ;;  %v3205_v29 = vmul.f32 %v3194_v8, %v3178_v30  ;;  %v3206_v20 = vmul.f32 %v3198_v12, %v3177_v57  ;;  %vm6788_vm8 = vcmp.lt.s32.totalorder %v4854_v18, 73 }
 0xab1   : > { %v3046_v32 = vpop.permute.xlu0 %3045  ;;  %3873 = vmatpush1.msra.mxu0 %v3119_v43  ;;  %3939 = vmatprep.subr.mxu1 %v3206_v20  ;;  %v3044_v52 = vpop.permute.xlu1 %3043  ;;  %v2980_v43 = vrot.slane %v6059_v58, %v4856_v19 }
 0xab2   : > { %v6020_v24 = vsel %vm1233_vm11, %v3044_v52, %v3046_v32  ;;  %3940 = vmatpush1.msra.mxu1 %v3205_v29 }
 0xab3   : > { %v3078_v50 = vmul.f32 %v3064_v7, %v6020_v24  ;;  %v2976_v7 = vrot.slane %v6059_v58, %v4865_v21 }
 0xab5   : > { %v3050_v47 = vpop.permute.xlu0 %3049  ;;  %3874 = vmatprep.subr.mxu0 %v3078_v50  ;;  %v3132_v9 = vpop.permute.xlu1 %3131  ;;  %v3072_v50 = vrot.slane %v6005_v61, %v4881_v40 }
 0xab6   : > { %v6036_v55 = vsel %vm1233_vm11, %v3050_v47, %v3044_v52  ;;  %v3135_v27 = vsel %vm1321_vm9, %v3132_v9, %v3134_v13  ;;  %v3136_v5 = vsel %vm1321_vm9, %v3130_v11, %v3132_v9  ;;  %v3018_v11 = vrot.slane %v6032_v38, %v4865_v21  ;;  %vm6789_vm9 = vmmov %vm6788_vm8 }
 0xab7   : > { %v3077_v42 = vmul.f32 %v3060_v3, %v6036_v55  ;;  %v3163_v22 = vmul.f32 %v3152_v62, %v3136_v5  ;;  %v3164_v59 = vmul.f32 %v3156_v60, %v3135_v27  ;;  %v3068_v52 = vrot.slane %v6005_v61, %v4879_v39  ;;  %v6092_v3 = vld [vmem:[%s6642_s1 + $0x4] ss:$8 sm:$0xf] }
 0xab9   : > { %v3004_v15 = vpop.permute.xlu0 %3003  ;;  %3875 = vmatpush1.msra.mxu0 %v3077_v42  ;;  %3941 = vmatprep.subr.mxu1 %v3164_v59  ;;  %v3002_v41 = vpop.permute.xlu1 %3001  ;;  %v2938_v59 = vrot.slane %v6092_v3, %v4856_v19 }
 0xaba   : > { %v6047_v25 = vsel %vm1189_vm12, %v3002_v41, %v3004_v15  ;;  %3942 = vmatpush1.msra.mxu1 %v3163_v22 }
 0xabb   : > { %v3036_v13 = vmul.f32 %v3022_v46, %v6047_v25 }
 0xabd   : > { %v3008_v37 = vpop.permute.xlu0 %3007  ;;  %3876 = vmatprep.subr.mxu0 %v3036_v13  ;;  %v3090_v36 = vpop.permute.xlu1 %3089  ;;  %v2934_v13 = vrot.slane %v6092_v3, %v4865_v21 }
 0xabe   : > { %v6063_v8 = vsel %vm1189_vm12, %v3008_v37, %v3002_v41  ;;  %v6067_v12 = vsel %vm1277_vm10, %v3090_v36, %v3092_v45  ;;  %v6071_v53 = vsel %vm1277_vm10, %v3088_v33, %v3090_v36  ;;  %vm6790_vm10 = vmmov %vm6784_vm6 }
 0xabf   : > { %v3035_v4 = vmul.f32 %v3018_v11, %v6063_v8  ;;  %v3121_v57 = vmul.f32 %v3110_v23, %v6071_v53  ;;  %v3122_v30 = vmul.f32 %v3114_v14, %v6067_v12  ;;  %v3026_v11 = vrot.slane %v6032_v38, %v4879_v39  ;;  %v6125_v14 = vld [vmem:[%s6642_s1 + $0x3] ss:$8 sm:$0xf] }
 0xac0   : > { %v3030_v23 = vrot.slane %v6032_v38, %v4881_v40 }
 0xac1   : > { %v2962_v29 = vpop.permute.xlu0 %2961  ;;  %3877 = vmatpush1.msra.mxu0 %v3035_v4  ;;  %3943 = vmatprep.subr.mxu1 %v3122_v30  ;;  %v2960_v20 = vpop.permute.xlu1 %2959 }
 0xac2   : > { %v6080_v45 = vsel %vm1145_vm13, %v2960_v20, %v2962_v29  ;;  %3944 = vmatpush1.msra.mxu1 %v3121_v57 }
 0xac3   : > { %v2994_v33 = vmul.f32 %v2980_v43, %v6080_v45 }
 0xac5   : > { %v2966_v62 = vpop.permute.xlu0 %2965  ;;  %3878 = vmatprep.subr.mxu0 %v2994_v33  ;;  %v3048_v60 = vpop.permute.xlu1 %3047 }
 0xac6   : > { %v6096_v9 = vsel %vm1145_vm13, %v2966_v62, %v2960_v20  ;;  %v6100_v27 = vsel %vm1233_vm11, %v3048_v60, %v3050_v47  ;;  %v6104_v5 = vsel %vm1233_vm11, %v3046_v32, %v3048_v60  ;;  %v2892_v60 = vrot.slane %v6125_v14, %v4865_v21  ;;  %vm6791_vm11 = vmmov %vm6784_vm6 }
 0xac7   : > { %v2993_v61 = vmul.f32 %v2976_v7, %v6096_v9  ;;  %v3079_v42 = vmul.f32 %v3068_v52, %v6104_v5  ;;  %v3080_v22 = vmul.f32 %v3072_v50, %v6100_v27  ;;  %v2896_v7 = vrot.slane %v6125_v14, %v4856_v19 }
 0xac9   : > { %v2920_v46 = vpop.permute.xlu0 %2919  ;;  %3879 = vmatpush1.msra.mxu0 %v2993_v61  ;;  %3945 = vmatprep.subr.mxu1 %v3080_v22  ;;  %v2918_v41 = vpop.permute.xlu1 %2917  ;;  %v2984_v61 = vrot.slane %v6059_v58, %v4879_v39  ;;  %v6158_v22 = vld [vmem:[%s6642_s1 + $0x2] ss:$8 sm:$0xf] }
 0xaca   : > { %v6113_v47 = vsel %vm6779_vm2, %v2918_v41, %v2920_v46  ;;  %3946 = vmatpush1.msra.mxu1 %v3079_v42  ;;  %v2988_v42 = vrot.slane %v6059_v58, %v4881_v40  ;;  %v2862_v31 = vrot.slane %v6158_v22, %v4881_v40 }
 0xacb   : > { %v2952_v32 = vmul.f32 %v2938_v59, %v6113_v47 }
 0xacd   : > { %v2924_v36 = vpop.permute.xlu0 %2923  ;;  %3880 = vmatprep.subr.mxu0 %v2952_v32  ;;  %v3006_v4 = vpop.permute.xlu1 %3005 }
 0xace   : > { %v6129_v57 = vsel %vm6780_vm3, %v2924_v36, %v2918_v41  ;;  %v6133_v30 = vsel %vm1189_vm12, %v3006_v4, %v3008_v37  ;;  %v6137_v43 = vsel %vm1189_vm12, %v3004_v15, %v3006_v4  ;;  %vm6792_vm12 = vmmov %vm6788_vm8 }
 0xacf   : > { %v2951_v38 = vmul.f32 %v2934_v13, %v6129_v57  ;;  %v3037_v20 = vmul.f32 %v3026_v11, %v6137_v43  ;;  %v3038_v33 = vmul.f32 %v3030_v23, %v6133_v30 }
 0xad1   : > { %v2878_v52 = vpop.permute.xlu0 %2877  ;;  %3881 = vmatpush1.msra.mxu0 %v2951_v38  ;;  %3947 = vmatprep.subr.mxu1 %v3038_v33  ;;  %v2876_v50 = vpop.permute.xlu1 %2875  ;;  %v2854_v38 = vrot.slane %v6158_v22, %v4856_v19 }
 0xad2   : > { %v6146_v37 = vsel %vm1057_vm15, %v2876_v50, %v2878_v52  ;;  %3948 = vmatpush1.msra.mxu1 %v3037_v20 }
 0xad3   : > { %v2910_v15 = vmul.f32 %v2896_v7, %v6146_v37  ;;  %v2850_v7 = vrot.slane %v6158_v22, %v4865_v21 }
 0xad5   : > { %v2882_v59 = vpop.permute.xlu0 %2881  ;;  %3882 = vmatprep.subr.mxu0 %v2910_v15  ;;  %v2964_v41 = vpop.permute.xlu1 %2963  ;;  %v2946_v15 = vrot.slane %v6092_v3, %v4881_v40 }
 0xad6   : > { %v6162_v32 = vsel %vm1057_vm15, %v2882_v59, %v2876_v50  ;;  %v6166_v13 = vsel %vm1145_vm13, %v2964_v41, %v2966_v62  ;;  %v6170_v11 = vsel %vm1145_vm13, %v2962_v29, %v2964_v41  ;;  %v2942_v50 = vrot.slane %v6092_v3, %v4879_v39  ;;  %vm6793_vm13 = vmmov %vm6788_vm8 }
 0xad7   : > { %v2909_v58 = vmul.f32 %v2892_v60, %v6162_v32  ;;  %v2995_v23 = vmul.f32 %v2984_v61, %v6170_v11  ;;  %v2996_v4 = vmul.f32 %v2988_v42, %v6166_v13  ;;  %v6194_v60 = vld [vmem:[%s6642_s1 + $0x1] ss:$8 sm:$0xf] }
 0xad9   : > { %v6177_v20 = vpop.permute.xlu0 %2835  ;;  %3883 = vmatpush1.msra.mxu0 %v2909_v58  ;;  %3949 = vmatprep.subr.mxu1 %v2996_v4  ;;  %v2834_v33 = vpop.permute.xlu1 %2833 }
 0xada   : > { %v6182_v62 = vsel %vm1013_vm0, %v2834_v33, %v6177_v20  ;;  %3950 = vmatpush1.msra.mxu1 %v2995_v23 }
 0xadb   : > { %v2868_v29 = vmul.f32 %v2854_v38, %v6182_v62 }
 0xadd   : > { %v6196_v61 = vpop.permute.xlu0 %2839  ;;  %3884 = vmatprep.subr.mxu0 %v2868_v29  ;;  %v2922_v42 = vpop.permute.xlu1 %2921  ;;  %v2812_v29 = vrot.slane %v6194_v60, %v4856_v19 }
 0xade   : > { %v6201_v41 = vsel %vm1013_vm0, %v6196_v61, %v2834_v33  ;;  %v6205_v58 = vsel %vm6782_vm4, %v2922_v42, %v2924_v36  ;;  %v6209_v3 = vsel %vm6783_vm5, %v2920_v46, %v2922_v42  ;;  %v6233_v42 = vld [vmem:[%s6642_s1] ss:$8 sm:$0xf] }
 0xadf   : > { %6781 = vst [vmem:[#allocation9_spill] sm:$0xff] %v6201_v41  ;;  %v2867_v23 = vmul.f32 %v2850_v7, %v6201_v41  ;;  %v2953_v4 = vmul.f32 %v2942_v50, %v6209_v3  ;;  %v2954_v38 = vmul.f32 %v2946_v15, %v6205_v58  ;;  %v2808_v7 = vrot.slane %v6194_v60, %v4865_v21 }
 0xae0   : > { %v2900_v50 = vrot.slane %v6125_v14, %v4879_v39  ;;  %v2904_v15 = vrot.slane %v6125_v14, %v4881_v40  ;;  %v2770_v17 = vrot.slane %v6233_v42, %v4856_v19 }
 0xae1   : > { %v6216_v35 = vpop.permute.xlu0 %2793  ;;  %3885 = vmatpush1.msra.mxu0 %v2867_v23  ;;  %3951 = vmatprep.subr.mxu1 %v2954_v38  ;;  %v2792_v33 = vpop.permute.xlu1 %2791  ;;  %v6238_v23 = vld [vmem:[%s6642_s1 + $0x62] ss:$8 sm:$0xf] }
 0xae2   : > { %v6221_v36 = vsel %vm6784_vm6, %v2792_v33, %v6216_v35  ;;  %3952 = vmatpush1.msra.mxu1 %v2953_v4  ;;  %v3716_v49 = vrot.slane %v6238_v23, %v4856_v19 }
 0xae3   : > { %v2826_v46 = vmul.f32 %v2812_v29, %v6221_v36  ;;  %v6245_v29 = vld [vmem:[%s6642_s1 + $0x61] ss:$8 sm:$0xf] }
 0xae4   : > { %v3730_v41 = vmul.f32 %v3716_v49, %v6071_v53 }
 0xae5   : > { %v6240_v4 = vpop.permute.xlu0 %2797  ;;  %3886 = vmatprep.subr.mxu0 %v2826_v46  ;;  %v2880_v38 = vpop.permute.xlu1 %2879  ;;  %v6263_v46 = vld [vmem:[%s6642_s1 + $0x60] ss:$8 sm:$0xf] }
 0xae6   : > { %v6250_v14 = vsel %vm6785_vm7, %v6240_v4, %v2792_v33  ;;  %v6254_v48 = vsel %vm1057_vm15, %v2880_v38, %v2882_v59  ;;  %v6258_v26 = vsel %vm1057_vm15, %v2878_v52, %v2880_v38  ;;  %v3712_v59 = vrot.slane %v6238_v23, %v4865_v21 }
 0xae7   : > { %6786 = vst [vmem:[#allocation10_spill] sm:$0xff] %v6250_v14  ;;  %6787 = vst [vmem:[#allocation13_spill] sm:$0xff] %v6254_v48  ;;  %v2825_v0 = vmul.f32 %v2808_v7, %v6250_v14  ;;  %v2911_v28 = vmul.f32 %v2900_v50, %v6258_v26  ;;  %v2912_v33 = vmul.f32 %v2904_v15, %v6254_v48  ;;  %v6281_v7 = vld [vmem:[%s6642_s1 + $0x47] ss:$8 sm:$0xf]  ;;  %vm6807_vm15 = vcmp.lt.s32.totalorder %v4854_v18, 120 }
 0xae8   : > { %v3682_v38 = vrot.slane %v6245_v29, %v4865_v21  ;;  %v2858_v52 = vrot.slane %v6158_v22, %v4879_v39  ;;  %v2816_v48 = vrot.slane %v6194_v60, %v4879_v39  ;;  %v3729_v53 = vmul.f32 %v3712_v59, %v5993_v1 }
 0xae9   : > { %v2752_v50 = vpop.permute.xlu0 %2751  ;;  %3887 = vmatpush1.msra.mxu0 %v2825_v0  ;;  %3953 = vmatprep.subr.mxu1 %v2912_v33  ;;  %v2750_v15 = vpop.permute.xlu1 %2749  ;;  %v2766_v33 = vrot.slane %v6233_v42, %v4865_v21  ;;  %v3544_v59 = vrot.slane %v6331_v10, %v4881_v40 }
 0xaea   : > { %v6296_v44 = vsel %vm6788_vm8, %v2750_v15, %v2752_v50  ;;  %3954 = vmatpush1.msra.mxu1 %v2911_v28  ;;  %v3656_v28 = vrot.slane %v6263_v46, %v4856_v19 }
 0xaeb   : > { %v2784_v0 = vmul.f32 %v2770_v17, %v6296_v44  ;;  %v3686_v17 = vrot.slane %v6245_v29, %v4856_v19 }
 0xaed   : > { %v2756_v54 = vpop.permute.xlu0 %2755  ;;  %3888 = vmatprep.subr.mxu0 %v2784_v0  ;;  %v2838_v51 = vpop.permute.xlu1 %2837  ;;  %v3700_v1 = vmul.f32 %v3686_v17, %v6104_v5  ;;  %v3670_v17 = vmul.f32 %v3656_v28, %v6137_v43  ;;  %v6794_v43 = vrot.slane %v6263_v46, %v4865_v21  ;;  %v3566_v28 = vrot.slane %v6316_v2, %v4856_v19 }
 0xaee   : > { %v6335_v22 = vsel %vm6789_vm9, %v2756_v54, %v2750_v15  ;;  %v6340_v6 = vsel %vm1013_vm0, %v2838_v51, %v6196_v61  ;;  %v6345_v0 = vsel %vm1013_vm0, %v6177_v20, %v2838_v51  ;;  %v2820_v51 = vrot.slane %v6194_v60, %v4881_v40  ;;  %v6369_v61 = vld [vmem:[%s6642_s1 + $0x43] ss:$8 sm:$0xf]  ;;  %vm6809_vm0 = vmmov %vm6807_vm15 }
 0xaef   : > { %v2783_v34 = vmul.f32 %v2766_v33, %v6335_v22  ;;  %v2869_v14 = vmul.f32 %v2858_v52, %v6345_v0  ;;  %v2870_v15 = vmul.f32 %v2862_v31, %v6340_v6  ;;  %v3626_v20 = vrot.slane %v6281_v7, %v4856_v19  ;;  %vm6813_vm2 = vmmov %vm6809_vm0 }
 0xaf0   : > { %v2778_v60 = vrot.slane %v6233_v42, %v4881_v40  ;;  %vm6815_vm3 = vmmov %vm6809_vm0 }
 0xaf1   : > { %v2754_v52 = vpop.permute.xlu0 %2753  ;;  %3889 = vmatpush1.msra.mxu0 %v2783_v34  ;;  %3955 = vmatprep.subr.mxu1 %v2870_v15  ;;  %v2796_v49 = vpop.permute.xlu1 %2795  ;;  %v2774_v15 = vrot.slane %v6233_v42, %v4879_v39  ;;  %v3596_v42 = vrot.slane %v6292_v63, %v4856_v19 }
 0xaf2   : > { %v6376_v33 = vsel %vm6790_vm10, %v2796_v49, %v6240_v4  ;;  %v6381_v34 = vsel %vm6791_vm11, %v6216_v35, %v2796_v49  ;;  %3900 = vmatprep.subr.mxu0 %v3730_v41  ;;  %v6390_v31 = vsel %vm6792_vm12, %v2754_v52, %v2756_v54  ;;  %3956 = vmatpush1.msra.mxu1 %v2869_v14  ;;  %v6409_v14 = vld [vmem:[%s6642_s1 + $0x42] ss:$8 sm:$0xf] }
 0xaf3   : > { %v3699_v4 = vmul.f32 %v3682_v38, %v6020_v24  ;;  %v6395_v35 = vsel %vm6793_vm13, %v2752_v50, %v2754_v52  ;;  %v2827_v41 = vmul.f32 %v2816_v48, %v6381_v34  ;;  %v2828_v5 = vmul.f32 %v2820_v51, %v6376_v33  ;;  %3901 = vmatpush2.msra.mxu0 %v3729_v53 }
 0xaf4   : > { %v3600_v54 = vrot.slane %v6292_v63, %v4879_v39  ;;  %v3502_v24 = vrot.slane %v6369_v61, %v4865_v21  ;;  %3902 = vmatprep.subr.mxu0 %v3700_v1  ;;  %v3669_v50 = vmul.f32 %v6794_v43, %v6047_v25  ;;  %v2786_v51 = vmul.f32 %v2778_v60, %v6390_v31 }
 0xaf5   : > { %v6411_v48 = vpop.permute.xlu0 %3429  ;;  %v6413_v38 = vpop.permute.xlu1 %3427  ;;  %3903 = vmatpush2.msra.mxu0 %v3699_v4  ;;  %3957 = vmatprep.subr.mxu1 %v2828_v5  ;;  %v3640_v52 = vmul.f32 %v3626_v20, %v6170_v11  ;;  %v3570_v49 = vrot.slane %v6316_v2, %v4879_v39  ;;  %v2785_v53 = vmul.f32 %v2774_v15, %v6395_v35 }
 0xaf6   : > { %3904 = vmatprep.subr.mxu0 %v3670_v17  ;;  %3958 = vmatpush1.msra.mxu1 %v2827_v41  ;;  %v6795_v25 = vrot.slane %v6238_v23, %v4881_v40  ;;  %v6796_v60 = vrot.slane %v6281_v7, %v4865_v21  ;;  %v3472_v11 = vrot.slane %v6409_v14, %v4865_v21 }
 0xaf7   : > { %3905 = vmatpush2.msra.mxu0 %v3669_v50  ;;  %3959 = vmatprep.subr.mxu1 %v2786_v51  ;;  %v6797_v20 = vrot.slane %v6238_v23, %v4879_v39  ;;  %v3610_v41 = vmul.f32 %v3596_v42, %v6209_v3  ;;  %v6799_v43 = vrot.slane %v6292_v63, %v4865_v21  ;;  %v6458_v3 = vld [vmem:[%s6642_s1 + $0x41] ss:$8 sm:$0xf] }
 0xaf8   : > { %v3732_v1 = vmul.f32 %v6795_v25, %v6009_v56  ;;  %v3639_v4 = vmul.f32 %v6796_v60, %v6080_v45  ;;  %v3536_v56 = vrot.slane %v6331_v10, %v4856_v19  ;;  %3906 = vmatprep.subr.mxu0 %v3640_v52  ;;  %3960 = vmatpush1.msra.mxu1 %v2785_v53 }
 0xaf9   : > { %v3731_v15 = vmul.f32 %v6797_v20, %v6067_v12  ;;  %v6443_v5 = vpop.permute.xlu1 %3425  ;;  %v6798_v45 = vrot.slane %v6245_v29, %v4881_v40  ;;  %v3609_v23 = vmul.f32 %v6799_v43, %v6113_v47  ;;  %v3540_v12 = vrot.slane %v6331_v10, %v4879_v39  ;;  %v3386_v42 = vpop.permute.xlu0 %3385 }
 0xafa   : > { %3907 = vmatpush2.msra.mxu0 %v3639_v4  ;;  %3971 = vmatprep.subr.mxu1 %v3732_v1  ;;  %v3580_v51 = vmul.f32 %v3566_v28, %v6258_v26  ;;  %v3506_v47 = vrot.slane %v6369_v61, %v4856_v19  ;;  %v6801_v52 = vrot.slane %v6263_v46, %v4881_v40  ;;  %v6480_v26 = vld [vmem:[%s6642_s1 + $0x40] ss:$8 sm:$0xf] }
 0xafb   : > { %v3702_v17 = vmul.f32 %v6798_v45, %v6036_v55  ;;  %v6800_v55 = vrot.slane %v6245_v29, %v4879_v39  ;;  %3908 = vmatprep.subr.mxu0 %v3610_v41  ;;  %3972 = vmatpush2.msra.mxu1 %v3731_v15  ;;  %v3579_v25 = vmul.f32 %v3562_v16, %v6146_v37 }
 0xafc   : > { %v3672_v53 = vmul.f32 %v6801_v52, %v6063_v8  ;;  %3909 = vmatpush2.msra.mxu0 %v3609_v23  ;;  %v6802_v29 = vrot.slane %v6263_v46, %v4879_v39  ;;  %v3550_v28 = vmul.f32 %v3536_v56, %v6345_v0  ;;  %v3446_v16 = vrot.slane %v6458_v3, %v4856_v19 }
 0xafd   : > { %v3701_v50 = vmul.f32 %v6800_v55, %v6100_v27  ;;  %v3476_v27 = vrot.slane %v6409_v14, %v4856_v19  ;;  %3973 = vmatprep.subr.mxu1 %v3702_v17  ;;  %3910 = vmatprep.subr.mxu0 %v3580_v51  ;;  %v6803_v37 = vrot.slane %v6281_v7, %v4881_v40  ;;  %v3388_v15 = vpop.permute.xlu1 %3387 }
 0xafe   : > { %v3671_v8 = vmul.f32 %v6802_v29, %v6133_v30  ;;  %v6804_v60 = vrot.slane %v6331_v10, %v4865_v21  ;;  %v3442_v30 = vrot.slane %v6458_v3, %v4865_v21  ;;  %3911 = vmatpush2.msra.mxu0 %v3579_v25  ;;  %v6805_v46 = vrot.slane %v6281_v7, %v4879_v39  ;;  %v3384_v7 = vpop.permute.xlu0 %3383 }
 0xaff   : > { %3974 = vmatpush2.msra.mxu1 %v3701_v50  ;;  %v3642_v1 = vmul.f32 %v6803_v37, %v6096_v9  ;;  %v3520_v20 = vmul.f32 %v3506_v47, %v6381_v34  ;;  %v3400_v9 = vrot.slane %v6480_v26, %v4865_v21  ;;  %3912 = vmatprep.subr.mxu0 %v3550_v28  ;;  %v6812_v50 = vld [vmem:[#allocation10_spill] sm:$0xff] }
 0xb00   : > { %v3549_v4 = vmul.f32 %v6804_v60, %v6182_v62  ;;  %3975 = vmatprep.subr.mxu1 %v3672_v53  ;;  %v3641_v0 = vmul.f32 %v6805_v46, %v6166_v13  ;;  %v6806_v62 = vrot.slane %v6292_v63, %v4881_v40  ;;  %v3519_v56 = vmul.f32 %v3502_v24, %v6221_v36 }
 0xb01   : > { %3976 = vmatpush2.msra.mxu1 %v3671_v8  ;;  %v3434_v13 = vsel %vm1633_vm14, %v6413_v38, %v6411_v48  ;;  %v3490_v21 = vmul.f32 %v3476_v27, %v6395_v35  ;;  %v3435_v34 = vsel %vm1633_vm14, %v6443_v5, %v6413_v38  ;;  %v3611_v36 = vmul.f32 %v3600_v54, %v6205_v58  ;;  %v6810_v58 = vld [vmem:[#allocation13_spill] sm:$0xff]  ;;  %v3432_v55 = vpop.permute.xlu1 %3431 }
 0xb02   : > { %v3612_v41 = vmul.f32 %v6806_v62, %v6129_v57  ;;  %3913 = vmatpush2.msra.mxu0 %v3549_v4  ;;  %3977 = vmatprep.subr.mxu1 %v3642_v1  ;;  %v3404_v57 = vrot.slane %v6480_v26, %v4856_v19  ;;  %v3489_v24 = vmul.f32 %v3472_v11, %v6296_v44  ;;  %v3390_v47 = vpop.permute.xlu0 %3389  ;;  %v6814_v27 = vmov 0.0  }
 0xb03   : > { %3914 = vmatprep.subr.mxu0 %v3520_v20  ;;  %3978 = vmatpush2.msra.mxu1 %v3641_v0  ;;  %v3392_v35 = vsel %vm6807_vm15, %v3386_v42, %v3388_v15  ;;  %v6808_v38 = vrot.slane %v6316_v2, %v4881_v40  ;;  %v3514_v19 = vrot.slane %v6369_v61, %v4881_v40  ;;  %v4487_v0 = vld [vmem:[%s6651_s10 + $0x8] sm:$0xff]  ;;  %v4491_v20 = vld [vmem:[%s6654_s13 + $0x10] sm:$0xff] }
 0xb04   : > { %3915 = vmatpush2.msra.mxu0 %v3519_v56  ;;  %3979 = vmatprep.subr.mxu1 %v3612_v41  ;;  %v3460_v17 = vmul.f32 %v3446_v16, %v3434_v13  ;;  %v3393_v63 = vsel %vm6809_vm0, %v3384_v7, %v3386_v42  ;;  %v3581_v44 = vmul.f32 %v3570_v49, %v6810_v58 }
 0xb05   : > { %v3582_v45 = vmul.f32 %v6808_v38, %v6162_v32  ;;  %3916 = vmatprep.subr.mxu0 %v3490_v21  ;;  %v3510_v54 = vrot.slane %v6369_v61, %v4879_v39  ;;  %v3459_v11 = vmul.f32 %v3442_v30, %v3435_v34  ;;  %3980 = vmatpush2.msra.mxu1 %v3611_v36  ;;  %v6811_v32 = vld [vmem:[#allocation9_spill] sm:$0xff]  ;;  %v4488_v38 = vld [vmem:[%s6652_s11 + $0x8] sm:$0xff] }
 0xb06   : > { %3917 = vmatpush2.msra.mxu0 %v3489_v24  ;;  %v3552_v43 = vmul.f32 %v3544_v59, %v6811_v32  ;;  %v3484_v23 = vrot.slane %v6409_v14, %v4881_v40  ;;  %v3418_v42 = vmul.f32 %v3404_v57, %v3392_v35  ;;  %v3551_v2 = vmul.f32 %v3540_v12, %v6340_v6  ;;  %v4482_v59 = vld [vmem:[%s6649_s8 + $0x10] sm:$0xff] }
 0xb07   : > { %3981 = vmatprep.subr.mxu1 %v3582_v45  ;;  %3918 = vmatprep.subr.mxu0 %v3460_v17  ;;  %v3480_v61 = vrot.slane %v6409_v14, %v4879_v39  ;;  %v3417_v49 = vmul.f32 %v3400_v9, %v3393_v63  ;;  %v3522_v51 = vmul.f32 %v3514_v19, %v6812_v50  ;;  %v4492_v45 = vld [vmem:[%s6654_s13 + $0x18] sm:$0xff] }
 0xb08   : > { %3982 = vmatpush2.msra.mxu1 %v3581_v44  ;;  %3919 = vmatpush2.msra.mxu0 %v3459_v11  ;;  %v3454_v52 = vrot.slane %v6458_v3, %v4881_v40  ;;  %v3521_v10 = vmul.f32 %v3510_v54, %v6376_v33  ;;  %v3450_v6 = vrot.slane %v6458_v3, %v4879_v39 }
 0xb09   : > { %3983 = vmatprep.subr.mxu1 %v3552_v43  ;;  %3920 = vmatprep.subr.mxu0 %v3418_v42  ;;  %v3436_v14 = vsel %vm1633_vm14, %v3432_v55, %v6443_v5  ;;  %v3492_v12 = vmul.f32 %v3484_v23, %v6335_v22  ;;  %v3412_v53 = vrot.slane %v6480_v26, %v4881_v40 }
 0xb0a   : > { %3984 = vmatpush2.msra.mxu1 %v3551_v2  ;;  %3921 = vmatpush2.msra.mxu0 %v3417_v49  ;;  %v3433_v25 = vsel %vm1633_vm14, %v6411_v48, %v3432_v55  ;;  %v3491_v33 = vmul.f32 %v3480_v61, %v6390_v31  ;;  %v3408_v3 = vrot.slane %v6480_v26, %v4879_v39 }
 0xb0b   : > { %3985 = vmatprep.subr.mxu1 %v3522_v51  ;;  %3923 = vmatmul.mubr.f32.vlgmr.msra.gmra.mxu0 %v4482_v59  ;;  %v3394_v5 = vsel %vm6813_vm2, %v3390_v47, %v3384_v7  ;;  %v3391_v40 = vsel %vm6815_vm3, %v3388_v15, %v3390_v47  ;;  %v3462_v22 = vmul.f32 %v3454_v52, %v3436_v14  ;;  %v4489_v14 = vld [vmem:[%s6653_s12 + $0x10] sm:$0xff] }
 0xb0c   : > { %3986 = vmatpush2.msra.mxu1 %v3521_v10  ;;  %4138 = vmatprep.mubr.f32.mxu0 %v6814_v27  ;;  %v3461_v29 = vmul.f32 %v3450_v6, %v3433_v25  ;;  %v3420_v48 = vmul.f32 %v3412_v53, %v3394_v5  ;;  %v3419_v8 = vmul.f32 %v3408_v3, %v3391_v40 }
 0xb0d   : > { %3987 = vmatprep.subr.mxu1 %v3492_v12  ;;  %v4490_v12 = vld [vmem:[%s6653_s12 + $0x18] sm:$0xff] }
 0xb0e   : > { %3988 = vmatpush2.msra.mxu1 %v3491_v33  ;;  %v3853_v26 = vpop.permute.xlu1 %3852 }
 0xb0f   : > { %3989 = vmatprep.subr.mxu1 %v3462_v22 }
 0xb10   : > { %3990 = vmatpush2.msra.mxu1 %v3461_v29 }
 0xb11   : > { %3991 = vmatprep.subr.mxu1 %v3420_v48 }
 0xb12   : > { %3992 = vmatpush2.msra.mxu1 %v3419_v8 }
 0xb13   : > { %3994 = vmatmul.mubr.f32.vlgmr.msra.gmra.mxu1 %v4482_v59 }
 0xb14   : > { %4215 = vmatprep.mubr.f32.mxu1 %v6814_v27 }
 0xbcb   : > { %v3924_v39 = vpop.f32.mrf.mxu0 }
 0xbcc   : > { %v3925_v16 = vadd.f32 %v3924_v39, %v3853_v26 }
 0xbcd   : > { %v3926_v31 = vpop.f32.mrf.mxu0 }
 0xbce   : > { %v3927_v28 = vadd.f32 %v3926_v31, %v3853_v26 }
 0xbd0   : > { %v4004_v37 = vadd.f32 %v3927_v28, %v3925_v16 }
 0xbd3   : > { %v3995_v18 = vpop.f32.mrf.mxu1 }
 0xbd4   : > { %v3996_v1 = vadd.f32 %v3995_v18, %v3853_v26 }
 0xbd5   : > { %v3997_v60 = vpop.f32.mrf.mxu1 }
 0xbd6   : > { %v4005_v4 = vadd.f32 %v4004_v37, %v3996_v1  ;;  %v3998_v30 = vadd.f32 %v3997_v60, %v3853_v26 }
 0xbd8   : > { %v4006_v46 = vadd.f32 %v4005_v4, %v3998_v30 }
 0xbda   : > { %4007 = vadd.xlane.f32.xlu0 %v4006_v46 }
 0xbf0   : > { %4032 = vperm.xlu0 %4532, %v4487_v0  }
 0xbf4   : > { %4060 = vperm.xlu0 %4532, %v4491_v20   ;;  %v4497_v20 = vld [vmem:[%s6655_s14 + $0x10] sm:$0xff] }
 0xc63   : > { %v4008_v9 = vpop.xlane.xlu0 %4007 }
 0xc64   : > { %v4009_v15 = vmul.f32 0.001953125, %v4008_v9  ;;  %v4499_v9 = vld [vmem:[%s6656_s15 + $0x10] sm:$0xff] }
 0xc66   : > { %v4010_v62 = vsub.f32 %v3925_v16, %v4009_v15  ;;  %v4011_v41 = vsub.f32 %v3927_v28, %v4009_v15  ;;  %v4012_v56 = vsub.f32 %v3996_v1, %v4009_v15  ;;  %v4013_v13 = vsub.f32 %v3998_v30, %v4009_v15  ;;  %v4500_v15 = vld [vmem:[%s6656_s15 + $0x18] sm:$0xff] }
 0xc68   : > { %v4014_v7 = vmul.f32 %v4010_v62, %v4010_v62  ;;  %v4015_v21 = vmul.f32 %v4011_v41, %v4011_v41  ;;  %v4016_v34 = vmul.f32 %v4012_v56, %v4012_v56  ;;  %v4017_v36 = vmul.f32 %v4013_v13, %v4013_v13 }
 0xc6a   : > { %v4018_v57 = vadd.f32 %v4015_v21, %v4014_v7 }
 0xc6b   : > { %v4033_v43 = vpop.permute.xlu0 %4032 }
 0xc6c   : > { %v4019_v24 = vadd.f32 %v4018_v57, %v4016_v34 }
 0xc6e   : > { %v4020_v35 = vadd.f32 %v4019_v24, %v4017_v36 }
 0xc6f   : > { %v4061_v33 = vpop.permute.xlu0 %4060 }
 0xc70   : > { %4021 = vadd.xlane.f32.xlu1 %v4020_v35 }
 0xc81   : > { %4041 = vperm.xlu1 %4533, %v4488_v38  }
 0xc85   : > { %4065 = vperm.xlu1 %4533, %v4492_v45  }
 0xcf9   : > { %v4022_v19 = vpop.xlane.xlu1 %4021 }
 0xcfa   : > { %v4023_v17 = vmul.f32 0.001953125, %v4022_v19 }
 0xcfc   : > { %v4024_v63 = vadd.f32 1e-05, %v4023_v17 }
 0xcfd   : > { %v4042_v61 = vpop.permute.xlu1 %4041 }
 0xcfe   : > { %4546 = vrsqrt.f32 %v4024_v63 }
 0xd0b   : > { %v4547_v58 = vpop.eup %4546 }
 0xd0c   : > { %v4026_v44 = vmul.f32 %v4547_v58, %v4010_v62  ;;  %v4028_v54 = vmul.f32 %v4547_v58, %v4012_v56  ;;  %v4027_v11 = vmul.f32 %v4547_v58, %v4011_v41  ;;  %v4029_v32 = vmul.f32 %v4547_v58, %v4013_v13 }
 0xd0e   : > { %v4035_v23 = vmul.f32 %v4033_v43, %v4026_v44  ;;  %v4037_v42 = vmul.f32 %v4033_v43, %v4028_v54  ;;  %v4036_v55 = vmul.f32 %v4033_v43, %v4027_v11  ;;  %v4038_v2 = vmul.f32 %v4033_v43, %v4029_v32 }
 0xd10   : > { %v4044_v49 = vadd.f32 %v4042_v61, %v4035_v23  ;;  %v4046_v59 = vadd.f32 %v4042_v61, %v4037_v42  ;;  %v4045_v50 = vadd.f32 %v4042_v61, %v4036_v55  ;;  %v4047_v51 = vadd.f32 %v4042_v61, %v4038_v2  ;;  %v4498_v61 = vld [vmem:[%s6655_s14 + $0x18] sm:$0xff] }
 0xd12   : > { %v4048_v47 = vmax.f32 %v4044_v49, 0.0  ;;  %v4050_v52 = vmax.f32 %v4046_v59, 0.0  ;;  %v4049_v10 = vmax.f32 %v4045_v50, 0.0  ;;  %v4051_v6 = vmax.f32 %v4047_v51, 0.0 }
 0xd14   : > { %4104 = vmatprep.subr.mxu0 %v4049_v10  ;;  %4181 = vmatprep.subr.mxu1 %v4051_v6 }
 0xd15   : > { %4105 = vmatpush1.msra.mxu0 %v4048_v47  ;;  %4182 = vmatpush1.msra.mxu1 %v4050_v52 }
 0xd16   : > { %4493 = vmatmul.mubr.msk.f32.vlgmr.msra.gmra.mxu0 %vm2274_vm1, %v4489_v14  ;;  %4495 = vmatmul.mubr.msk.f32.vlgmr.msra.gmra.mxu1 %vm2274_vm1, %v4489_v14 }
 0xd17   : > { %4144 = vmatprep.mubr.f32.mxu0 %v6814_v27  ;;  %4221 = vmatprep.mubr.f32.mxu1 %v6814_v27  ;;  %v4066_v27 = vpop.permute.xlu1 %4065 }
 0xd1a   : > { %4494 = vmatmul.mubr.msk.f32.gmra.mxu0 %vm2274_vm1, %v4490_v12  ;;  %4496 = vmatmul.mubr.msk.f32.gmra.mxu1 %vm2274_vm1, %v4490_v12 }
 0xdd6   : > { %v4140_v53 = vpop.f32.mrf.mxu0  ;;  %v4217_v25 = vpop.f32.mrf.mxu1 }
 0xdd7   : > { %v4141_v40 = vadd.f32 %v4140_v53, %v4061_v33  ;;  %v4218_v8 = vadd.f32 %v4217_v25, %v4061_v33 }
 0xdd8   : > { %v4142_v3 = vpop.f32.mrf.mxu0  ;;  %v4219_v5 = vpop.f32.mrf.mxu1 }
 0xdd9   : > { %v4143_v22 = vadd.f32 %v4142_v3, %v4061_v33  ;;  %v4220_v26 = vadd.f32 %v4219_v5, %v4061_v33 }
 0xdda   : > { %v4146_v29 = vpop.f32.mrf.mxu0  ;;  %v4223_v48 = vpop.f32.mrf.mxu1 }
 0xddb   : > { %v4234_v39 = vadd.f32 %v4143_v22, %v4141_v40  ;;  %v4147_v16 = vadd.f32 %v4146_v29, %v4066_v27  ;;  %v4224_v60 = vadd.f32 %v4223_v48, %v4066_v27 }
 0xddc   : > { %v4148_v31 = vpop.f32.mrf.mxu0  ;;  %v4225_v37 = vpop.f32.mrf.mxu1 }
 0xddd   : > { %v4235_v28 = vadd.f32 %v4234_v39, %v4218_v8  ;;  %v4149_v18 = vadd.f32 %v4148_v31, %v4066_v27  ;;  %v4226_v30 = vadd.f32 %v4225_v37, %v4066_v27 }
 0xddf   : > { %v4236_v1 = vadd.f32 %v4235_v28, %v4220_v26  ;;  %v4239_v4 = vadd.f32 %v4149_v18, %v4147_v16 }
 0xde1   : > { %v4240_v46 = vadd.f32 %v4239_v4, %v4224_v60  ;;  %4237 = vadd.xlane.f32.xlu0 %v4236_v1 }
 0xde3   : > { %v4241_v0 = vadd.f32 %v4240_v46, %v4226_v30  ;;  %v6820_v46 = vld [vmem:[#allocation6_spill] sm:$0xff] }
 0xde5   : > { %4242 = vadd.xlane.f32.xlu1 %v4241_v0  ;;  %v6821_v0 = vmax.f32 %v6820_v46, 0.0 }
 0xdf6   : > { %4288 = vperm.xlu1 %4533, %v4497_v20  }
 0xdfa   : > { %4306 = vperm.xlu1 %4533, %v4499_v9   ;;  %v6822_v9 = vld [vmem:[#allocation4_spill] sm:$0xff] }
 0xdfe   : > { %4311 = vperm.xlu1 %4533, %v4500_v15   ;;  %v6823_v15 = vmax.f32 %v6822_v9, 0.0 }
 0xe6a   : > { %v4238_v62 = vpop.xlane.xlu0 %4237 }
 0xe6b   : > { %v4244_v41 = vmul.f32 0.001953125, %v4238_v62 }
 0xe6d   : > { %v4246_v56 = vsub.f32 %v4141_v40, %v4244_v41  ;;  %v4247_v13 = vsub.f32 %v4143_v22, %v4244_v41  ;;  %v4248_v7 = vsub.f32 %v4218_v8, %v4244_v41  ;;  %v4249_v34 = vsub.f32 %v4220_v26, %v4244_v41 }
 0xe6e   : > { %v4243_v21 = vpop.xlane.xlu1 %4242 }
 0xe6f   : > { %v4245_v57 = vmul.f32 0.001953125, %v4243_v21  ;;  %v4254_v36 = vmul.f32 %v4246_v56, %v4246_v56  ;;  %v4255_v24 = vmul.f32 %v4247_v13, %v4247_v13  ;;  %v4256_v35 = vmul.f32 %v4248_v7, %v4248_v7 }
 0xe70   : > { %v4257_v63 = vmul.f32 %v4249_v34, %v4249_v34 }
 0xe71   : > { %v4250_v38 = vsub.f32 %v4147_v16, %v4245_v57  ;;  %v4251_v45 = vsub.f32 %v4149_v18, %v4245_v57  ;;  %v4252_v19 = vsub.f32 %v4224_v60, %v4245_v57  ;;  %v4262_v17 = vadd.f32 %v4255_v24, %v4254_v36  ;;  %v6816_v18 = vld [vmem:[#allocation5_spill] sm:$0xff]  ;;  %v6818_v60 = vld [vmem:[#allocation3_spill] sm:$0xff] }
 0xe72   : > { %v4253_v44 = vsub.f32 %v4226_v30, %v4245_v57  ;;  %v4289_v10 = vpop.permute.xlu1 %4288  ;;  %v6817_v37 = vmax.f32 %v6816_v18, 0.0  ;;  %v6819_v4 = vmax.f32 %v6818_v60, 0.0 }
 0xe73   : > { %v4263_v58 = vadd.f32 %v4262_v17, %v4256_v35  ;;  %v4258_v54 = vmul.f32 %v4250_v38, %v4250_v38  ;;  %v4259_v11 = vmul.f32 %v4251_v45, %v4251_v45  ;;  %v4260_v43 = vmul.f32 %v4252_v19, %v4252_v19 }
 0xe74   : > { %v4261_v42 = vmul.f32 %v4253_v44, %v4253_v44 }
 0xe75   : > { %v4264_v32 = vadd.f32 %v4263_v58, %v4257_v63  ;;  %v4267_v23 = vadd.f32 %v4259_v11, %v4258_v54  ;;  %v6824_v63 = vld [vmem:[#allocation7_spill] sm:$0xff] }
 0xe76   : > { %v4307_v33 = vpop.permute.xlu1 %4306  ;;  %v6825_v58 = vmax.f32 %v6824_v63, 0.0  ;;  %v6826_v54 = vld [vmem:[#allocation11_spill] sm:$0xff] }
 0xe77   : > { %4265 = vadd.xlane.f32.xlu0 %v4264_v32  ;;  %v4268_v55 = vadd.f32 %v4267_v23, %v4260_v43  ;;  %v6827_v11 = vmax.f32 %v6826_v54, 0.0  ;;  %v6828_v43 = vld [vmem:[#allocation8_spill] sm:$0xff] }
 0xe78   : > { %v6829_v23 = vmax.f32 %v6828_v43, 0.0 }
 0xe79   : > { %v4269_v2 = vadd.f32 %v4268_v55, %v4261_v42  ;;  %v6830_v55 = vld [vmem:[#allocation12_spill] sm:$0xff] }
 0xe7b   : > { %4270 = vadd.xlane.f32.xlu0 %v4269_v2  ;;  %v6831_v2 = vmax.f32 %v6830_v55, 0.0 }
 0xe91   : > { %4293 = vperm.xlu0 %4532, %v4498_v61  }
 0xf00   : > { %v4266_v49 = vpop.xlane.xlu0 %4265 }
 0xf01   : > { %v4272_v59 = vmul.f32 0.001953125, %v4266_v49 }
 0xf03   : > { %v4274_v50 = vadd.f32 1e-05, %v4272_v59 }
 0xf04   : > { %v4271_v51 = vpop.xlane.xlu0 %4270 }
 0xf05   : > { %4548 = vrsqrt.f32 %v4274_v50  ;;  %v4273_v47 = vmul.f32 0.001953125, %v4271_v51 }
 0xf07   : > { %v4275_v52 = vadd.f32 1e-05, %v4273_v47 }
 0xf09   : > { %4550 = vrsqrt.f32 %v4275_v52 }
 0xf0c   : > { %v4294_v41 = vpop.permute.xlu0 %4293 }
 0xf12   : > { %v4549_v6 = vpop.eup %4548 }
 0xf13   : > { %v4278_v14 = vmul.f32 %v4549_v6, %v4246_v56  ;;  %v4279_v12 = vmul.f32 %v4549_v6, %v4247_v13  ;;  %v4280_v53 = vmul.f32 %v4549_v6, %v4248_v7  ;;  %v4281_v25 = vmul.f32 %v4549_v6, %v4249_v34  ;;  %v4312_v34 = vpop.permute.xlu1 %4311 }
 0xf15   : > { %v4296_v3 = vmul.f32 %v4289_v10, %v4278_v14  ;;  %v4297_v5 = vmul.f32 %v4289_v10, %v4279_v12  ;;  %v4298_v40 = vmul.f32 %v4289_v10, %v4280_v53  ;;  %v4299_v22 = vmul.f32 %v4289_v10, %v4281_v25 }
 0xf16   : > { %v4551_v29 = vpop.eup %4550 }
 0xf17   : > { %v4314_v48 = vadd.f32 %v4307_v33, %v4296_v3  ;;  %v4315_v8 = vadd.f32 %v4307_v33, %v4297_v5  ;;  %v4316_v39 = vadd.f32 %v4307_v33, %v4298_v40  ;;  %v4317_v27 = vadd.f32 %v4307_v33, %v4299_v22 }
 0xf18   : > { %v4282_v31 = vmul.f32 %v4551_v29, %v4250_v38  ;;  %v4283_v26 = vmul.f32 %v4551_v29, %v4251_v45  ;;  %v4284_v28 = vmul.f32 %v4551_v29, %v4252_v19  ;;  %v4285_v16 = vmul.f32 %v4551_v29, %v4253_v44 }
 0xf19   : > { %v4322_v1 = vadd.f32 %v4314_v48, %v6817_v37  ;;  %v4323_v30 = vadd.f32 %v4315_v8, %v6819_v4  ;;  %v4324_v20 = vadd.f32 %v4316_v39, %v6821_v0  ;;  %v4325_v62 = vadd.f32 %v4317_v27, %v6823_v15 }
 0xf1a   : > { %v4300_v56 = vmul.f32 %v4294_v41, %v4282_v31  ;;  %v4301_v13 = vmul.f32 %v4294_v41, %v4283_v26  ;;  %v4302_v7 = vmul.f32 %v4294_v41, %v4284_v28  ;;  %v4303_v21 = vmul.f32 %v4294_v41, %v4285_v16 }
 0xf1b   : > { %v4330_v57 = vmax.f32 %v4322_v1, 0.0  ;;  %v4331_v36 = vmax.f32 %v4323_v30, 0.0  ;;  %v4332_v24 = vmax.f32 %v4324_v20, 0.0  ;;  %v4333_v35 = vmax.f32 %v4325_v62, 0.0 }
 0xf1c   : > { %v4318_v38 = vadd.f32 %v4312_v34, %v4300_v56  ;;  %v4319_v45 = vadd.f32 %v4312_v34, %v4301_v13  ;;  %v4320_v19 = vadd.f32 %v4312_v34, %v4302_v7  ;;  %v4321_v17 = vadd.f32 %v4312_v34, %v4303_v21 }
 0xf1d   : > { %4338 = vst [vmem:[%s521_s17] sm:$0xff] %v4330_v57  ;;  %4339 = vst [vmem:[%s521_s17 + $0x8] sm:$0xff] %v4331_v36 }
 0xf1e   : > { %4340 = vst [vmem:[%s521_s17 + $0x10] sm:$0xff] %v4332_v24  ;;  %4341 = vst [vmem:[%s521_s17 + $0x18] sm:$0xff] %v4333_v35  ;;  %v4326_v44 = vadd.f32 %v4318_v38, %v6825_v58  ;;  %v4327_v32 = vadd.f32 %v4319_v45, %v6827_v11  ;;  %v4328_v42 = vadd.f32 %v4320_v19, %v6829_v23 }
 0xf1f   : > { %v4329_v61 = vadd.f32 %v4321_v17, %v6831_v2 }
 0xf20   : > { %v4334_v49 = vmax.f32 %v4326_v44, 0.0  ;;  %v4335_v59 = vmax.f32 %v4327_v32, 0.0  ;;  %v4336_v50 = vmax.f32 %v4328_v42, 0.0 }
 0xf21   : > { %v4337_v51 = vmax.f32 %v4329_v61, 0.0 }
 0xf22   : > { %4342 = vst [vmem:[%s521_s17 + $0x20] sm:$0xff] %v4334_v49  ;;  %4343 = vst [vmem:[%s521_s17 + $0x28] sm:$0xff] %v4335_v59 }
 0xf23   : > { %4344 = vst [vmem:[%s521_s17 + $0x30] sm:$0xff] %v4336_v50  ;;  %4345 = vst [vmem:[%s521_s17 + $0x38] sm:$0xff] %v4337_v51 }
 0xf24 PF: > { %s26_s21 = sadd.s32 1, %s4558_s21  }
 0xf25   : > { %p23_p4 = scmp.ge.s32.totalorder %s26_s21, 4  }
 0xf27   :  { %25 = sbr.rel (!%p23_p4) target bundleno = 2 (0x2), region = 151 }

</bundles_post_ra>
